<compile_context>
chip_gen: v5e
topology: v5e:2x2
jax: 0.10.0
libtpu: 0.0.40
codegen_flags: <defaults>
</compile_context>

<pallas_src>
import math
import functools

import jax
import jax.numpy as jnp
from jax import lax
from jax.experimental import pallas as pl
from jax.experimental.pallas import tpu as pltpu


# ----------------------------------------------------------------------------
# Per-generation VMEM budget
# ----------------------------------------------------------------------------

def _default_vmem_limit():
    """~75% of physical VMEM: ~48 MiB on v7x (64 MiB), ~96 MiB on v5e/v6e (128 MiB)."""
    try:
        cap = pltpu.get_tpu_info().vmem_capacity_bytes
        return int(min(cap * 3 // 4, 100 * 1024 * 1024))
    except Exception:
        return 64 * 1024 * 1024


_VMEM_LIMIT = _default_vmem_limit()
_BIG_VMEM = _VMEM_LIMIT >= 80 * 1024 * 1024        # v5e / v6e class
_DEFAULT_TM = 512 if _BIG_VMEM else 256            # row tile per generation
_RESIDENT_W_BYTES = 4 * 1024 * 1024                # bf16 weight kept VMEM-resident


# ----------------------------------------------------------------------------
# Helpers
# ----------------------------------------------------------------------------

def _tile(dim, target, quantum):
    """Largest multiple of `quantum` (<= target) dividing `dim`; else full dim."""
    if dim % quantum != 0:
        return dim
    t = min(target, dim)
    t -= t % quantum
    while t >= quantum:
        if dim % t == 0:
            return t
        t -= quantum
    return dim


def _sigmoid(x):
    # exp + approx reciprocal both ride the EUP slot -> VALU stays free.
    return pl.reciprocal(1.0 + jnp.exp(-x), approx=True)


def _apply_act(y, activation):
    if activation == "relu":
        return jnp.maximum(y, 0.0)
    if activation == "silu":
        return y * _sigmoid(y)
    return y


# ----------------------------------------------------------------------------
# Standalone LayerNorm (fallback path only)
# ----------------------------------------------------------------------------

def _layernorm_kernel(x_ref, g_ref, b_ref, o_ref, *, eps):
    x = x_ref[...].astype(jnp.float32)
    mu = jnp.mean(x, axis=-1, keepdims=True)
    var = jnp.mean(jnp.square(x - mu), axis=-1, keepdims=True)
    o_ref[...] = ((x - mu) * lax.rsqrt(var + eps) * g_ref[...] + b_ref[...]
                  ).astype(o_ref.dtype)


def pallas_layernorm(x, gamma, beta, eps=1e-5, out_dtype=jnp.float32, tm=None):
    M, E = x.shape
    tm = _tile(M, tm or _DEFAULT_TM, 8)
    kernel = functools.partial(_layernorm_kernel, eps=eps)
    return pl.pallas_call(
        kernel,
        grid=(M // tm,),
        in_specs=[
            pl.BlockSpec((tm, E), lambda i: (i, 0)),
            pl.BlockSpec((1, E), lambda i: (0, 0)),
            pl.BlockSpec((1, E), lambda i: (0, 0)),
        ],
        out_specs=pl.BlockSpec((tm, E), lambda i: (i, 0)),
        out_shape=jax.ShapeDtypeStruct((M, E), out_dtype),
        compiler_params=pltpu.CompilerParams(
            dimension_semantics=("parallel",),
            vmem_limit_bytes=_VMEM_LIMIT),
    )(x, gamma.reshape(1, E).astype(jnp.float32),
      beta.reshape(1, E).astype(jnp.float32))


# ----------------------------------------------------------------------------
# Tiled linear: resident-weight fast path + 3-D tiled fallback
# ----------------------------------------------------------------------------

def _mm1_kernel(x_ref, w_ref, b_ref, o_ref, *, activation):
    y = jnp.dot(x_ref[...].astype(jnp.bfloat16), w_ref[...],
                preferred_element_type=jnp.float32) + b_ref[...]
    o_ref[...] = _apply_act(y, activation).astype(o_ref.dtype)


def _mm1_res_kernel(x_ref, w_ref, b_ref, r_ref, o_ref, *, activation, res_scale):
    y = jnp.dot(x_ref[...].astype(jnp.bfloat16), w_ref[...],
                preferred_element_type=jnp.float32) + b_ref[...]
    o_ref[...] = (r_ref[...].astype(jnp.float32)
                  + res_scale * _apply_act(y, activation)).astype(o_ref.dtype)


def _mm1_res_ln_kernel(x_ref, w_ref, b_ref, r_ref, g_ref, be_ref, o_ref, *,
                       activation, res_scale, eps):
    y = jnp.dot(x_ref[...].astype(jnp.bfloat16), w_ref[...],
                preferred_element_type=jnp.float32) + b_ref[...]
    y = r_ref[...].astype(jnp.float32) + res_scale * _apply_act(y, activation)
    mu = jnp.mean(y, axis=-1, keepdims=True)
    var = jnp.mean(jnp.square(y - mu), axis=-1, keepdims=True)
    o_ref[...] = ((y - mu) * lax.rsqrt(var + eps) * g_ref[...] + be_ref[...]
                  ).astype(o_ref.dtype)


def _mm_kernel(x_ref, w_ref, b_ref, o_ref, acc_ref, *, activation):
    @pl.when(pl.program_id(2) == 0)
    def _():
        acc_ref[...] = jnp.zeros_like(acc_ref)

    acc_ref[...] += jnp.dot(x_ref[...].astype(jnp.bfloat16), w_ref[...],
                            preferred_element_type=jnp.float32)

    @pl.when(pl.program_id(2) == pl.num_programs(2) - 1)
    def _():
        o_ref[...] = _apply_act(acc_ref[...] + b_ref[...], activation).astype(o_ref.dtype)


def _mm_res_kernel(x_ref, w_ref, b_ref, r_ref, o_ref, acc_ref, *,
                   activation, res_scale):
    @pl.when(pl.program_id(2) == 0)
    def _():
        acc_ref[...] = jnp.zeros_like(acc_ref)

    acc_ref[...] += jnp.dot(x_ref[...].astype(jnp.bfloat16), w_ref[...],
                            preferred_element_type=jnp.float32)

    @pl.when(pl.program_id(2) == pl.num_programs(2) - 1)
    def _():
        y = _apply_act(acc_ref[...] + b_ref[...], activation)
        o_ref[...] = (r_ref[...].astype(jnp.float32) + res_scale * y).astype(o_ref.dtype)


def pallas_linear(x, w, b, activation="none", residual=None, res_scale=1.0,
                  final_ln=None, out_dtype=jnp.float32,
                  tm=None, tn=512, tk=512):
    """o = LN?[residual + res_scale *] act(x @ w + b); bf16 MXU, fp32 accumulation."""
    M, K = x.shape
    N = w.shape[1]
    tm = _tile(M, tm or _DEFAULT_TM, 8)
    w_bf = w.astype(jnp.bfloat16)
    b2 = b.reshape(1, N).astype(jnp.float32)

    resident = (K * N * 2) <= _RESIDENT_W_BYTES
    if resident:
        in_specs = [
            pl.BlockSpec((tm, K), lambda i: (i, 0)),
            pl.BlockSpec((K, N), lambda i: (0, 0)),     # weight resident across M tiles
            pl.BlockSpec((1, N), lambda i: (0, 0)),
        ]
        args = [x, w_bf, b2]
        if residual is None:
            kernel = functools.partial(_mm1_kernel, activation=activation)
        else:
            in_specs.append(pl.BlockSpec((tm, N), lambda i: (i, 0)))
            args.append(residual)
            if final_ln is None:
                kernel = functools.partial(_mm1_res_kernel, activation=activation,
                                           res_scale=res_scale)
            else:
                gamma, beta = final_ln
                in_specs.append(pl.BlockSpec((1, N), lambda i: (0, 0)))
                in_specs.append(pl.BlockSpec((1, N), lambda i: (0, 0)))
                args.append(gamma.reshape(1, N).astype(jnp.float32))
                args.append(beta.reshape(1, N).astype(jnp.float32))
                kernel = functools.partial(_mm1_res_ln_kernel, activation=activation,
                                           res_scale=res_scale, eps=1e-5)
        return pl.pallas_call(
            kernel,
            grid=(M // tm,),
            in_specs=in_specs,
            out_specs=pl.BlockSpec((tm, N), lambda i: (i, 0)),
            out_shape=jax.ShapeDtypeStruct((M, N), out_dtype),
            compiler_params=pltpu.CompilerParams(
                dimension_semantics=("parallel",),
                vmem_limit_bytes=_VMEM_LIMIT),
        )(*args)

    # Large-weight fallback: 3-D tiled with fp32 VMEM accumulator.
    tn = _tile(N, tn, 128)
    tk = _tile(K, tk, 128)
    grid = (M // tm, N // tn, K // tk)
    inter_dtype = jnp.float32 if final_ln is not None else out_dtype
    in_specs = [
        pl.BlockSpec((tm, tk), lambda i, j, k: (i, k)),
        pl.BlockSpec((tk, tn), lambda i, j, k: (k, j)),
        pl.BlockSpec((1, tn), lambda i, j, k: (0, j)),
    ]
    args = [x, w_bf, b2]
    if residual is None:
        kernel = functools.partial(_mm_kernel, activation=activation)
    else:
        kernel = functools.partial(_mm_res_kernel, activation=activation,
                                   res_scale=res_scale)
        in_specs.append(pl.BlockSpec((tm, tn), lambda i, j, k: (i, j)))
        args.append(residual)
    out = pl.pallas_call(
        kernel,
        grid=grid,
        in_specs=in_specs,
        out_specs=pl.BlockSpec((tm, tn), lambda i, j, k: (i, j)),
        out_shape=jax.ShapeDtypeStruct((M, N), inter_dtype),
        scratch_shapes=[pltpu.VMEM((tm, tn), jnp.float32)],
        compiler_params=pltpu.CompilerParams(
            dimension_semantics=("parallel", "parallel", "arbitrary"),
            vmem_limit_bytes=_VMEM_LIMIT),
    )(*args)
    if final_ln is not None:
        out = pallas_layernorm(out, final_ln[0], final_ln[1], out_dtype=out_dtype)
    return out


# ----------------------------------------------------------------------------
# Fused LayerNorm + linear (+ activation)
# ----------------------------------------------------------------------------

def _ln_mm_kernel(x_ref, g_ref, be_ref, w_ref, b_ref, o_ref, *, activation, eps):
    x = x_ref[...].astype(jnp.float32)
    mu = jnp.mean(x, axis=-1, keepdims=True)
    var = jnp.mean(jnp.square(x - mu), axis=-1, keepdims=True)
    xn = (x - mu) * lax.rsqrt(var + eps) * g_ref[...] + be_ref[...]
    y = jnp.dot(xn.astype(jnp.bfloat16), w_ref[...],
                preferred_element_type=jnp.float32) + b_ref[...]
    o_ref[...] = _apply_act(y, activation).astype(o_ref.dtype)


def pallas_ln_linear(x, gamma, beta, w, b, activation="none", eps=1e-5,
                     out_dtype=jnp.float32, tm=None, tn=None):
    M, K = x.shape
    N = w.shape[1]
    tm = _tile(M, tm or _DEFAULT_TM, 8)
    if tn is None:
        # Full output width when the bf16 weight fits -> one LN per row tile,
        # weight streamed exactly once per row tile.
        tn = N if (K * N * 2) <= 6 * 1024 * 1024 else 512
    tn = _tile(N, tn, 128)
    kernel = functools.partial(_ln_mm_kernel, activation=activation, eps=eps)
    return pl.pallas_call(
        kernel,
        grid=(M // tm, N // tn),
        in_specs=[
            pl.BlockSpec((tm, K), lambda i, j: (i, 0)),
            pl.BlockSpec((1, K), lambda i, j: (0, 0)),
            pl.BlockSpec((1, K), lambda i, j: (0, 0)),
            pl.BlockSpec((K, tn), lambda i, j: (0, j)),
            pl.BlockSpec((1, tn), lambda i, j: (0, j)),
        ],
        out_specs=pl.BlockSpec((tm, tn), lambda i, j: (i, j)),
        out_shape=jax.ShapeDtypeStruct((M, N), out_dtype),
        compiler_params=pltpu.CompilerParams(
            dimension_semantics=("parallel", "parallel"),
            vmem_limit_bytes=_VMEM_LIMIT),
    )(x, gamma.reshape(1, K).astype(jnp.float32),
      beta.reshape(1, K).astype(jnp.float32),
      w.astype(jnp.bfloat16), b.reshape(1, N).astype(jnp.float32))


# ----------------------------------------------------------------------------
# Fused LayerNorm + pointwise-conv1 + GLU (two lane-aligned weight halves)
# ----------------------------------------------------------------------------

def _ln_glu_kernel(x_ref, g_ref, be_ref, wv_ref, bv_ref, wg_ref, bg_ref, o_ref,
                   *, eps):
    x = x_ref[...].astype(jnp.float32)
    mu = jnp.mean(x, axis=-1, keepdims=True)
    var = jnp.mean(jnp.square(x - mu), axis=-1, keepdims=True)
    xn = ((x - mu) * lax.rsqrt(var + eps) * g_ref[...] + be_ref[...]).astype(jnp.bfloat16)
    val = jnp.dot(xn, wv_ref[...], preferred_element_type=jnp.float32) + bv_ref[...]
    gate = jnp.dot(xn, wg_ref[...], preferred_element_type=jnp.float32) + bg_ref[...]
    o_ref[...] = (val * _sigmoid(gate)).astype(o_ref.dtype)


def pallas_ln_glu(x, gamma, beta, wv, bv, wg, bg, eps=1e-5,
                  out_dtype=jnp.bfloat16, tm=None, tn=None):
    M, K = x.shape
    N = wv.shape[1]
    tm = _tile(M, tm or _DEFAULT_TM, 8)
    if tn is None:
        tn = N if (2 * K * N * 2) <= 6 * 1024 * 1024 else 512
    tn = _tile(N, tn, 128)
    kernel = functools.partial(_ln_glu_kernel, eps=eps)
    return pl.pallas_call(
        kernel,
        grid=(M // tm, N // tn),
        in_specs=[
            pl.BlockSpec((tm, K), lambda i, j: (i, 0)),
            pl.BlockSpec((1, K), lambda i, j: (0, 0)),
            pl.BlockSpec((1, K), lambda i, j: (0, 0)),
            pl.BlockSpec((K, tn), lambda i, j: (0, j)),
            pl.BlockSpec((1, tn), lambda i, j: (0, j)),
            pl.BlockSpec((K, tn), lambda i, j: (0, j)),
            pl.BlockSpec((1, tn), lambda i, j: (0, j)),
        ],
        out_specs=pl.BlockSpec((tm, tn), lambda i, j: (i, j)),
        out_shape=jax.ShapeDtypeStruct((M, N), out_dtype),
        compiler_params=pltpu.CompilerParams(
            dimension_semantics=("parallel", "parallel"),
            vmem_limit_bytes=_VMEM_LIMIT),
    )(x, gamma.reshape(1, K).astype(jnp.float32),
      beta.reshape(1, K).astype(jnp.float32),
      wv.astype(jnp.bfloat16), bv.reshape(1, N).astype(jnp.float32),
      wg.astype(jnp.bfloat16), bg.reshape(1, N).astype(jnp.float32))


# ----------------------------------------------------------------------------
# Multi-head self-attention: one grid step per batch, all heads in-kernel,
# (1, T) key mask from scalar-prefetched lengths, per-head outputs accumulated
# into a (T, E) fp32 VMEM scratch, single lane-dense bf16 store.
# 1/sqrt(Dh) is folded into Wqkv on the host.
# ----------------------------------------------------------------------------

def _attention_kernel(len_ref, qkv_ref, o_ref, acc_ref, *, num_heads):
    b = pl.program_id(0)
    length = len_ref[b]
    qkv = qkv_ref[0]                          # (T, 3E) bf16
    T = qkv.shape[0]
    E = qkv.shape[1] // 3
    Dh = E // num_heads
    key_ok = lax.broadcasted_iota(jnp.int32, (1, T), 1) < length   # (1, T) row mask
    for h in range(num_heads):                # static unroll over heads
        q = qkv[:, h * Dh:(h + 1) * Dh].astype(jnp.bfloat16)
        k = qkv[:, E + h * Dh:E + (h + 1) * Dh].astype(jnp.bfloat16)
        v = qkv[:, 2 * E + h * Dh:2 * E + (h + 1) * Dh].astype(jnp.bfloat16)
        s = lax.dot_general(q, k, (((1,), (1,)), ((), ())),
                            preferred_element_type=jnp.float32)
        s = jnp.where(key_ok, s, -1e9)
        s = s - jnp.max(s, axis=-1, keepdims=True)
        p = jnp.exp(s)
        p = p * pl.reciprocal(jnp.sum(p, axis=-1, keepdims=True), approx=True)
        acc_ref[:, h * Dh:(h + 1) * Dh] = jnp.dot(
            p.astype(jnp.bfloat16), v, preferred_element_type=jnp.float32)
    o_ref[0] = acc_ref[...].astype(o_ref.dtype)   # lane-dense (T, E) store


def pallas_attention(qkv, lengths, num_heads, out_dtype=jnp.bfloat16):
    """qkv: (B, T, 3E) fused projection (Q pre-scaled); lengths: (B,) int32."""
    B, T, E3 = qkv.shape
    E = E3 // 3
    kernel = functools.partial(_attention_kernel, num_heads=num_heads)
    # TODO(synk): flash-style (Tq,Tk) blocking with online softmax for long T;
    #             head/time-split second grid axis for v7x 2-TC utilization.
    return pl.pallas_call(
        kernel,
        grid_spec=pltpu.PrefetchScalarGridSpec(
            num_scalar_prefetch=1,
            grid=(B,),
            in_specs=[pl.BlockSpec((1, T, E3), lambda b, lens: (b, 0, 0))],
            out_specs=pl.BlockSpec((1, T, E), lambda b, lens: (b, 0, 0)),
            scratch_shapes=[pltpu.VMEM((T, E), jnp.float32)],
        ),
        out_shape=jax.ShapeDtypeStruct((B, T, E), out_dtype),
        compiler_params=pltpu.CompilerParams(
            dimension_semantics=("parallel",),
            vmem_limit_bytes=_VMEM_LIMIT),
    )(lengths, qkv)


# ----------------------------------------------------------------------------
# Depthwise conv + BatchNorm(eval) + SiLU  (taps via XLU roll on padded time axis)
# ----------------------------------------------------------------------------

def _dwconv_bn_silu_kernel(xp_ref, w_ref, b_ref, scale_ref, shift_ref, o_ref,
                           *, K, T):
    xp = xp_ref[0].astype(jnp.float32)       # (Tp_pad, E), Tp_pad multiple of 8
    w = w_ref[...]                           # (K, E)
    Tp = xp.shape[0]
    acc = xp * w[0, :]
    for kk in range(1, K):                   # static unrolled taps, XLU rolls
        acc = acc + pltpu.roll(xp, shift=Tp - kk, axis=0) * w[kk, :]
    y = acc[:T, :] + b_ref[...]              # depthwise conv bias
    y = y * scale_ref[...] + shift_ref[...]  # folded BatchNorm1d (eval)
    y = y * _sigmoid(y)                      # SiLU via EUP reciprocal
    o_ref[0] = y.astype(o_ref.dtype)


def pallas_depthwise_conv_bn_silu(x_pad, w, b, bn_scale, bn_shift, T, K,
                                  out_dtype=jnp.bfloat16):
    """x_pad: (B, Tp_pad, E) zero-padded (Tp_pad % 8 == 0); w: (K, E)."""
    # TODO(synk): tile over T with a (K-1) halo for very long utterances (v7x VMEM).
    B, Tp, E = x_pad.shape
    kernel = functools.partial(_dwconv_bn_silu_kernel, K=K, T=T)
    return pl.pallas_call(
        kernel,
        grid=(B,),
        in_specs=[
            pl.BlockSpec((1, Tp, E), lambda i: (i, 0, 0)),
            pl.BlockSpec((K, E), lambda i: (0, 0)),
            pl.BlockSpec((1, E), lambda i: (0, 0)),
            pl.BlockSpec((1, E), lambda i: (0, 0)),
            pl.BlockSpec((1, E), lambda i: (0, 0)),
        ],
        out_specs=pl.BlockSpec((1, T, E), lambda i: (i, 0, 0)),
        out_shape=jax.ShapeDtypeStruct((B, T, E), out_dtype),
        compiler_params=pltpu.CompilerParams(
            dimension_semantics=("parallel",),
            vmem_limit_bytes=_VMEM_LIMIT),
    )(x_pad, w, b, bn_scale, bn_shift)


# ----------------------------------------------------------------------------
# fc projection with positional encoding fused in-kernel
# ----------------------------------------------------------------------------

def _fc_pe_kernel(x_ref, w_ref, b_ref, pe_ref, o_ref):
    y = jnp.dot(x_ref[0].astype(jnp.bfloat16), w_ref[...],
                preferred_element_type=jnp.float32)
    o_ref[0] = (y + b_ref[...] + pe_ref[...]).astype(o_ref.dtype)


def pallas_fc_pe(x3, w, b, pe):
    """x3: (B, T, K) subsampled features (bf16); adds sinusoidal PE in-kernel."""
    B, T, K = x3.shape
    E = w.shape[1]
    # Cap the time tile so the x block stays ~<=2 MiB even for large K (v7x-safe).
    tt_target = max(8, min(256, ((1 << 21) // max(1, 2 * K)) // 8 * 8))
    tt = _tile(T, tt_target, 8)
    # TODO(synk): add a K grid axis with fp32 accumulator for very large E*D'.
    return pl.pallas_call(
        _fc_pe_kernel,
        grid=(B, T // tt),
        in_specs=[
            pl.BlockSpec((1, tt, K), lambda i, j: (i, j, 0)),
            pl.BlockSpec((K, E), lambda i, j: (0, 0)),
            pl.BlockSpec((1, E), lambda i, j: (0, 0)),
            pl.BlockSpec((tt, E), lambda i, j: (j, 0)),
        ],
        out_specs=pl.BlockSpec((1, tt, E), lambda i, j: (i, j, 0)),
        out_shape=jax.ShapeDtypeStruct((B, T, E), jnp.float32),
        compiler_params=pltpu.CompilerParams(
            dimension_semantics=("parallel", "parallel"),
            vmem_limit_bytes=_VMEM_LIMIT),
    )(x3, w.astype(jnp.bfloat16), b.reshape(1, E).astype(jnp.float32), pe)


# ----------------------------------------------------------------------------
# Conv2d subsampling via im2col (bf16 patches) + Pallas matmul
# ----------------------------------------------------------------------------

def conv2d_s2_relu(x_nchw, w, b):
    """3x3 stride-2 valid Conv2d (+ReLU).  x:(B,C,H,W)  w:(Cout,Cin,3,3)."""
    # TODO(synk): replace host-side im2col with a Pallas patch-gather BlockSpec.
    B, C, H, W = x_nchw.shape
    Cout = w.shape[0]
    Ho = (H - 3) // 2 + 1
    Wo = (W - 3) // 2 + 1
    patches = []
    for i in range(3):
        for j in range(3):
            patches.append(
                x_nchw[:, :, i:i + 2 * (Ho - 1) + 1:2, j:j + 2 * (Wo - 1) + 1:2])
    p = jnp.stack(patches, axis=2)                       # (B, C, 9, Ho, Wo)
    p = p.transpose(0, 3, 4, 1, 2).reshape(B * Ho * Wo, C * 9).astype(jnp.bfloat16)
    wmat = w.reshape(Cout, C * 9).T                      # (C*9, Cout)
    y = pallas_linear(p, wmat, b, activation="relu", out_dtype=jnp.bfloat16)
    return y.reshape(B, Ho, Wo, Cout).transpose(0, 3, 1, 2)


def positional_encoding(T, E):
    pos = jnp.arange(T, dtype=jnp.float32)[:, None]
    div = jnp.exp(jnp.arange(0, E, 2, dtype=jnp.float32) * (-math.log(10000.0) / E))
    sin = jnp.sin(pos * div)
    cos = jnp.cos(pos * div)
    pe = jnp.zeros((T, E), jnp.float32)
    pe = pe.at[:, 0::2].set(sin[:, :(E + 1) // 2])
    pe = pe.at[:, 1::2].set(cos[:, :E // 2])
    return pe


# ----------------------------------------------------------------------------
# Conformer block / encoder forward
# ----------------------------------------------------------------------------

def conformer_block(x, out_lengths, p, num_heads, kernel_size):
    B, T, E = x.shape
    xf = x.reshape(B * T, E)          # fp32 residual chain

    # Feed-forward module #1 (half-step residual), LN fused into first matmul.
    h = pallas_ln_linear(xf, p["ffn1_ln_g"], p["ffn1_ln_b"],
                         p["ffn1_w1"], p["ffn1_b1"],
                         activation="silu", out_dtype=jnp.bfloat16)
    xf = pallas_linear(h, p["ffn1_w2"], p["ffn1_b2"], residual=xf, res_scale=0.5)

    # Multi-head self-attention: LN + fused QKV projection with 1/sqrt(Dh)
    # folded into the Q columns; in-kernel heads + key mask.
    Dh = E // num_heads
    scale = 1.0 / math.sqrt(Dh)
    col_scale = jnp.concatenate([jnp.full((E,), scale, jnp.float32),
                                 jnp.ones((2 * E,), jnp.float32)])
    qkv = pallas_ln_linear(xf, p["mhsa_ln_g"], p["mhsa_ln_b"],
                           p["wqkv"] * col_scale[None, :], p["bqkv"] * col_scale,
                           out_dtype=jnp.bfloat16)
    a = pallas_attention(qkv.reshape(B, T, 3 * E), out_lengths, num_heads)
    xf = pallas_linear(a.reshape(B * T, E), p["wo"], p["bo"],
                       residual=xf, res_scale=1.0)

    # Convolution module: fused LN + pointwise1 + GLU, depthwise+BN+SiLU, pw2.
    h = pallas_ln_glu(xf, p["conv_ln_g"], p["conv_ln_b"],
                      p["pw1_wv"], p["pw1_bv"], p["pw1_wg"], p["pw1_bg"],
                      out_dtype=jnp.bfloat16)
    K = kernel_size
    pad_l = (K - 1) // 2
    pad_r = K - 1 - pad_l
    Tp = T + K - 1
    Tp_pad = ((Tp + 7) // 8) * 8                          # sublane-align for roll
    h3p = jnp.pad(h.reshape(B, T, E),
                  ((0, 0), (pad_l, pad_r + Tp_pad - Tp), (0, 0)))
    eps_bn = 1e-5
    inv_std = 1.0 / jnp.sqrt(p["bn_var"] + eps_bn)
    bn_scale = (p["bn_gamma"] * inv_std).reshape(1, E)
    bn_shift = (p["bn_beta"] - p["bn_mean"] * p["bn_gamma"] * inv_std).reshape(1, E)
    hdw = pallas_depthwise_conv_bn_silu(h3p, p["dw_w"], p["dw_b"].reshape(1, E),
                                        bn_scale, bn_shift, T, K)
    xf = pallas_linear(hdw.reshape(B * T, E), p["pw2_w"], p["pw2_b"],
                       residual=xf, res_scale=1.0)

    # Feed-forward module #2 (half-step residual) with the block-final LayerNorm
    # fused into the residual-matmul epilogue.
    h = pallas_ln_linear(xf, p["ffn2_ln_g"], p["ffn2_ln_b"],
                         p["ffn2_w1"], p["ffn2_b1"],
                         activation="silu", out_dtype=jnp.bfloat16)
    xf = pallas_linear(h, p["ffn2_w2"], p["ffn2_b2"], residual=xf, res_scale=0.5,
                       final_ln=(p["final_ln_g"], p["final_ln_b"]))
    return xf.reshape(B, T, E)


def conformer_encoder_forward(inputs, input_lengths, params, num_heads, kernel_size):
    B, T, D = inputs.shape
    # Convolution subsampling (two 3x3 stride-2 convs + ReLU), PyTorch NCHW.
    x = inputs[:, None, :, :]                                   # (B, 1, T, D)
    x = conv2d_s2_relu(x, params["sub_conv1_w"], params["sub_conv1_b"])
    x = conv2d_s2_relu(x, params["sub_conv2_w"], params["sub_conv2_b"])
    _, E, T2, D2 = x.shape
    x = x.transpose(0, 2, 1, 3).reshape(B, T2, E * D2)          # (B, T', E*D') bf16

    out_lengths = (input_lengths - 3) // 2 + 1
    out_lengths = (out_lengths - 3) // 2 + 1
    out_lengths = out_lengths.astype(jnp.int32)

    # fc projection with fused absolute positional encoding (dropout == identity)
    pe = positional_encoding(T2, E)
    x = pallas_fc_pe(x, params["fc_w"], params["fc_b"], pe)     # (B, T', E) fp32

    # NOTE: query rows beyond out_lengths are not masked (only keys are);
    # callers are expected to mask outputs by length, matching the reference.
    for blk in params["blocks"]:
        x = conformer_block(x, out_lengths, blk, num_heads, kernel_size)
    return x, out_lengths


# ----------------------------------------------------------------------------
# Deterministic parameter initialization (synthetic weights, no checkpoints)
# ----------------------------------------------------------------------------

def _w(key, shape, scale=0.05, dtype=jnp.bfloat16):
    return (scale * jax.random.normal(key, shape, dtype=jnp.float32)).astype(dtype)


def init_params(key, input_dim, kernel_size, encoder_dim, linear_dim,
                num_heads, num_layers):
    E, L, K = encoder_dim, linear_dim, kernel_size
    D1 = (input_dim - 3) // 2 + 1
    D2 = (D1 - 3) // 2 + 1
    keys = jax.random.split(key, 4 + num_layers)
    params = {
        "sub_conv1_w": _w(keys[0], (E, 1, 3, 3)),
        "sub_conv1_b": jnp.zeros((E,), jnp.float32),
        "sub_conv2_w": _w(keys[1], (E, E, 3, 3)),
        "sub_conv2_b": jnp.zeros((E,), jnp.float32),
        "fc_w": _w(keys[2], (E * D2, E)),
        "fc_b": jnp.zeros((E,), jnp.float32),
    }
    blocks = []
    for layer in range(num_layers):
        lk = jax.random.split(keys[4 + layer], 10)
        blk = {
            "ffn1_ln_g": jnp.ones((1, E)), "ffn1_ln_b": jnp.zeros((1, E)),
            "ffn1_w1": _w(lk[0], (E, L)), "ffn1_b1": jnp.zeros((L,)),
            "ffn1_w2": _w(lk[1], (L, E)), "ffn1_b2": jnp.zeros((E,)),
            "mhsa_ln_g": jnp.ones((1, E)), "mhsa_ln_b": jnp.zeros((1, E)),
            "wqkv": _w(lk[2], (E, 3 * E)), "bqkv": jnp.zeros((3 * E,)),
            "wo": _w(lk[3], (E, E)), "bo": jnp.zeros((E,)),
            "conv_ln_g": jnp.ones((1, E)), "conv_ln_b": jnp.zeros((1, E)),
            "pw1_wv": _w(lk[4], (E, E)), "pw1_bv": jnp.zeros((E,)),
            "pw1_wg": _w(lk[5], (E, E)), "pw1_bg": jnp.zeros((E,)),
            "dw_w": _w(lk[6], (K, E), dtype=jnp.float32), "dw_b": jnp.zeros((E,)),
            "bn_gamma": jnp.ones((E,)), "bn_beta": jnp.zeros((E,)),
            "bn_mean": jnp.zeros((E,)), "bn_var": jnp.ones((E,)),
            "pw2_w": _w(lk[7], (E, E)), "pw2_b": jnp.zeros((E,)),
            "ffn2_ln_g": jnp.ones((1, E)), "ffn2_ln_b": jnp.zeros((1, E)),
            "ffn2_w1": _w(lk[8], (E, L)), "ffn2_b1": jnp.zeros((L,)),
            "ffn2_w2": _w(lk[9], (L, E)), "ffn2_b2": jnp.zeros((E,)),
            "final_ln_g": jnp.ones((1, E)), "final_ln_b": jnp.zeros((1, E)),
        }
        blocks.append(blk)
    params["blocks"] = blocks
    return params


# ----------------------------------------------------------------------------

if __name__ == "__main__":
    key = jax.random.PRNGKey(0)
    B, T, input_dim = 2, 32, 16
    encoder_dim, linear_dim = 32, 64
    num_heads, kernel_size, num_layers = 4, 3, 2

    k_in, k_p = jax.random.split(key)
    inputs = jax.random.normal(k_in, (B, T, input_dim), dtype=jnp.float32)
    input_lengths = jnp.array([32, 24], dtype=jnp.int32)

    params = init_params(k_p, input_dim, kernel_size, encoder_dim, linear_dim,
                         num_heads, num_layers)

    fwd = jax.jit(conformer_encoder_forward, static_argnums=(3, 4))
    outputs, output_lengths = fwd(inputs, input_lengths, params,
                                  num_heads, kernel_size)

    jax.block_until_ready(outputs)
    jax.block_until_ready(output_lengths)
    assert outputs.shape == (B, 7, encoder_dim)
    assert bool(jnp.all(jnp.isfinite(outputs)))
    print("KERNEL_OK")
</pallas_src>

<mosaic_0001>
module attributes {stable_mosaic.version = 11 : i64} {
  func.func @_mm1_kernel(%arg0: i32, %arg1: memref<210x9xbf16, #tpu.memory_space<vmem>>, %arg2: memref<9x32xbf16, #tpu.memory_space<vmem>>, %arg3: memref<1x32xf32, #tpu.memory_space<vmem>>, %arg4: memref<210x32xbf16, #tpu.memory_space<vmem>>) attributes {dimension_semantics = [#tpu.dimension_semantics<parallel>], iteration_bounds = array<i64: 1>, scalar_prefetch = 0 : i64, scratch_operands = 0 : i64, tpu.core_type = #tpu.core_type<tc>, window_params = [{transform_indices = @transform_0, window_bounds = array<i64: 210, 9>}, {pipeline_mode = #tpu.pipeline_mode<synchronous>, transform_indices = @transform_1, window_bounds = array<i64: 9, 32>}, {pipeline_mode = #tpu.pipeline_mode<synchronous>, transform_indices = @transform_2, window_bounds = array<i64: 1, 32>}, {transform_indices = @transform_3, window_bounds = array<i64: 210, 32>}]} {
    %c0 = arith.constant 0 : index
    %c0_0 = arith.constant 0 : index
    %0 = vector.load %arg1[%c0, %c0_0] : memref<210x9xbf16, #tpu.memory_space<vmem>>, vector<210x9xbf16>
    %c0_1 = arith.constant 0 : index
    %c0_2 = arith.constant 0 : index
    %1 = vector.load %arg2[%c0_1, %c0_2] : memref<9x32xbf16, #tpu.memory_space<vmem>>, vector<9x32xbf16>
    %cst = arith.constant dense<0.000000e+00> : vector<210x32xf32>
    %2 = tpu.matmul %0, %1, %cst {dimension_numbers = #tpu.dot_dimension_numbers<[1], [0], [0], [1], [0, 0, 1, 1], [], []>} : vector<210x9xbf16>, vector<9x32xbf16>, vector<210x32xf32> -> vector<210x32xf32>
    %c0_3 = arith.constant 0 : index
    %c0_4 = arith.constant 0 : index
    %3 = vector.load %arg3[%c0_3, %c0_4] : memref<1x32xf32, #tpu.memory_space<vmem>>, vector<1x32xf32>
    %4 = vector.broadcast %3 : vector<1x32xf32> to vector<210x32xf32>
    %5 = arith.addf %2, %4 : vector<210x32xf32>
    %cst_5 = arith.constant 0.000000e+00 : f32
    %6 = vector.broadcast %cst_5 : f32 to vector<210x32xf32>
    %7 = arith.maximumf %5, %6 : vector<210x32xf32>
    %8 = arith.truncf %7 : vector<210x32xf32> to vector<210x32xbf16>
    %c0_6 = arith.constant 0 : index
    %c0_7 = arith.constant 0 : index
    %9 = vector.load %arg4[%c0_6, %c0_7] : memref<210x32xbf16, #tpu.memory_space<vmem>>, vector<210x32xbf16>
    tpu.vector_store %arg4[%c0_6, %c0_7], %8 {strides = array<i32>} : memref<210x32xbf16, #tpu.memory_space<vmem>>, vector<210x32xbf16>,
    return
  }
  func.func @transform_0(%arg0: i32) -> (i32, i32) {
    %c0_i32 = arith.constant 0 : i32
    %c0_i32_0 = arith.constant 0 : i32
    return %arg0, %c0_i32 : i32, i32
  }
  func.func @transform_1(%arg0: i32) -> (i32, i32) {
    %c0_i32 = arith.constant 0 : i32
    %c0_i32_0 = arith.constant 0 : i32
    %c0_i32_1 = arith.constant 0 : i32
    return %c0_i32, %c0_i32_0 : i32, i32
  }
  func.func @transform_2(%arg0: i32) -> (i32, i32) {
    %c0_i32 = arith.constant 0 : i32
    %c0_i32_0 = arith.constant 0 : i32
    %c0_i32_1 = arith.constant 0 : i32
    return %c0_i32, %c0_i32_0 : i32, i32
  }
  func.func @transform_3(%arg0: i32) -> (i32, i32) {
    %c0_i32 = arith.constant 0 : i32
    %c0_i32_0 = arith.constant 0 : i32
    return %arg0, %c0_i32 : i32, i32
  }
}

module attributes {stable_mosaic.version = 11 : i64} {
  func.func @_mm1_kernel(%arg0: i32, %arg1: memref<42x288xbf16, #tpu.memory_space<vmem>>, %arg2: memref<288x32xbf16, #tpu.memory_space<vmem>>, %arg3: memref<1x32xf32, #tpu.memory_space<vmem>>, %arg4: memref<42x32xbf16, #tpu.memory_space<vmem>>) attributes {dimension_semantics = [#tpu.dimension_semantics<parallel>], iteration_bounds = array<i64: 1>, scalar_prefetch = 0 : i64, scratch_operands = 0 : i64, tpu.core_type = #tpu.core_type<tc>, window_params = [{transform_indices = @transform_0, window_bounds = array<i64: 42, 288>}, {pipeline_mode = #tpu.pipeline_mode<synchronous>, transform_indices = @transform_1, window_bounds = array<i64: 288, 32>}, {pipeline_mode = #tpu.pipeline_mode<synchronous>, transform_indices = @transform_2, window_bounds = array<i64: 1, 32>}, {transform_indices = @transform_3, window_bounds = array<i64: 42, 32>}]} {
    %c0 = arith.constant 0 : index
    %c0_0 = arith.constant 0 : index
    %0 = vector.load %arg1[%c0, %c0_0] : memref<42x288xbf16, #tpu.memory_space<vmem>>, vector<42x288xbf16>
    %c0_1 = arith.constant 0 : index
    %c0_2 = arith.constant 0 : index
    %1 = vector.load %arg2[%c0_1, %c0_2] : memref<288x32xbf16, #tpu.memory_space<vmem>>, vector<288x32xbf16>
    %cst = arith.constant dense<0.000000e+00> : vector<42x32xf32>
    %2 = tpu.matmul %0, %1, %cst {dimension_numbers = #tpu.dot_dimension_numbers<[1], [0], [0], [1], [0, 0, 1, 1], [], []>} : vector<42x288xbf16>, vector<288x32xbf16>, vector<42x32xf32> -> vector<42x32xf32>
    %c0_3 = arith.constant 0 : index
    %c0_4 = arith.constant 0 : index
    %3 = vector.load %arg3[%c0_3, %c0_4] : memref<1x32xf32, #tpu.memory_space<vmem>>, vector<1x32xf32>
    %4 = vector.broadcast %3 : vector<1x32xf32> to vector<42x32xf32>
    %5 = arith.addf %2, %4 : vector<42x32xf32>
    %cst_5 = arith.constant 0.000000e+00 : f32
    %6 = vector.broadcast %cst_5 : f32 to vector<42x32xf32>
    %7 = arith.maximumf %5, %6 : vector<42x32xf32>
    %8 = arith.truncf %7 : vector<42x32xf32> to vector<42x32xbf16>
    %c0_6 = arith.constant 0 : index
    %c0_7 = arith.constant 0 : index
    %9 = vector.load %arg4[%c0_6, %c0_7] : memref<42x32xbf16, #tpu.memory_space<vmem>>, vector<42x32xbf16>
    tpu.vector_store %arg4[%c0_6, %c0_7], %8 {strides = array<i32>} : memref<42x32xbf16, #tpu.memory_space<vmem>>, vector<42x32xbf16>,
    return
  }
  func.func @transform_0(%arg0: i32) -> (i32, i32) {
    %c0_i32 = arith.constant 0 : i32
    %c0_i32_0 = arith.constant 0 : i32
    return %arg0, %c0_i32 : i32, i32
  }
  func.func @transform_1(%arg0: i32) -> (i32, i32) {
    %c0_i32 = arith.constant 0 : i32
    %c0_i32_0 = arith.constant 0 : i32
    %c0_i32_1 = arith.constant 0 : i32
    return %c0_i32, %c0_i32_0 : i32, i32
  }
  func.func @transform_2(%arg0: i32) -> (i32, i32) {
    %c0_i32 = arith.constant 0 : i32
    %c0_i32_0 = arith.constant 0 : i32
    %c0_i32_1 = arith.constant 0 : i32
    return %c0_i32, %c0_i32_0 : i32, i32
  }
  func.func @transform_3(%arg0: i32) -> (i32, i32) {
    %c0_i32 = arith.constant 0 : i32
    %c0_i32_0 = arith.constant 0 : i32
    return %arg0, %c0_i32 : i32, i32
  }
}

module attributes {stable_mosaic.version = 11 : i64} {
  func.func @_fc_pe_kernel(%arg0: i32, %arg1: i32, %arg2: memref<1x7x96xbf16, #tpu.memory_space<vmem>>, %arg3: memref<96x32xbf16, #tpu.memory_space<vmem>>, %arg4: memref<1x32xf32, #tpu.memory_space<vmem>>, %arg5: memref<7x32xf32, #tpu.memory_space<vmem>>, %arg6: memref<1x7x32xf32, #tpu.memory_space<vmem>>) attributes {dimension_semantics = [#tpu.dimension_semantics<parallel>, #tpu.dimension_semantics<parallel>], iteration_bounds = array<i64: 2, 1>, scalar_prefetch = 0 : i64, scratch_operands = 0 : i64, tpu.core_type = #tpu.core_type<tc>, window_params = [{transform_indices = @transform_0, window_bounds = array<i64: 1, 7, 96>}, {pipeline_mode = #tpu.pipeline_mode<synchronous>, transform_indices = @transform_1, window_bounds = array<i64: 96, 32>}, {pipeline_mode = #tpu.pipeline_mode<synchronous>, transform_indices = @transform_2, window_bounds = array<i64: 1, 32>}, {transform_indices = @transform_3, window_bounds = array<i64: 7, 32>}, {transform_indices = @transform_4, window_bounds = array<i64: 1, 7, 32>}]} {
    %c0 = arith.constant 0 : index
    %c0_0 = arith.constant 0 : index
    %c0_1 = arith.constant 0 : index
    %0 = vector.load %arg2[%c0, %c0_0, %c0_1] : memref<1x7x96xbf16, #tpu.memory_space<vmem>>, vector<1x7x96xbf16>
    %1 = vector.shape_cast %0 : vector<1x7x96xbf16> to vector<7x96xbf16>
    %c0_2 = arith.constant 0 : index
    %c0_3 = arith.constant 0 : index
    %2 = vector.load %arg3[%c0_2, %c0_3] : memref<96x32xbf16, #tpu.memory_space<vmem>>, vector<96x32xbf16>
    %cst = arith.constant dense<0.000000e+00> : vector<7x32xf32>
    %3 = tpu.matmul %1, %2, %cst {dimension_numbers = #tpu.dot_dimension_numbers<[1], [0], [0], [1], [0, 0, 1, 1], [], []>} : vector<7x96xbf16>, vector<96x32xbf16>, vector<7x32xf32> -> vector<7x32xf32>
    %c0_4 = arith.constant 0 : index
    %c0_5 = arith.constant 0 : index
    %4 = vector.load %arg4[%c0_4, %c0_5] : memref<1x32xf32, #tpu.memory_space<vmem>>, vector<1x32xf32>
    %5 = vector.broadcast %4 : vector<1x32xf32> to vector<7x32xf32>
    %6 = arith.addf %3, %5 : vector<7x32xf32>
    %c0_6 = arith.constant 0 : index
    %c0_7 = arith.constant 0 : index
    %7 = vector.load %arg5[%c0_6, %c0_7] : memref<7x32xf32, #tpu.memory_space<vmem>>, vector<7x32xf32>
    %8 = arith.addf %6, %7 : vector<7x32xf32>
    %c0_8 = arith.constant 0 : index
    %c0_9 = arith.constant 0 : index
    %c0_10 = arith.constant 0 : index
    %9 = vector.load %arg6[%c0_8, %c0_9, %c0_10] : memref<1x7x32xf32, #tpu.memory_space<vmem>>, vector<1x7x32xf32>
    %10 = vector.shape_cast %9 : vector<1x7x32xf32> to vector<7x32xf32>
    %11 = vector.shape_cast %8 : vector<7x32xf32> to vector<1x7x32xf32>
    tpu.vector_store %arg6[%c0_8, %c0_9, %c0_10], %11 {strides = array<i32>} : memref<1x7x32xf32, #tpu.memory_space<vmem>>, vector<1x7x32xf32>,
    return
  }
  func.func @transform_0(%arg0: i32, %arg1: i32) -> (i32, i32, i32) {
    %c0_i32 = arith.constant 0 : i32
    %c0_i32_0 = arith.constant 0 : i32
    return %arg0, %arg1, %c0_i32 : i32, i32, i32
  }
  func.func @transform_1(%arg0: i32, %arg1: i32) -> (i32, i32) {
    %c0_i32 = arith.constant 0 : i32
    %c0_i32_0 = arith.constant 0 : i32
    %c0_i32_1 = arith.constant 0 : i32
    return %c0_i32, %c0_i32_0 : i32, i32
  }
  func.func @transform_2(%arg0: i32, %arg1: i32) -> (i32, i32) {
    %c0_i32 = arith.constant 0 : i32
    %c0_i32_0 = arith.constant 0 : i32
    %c0_i32_1 = arith.constant 0 : i32
    return %c0_i32, %c0_i32_0 : i32, i32
  }
  func.func @transform_3(%arg0: i32, %arg1: i32) -> (i32, i32) {
    %c0_i32 = arith.constant 0 : i32
    %c0_i32_0 = arith.constant 0 : i32
    return %arg1, %c0_i32 : i32, i32
  }
  func.func @transform_4(%arg0: i32, %arg1: i32) -> (i32, i32, i32) {
    %c0_i32 = arith.constant 0 : i32
    %c0_i32_0 = arith.constant 0 : i32
    return %arg0, %arg1, %c0_i32 : i32, i32, i32
  }
}

module attributes {stable_mosaic.version = 11 : i64} {
  func.func @_ln_mm_kernel(%arg0: i32, %arg1: i32, %arg2: memref<14x32xf32, #tpu.memory_space<vmem>>, %arg3: memref<1x32xf32, #tpu.memory_space<vmem>>, %arg4: memref<1x32xf32, #tpu.memory_space<vmem>>, %arg5: memref<32x64xbf16, #tpu.memory_space<vmem>>, %arg6: memref<1x64xf32, #tpu.memory_space<vmem>>, %arg7: memref<14x64xbf16, #tpu.memory_space<vmem>>) attributes {dimension_semantics = [#tpu.dimension_semantics<parallel>, #tpu.dimension_semantics<parallel>], iteration_bounds = array<i64: 1, 1>, scalar_prefetch = 0 : i64, scratch_operands = 0 : i64, tpu.core_type = #tpu.core_type<tc>, window_params = [{transform_indices = @transform_0, window_bounds = array<i64: 14, 32>}, {pipeline_mode = #tpu.pipeline_mode<synchronous>, transform_indices = @transform_1, window_bounds = array<i64: 1, 32>}, {pipeline_mode = #tpu.pipeline_mode<synchronous>, transform_indices = @transform_2, window_bounds = array<i64: 1, 32>}, {transform_indices = @transform_3, window_bounds = array<i64: 32, 64>}, {transform_indices = @transform_4, window_bounds = array<i64: 1, 64>}, {transform_indices = @transform_5, window_bounds = array<i64: 14, 64>}]} {
    %c0 = arith.constant 0 : index
    %c0_0 = arith.constant 0 : index
    %0 = vector.load %arg2[%c0, %c0_0] : memref<14x32xf32, #tpu.memory_space<vmem>>, vector<14x32xf32>
    %cst = arith.constant dense<0.000000e+00> : vector<14xf32>
    %1 = vector.multi_reduction <add>, %0, %cst [1] : vector<14x32xf32> to vector<14xf32>
    %2 = vector.shape_cast %1 : vector<14xf32> to vector<14x1xf32>
    %cst_1 = arith.constant 3.200000e+01 : f32
    %3 = vector.broadcast %cst_1 : f32 to vector<14x1xf32>
    %4 = arith.divf %2, %3 : vector<14x1xf32>
    %5 = vector.broadcast %4 : vector<14x1xf32> to vector<14x32xf32>
    %6 = arith.subf %0, %5 : vector<14x32xf32>
    %7 = arith.mulf %6, %6 : vector<14x32xf32>
    %cst_2 = arith.constant dense<0.000000e+00> : vector<14xf32>
    %8 = vector.multi_reduction <add>, %7, %cst_2 [1] : vector<14x32xf32> to vector<14xf32>
    %9 = vector.shape_cast %8 : vector<14xf32> to vector<14x1xf32>
    %cst_3 = arith.constant 3.200000e+01 : f32
    %10 = vector.broadcast %cst_3 : f32 to vector<14x1xf32>
    %11 = arith.divf %9, %10 : vector<14x1xf32>
    %12 = vector.broadcast %4 : vector<14x1xf32> to vector<14x32xf32>
    %13 = arith.subf %0, %12 : vector<14x32xf32>
    %cst_4 = arith.constant 9.99999974E-6 : f32
    %14 = vector.broadcast %cst_4 : f32 to vector<14x1xf32>
    %15 = arith.addf %11, %14 : vector<14x1xf32>
    %16 = math.rsqrt %15 : vector<14x1xf32>
    %17 = vector.broadcast %16 : vector<14x1xf32> to vector<14x32xf32>
    %18 = arith.mulf %13, %17 : vector<14x32xf32>
    %c0_5 = arith.constant 0 : index
    %c0_6 = arith.constant 0 : index
    %19 = vector.load %arg3[%c0_5, %c0_6] : memref<1x32xf32, #tpu.memory_space<vmem>>, vector<1x32xf32>
    %20 = vector.broadcast %19 : vector<1x32xf32> to vector<14x32xf32>
    %21 = arith.mulf %18, %20 : vector<14x32xf32>
    %c0_7 = arith.constant 0 : index
    %c0_8 = arith.constant 0 : index
    %22 = vector.load %arg4[%c0_7, %c0_8] : memref<1x32xf32, #tpu.memory_space<vmem>>, vector<1x32xf32>
    %23 = vector.broadcast %22 : vector<1x32xf32> to vector<14x32xf32>
    %24 = arith.addf %21, %23 : vector<14x32xf32>
    %25 = arith.truncf %24 : vector<14x32xf32> to vector<14x32xbf16>
    %c0_9 = arith.constant 0 : index
    %c0_10 = arith.constant 0 : index
    %26 = vector.load %arg5[%c0_9, %c0_10] : memref<32x64xbf16, #tpu.memory_space<vmem>>, vector<32x64xbf16>
    %cst_11 = arith.constant dense<0.000000e+00> : vector<14x64xf32>
    %27 = tpu.matmul %25, %26, %cst_11 {dimension_numbers = #tpu.dot_dimension_numbers<[1], [0], [0], [1], [0, 0, 1, 1], [], []>} : vector<14x32xbf16>, vector<32x64xbf16>, vector<14x64xf32> -> vector<14x64xf32>
    %c0_12 = arith.constant 0 : index
    %c0_13 = arith.constant 0 : index
    %28 = vector.load %arg6[%c0_12, %c0_13] : memref<1x64xf32, #tpu.memory_space<vmem>>, vector<1x64xf32>
    %29 = vector.broadcast %28 : vector<1x64xf32> to vector<14x64xf32>
    %30 = arith.addf %27, %29 : vector<14x64xf32>
    %cst_14 = arith.constant 0.000000e+00 : f32
    %31 = vector.broadcast %cst_14 : f32 to vector<14x64xf32>
    %32 = arith.subf %31, %30 : vector<14x64xf32>
    %33 = math.exp %32 : vector<14x64xf32>
    %cst_15 = arith.constant 1.000000e+00 : f32
    %34 = vector.broadcast %cst_15 : f32 to vector<14x64xf32>
    %35 = arith.addf %34, %33 : vector<14x64xf32>
    %36 = tpu.reciprocal %35 {approx = true} : vector<14x64xf32> -> vector<14x64xf32>
    %37 = arith.mulf %30, %36 : vector<14x64xf32>
    %38 = arith.truncf %37 : vector<14x64xf32> to vector<14x64xbf16>
    %c0_16 = arith.constant 0 : index
    %c0_17 = arith.constant 0 : index
    %39 = vector.load %arg7[%c0_16, %c0_17] : memref<14x64xbf16, #tpu.memory_space<vmem>>, vector<14x64xbf16>
    tpu.vector_store %arg7[%c0_16, %c0_17], %38 {strides = array<i32>} : memref<14x64xbf16, #tpu.memory_space<vmem>>, vector<14x64xbf16>,
    return
  }
  func.func @transform_0(%arg0: i32, %arg1: i32) -> (i32, i32) {
    %c0_i32 = arith.constant 0 : i32
    %c0_i32_0 = arith.constant 0 : i32
    return %arg0, %c0_i32 : i32, i32
  }
  func.func @transform_1(%arg0: i32, %arg1: i32) -> (i32, i32) {
    %c0_i32 = arith.constant 0 : i32
    %c0_i32_0 = arith.constant 0 : i32
    %c0_i32_1 = arith.constant 0 : i32
    return %c0_i32, %c0_i32_0 : i32, i32
  }
  func.func @transform_2(%arg0: i32, %arg1: i32) -> (i32, i32) {
    %c0_i32 = arith.constant 0 : i32
    %c0_i32_0 = arith.constant 0 : i32
    %c0_i32_1 = arith.constant 0 : i32
    return %c0_i32, %c0_i32_0 : i32, i32
  }
  func.func @transform_3(%arg0: i32, %arg1: i32) -> (i32, i32) {
    %c0_i32 = arith.constant 0 : i32
    %c0_i32_0 = arith.constant 0 : i32
    return %c0_i32, %arg1 : i32, i32
  }
  func.func @transform_4(%arg0: i32, %arg1: i32) -> (i32, i32) {
    %c0_i32 = arith.constant 0 : i32
    %c0_i32_0 = arith.constant 0 : i32
    return %c0_i32, %arg1 : i32, i32
  }
  func.func @transform_5(%arg0: i32, %arg1: i32) -> (i32, i32) {
    %c0_i32 = arith.constant 0 : i32
    return %arg0, %arg1 : i32, i32
  }
}

module attributes {stable_mosaic.version = 11 : i64} {
  func.func @_mm1_res_kernel(%arg0: i32, %arg1: memref<14x64xbf16, #tpu.memory_space<vmem>>, %arg2: memref<64x32xbf16, #tpu.memory_space<vmem>>, %arg3: memref<1x32xf32, #tpu.memory_space<vmem>>, %arg4: memref<14x32xf32, #tpu.memory_space<vmem>>, %arg5: memref<14x32xf32, #tpu.memory_space<vmem>>) attributes {dimension_semantics = [#tpu.dimension_semantics<parallel>], iteration_bounds = array<i64: 1>, scalar_prefetch = 0 : i64, scratch_operands = 0 : i64, tpu.core_type = #tpu.core_type<tc>, window_params = [{transform_indices = @transform_0, window_bounds = array<i64: 14, 64>}, {pipeline_mode = #tpu.pipeline_mode<synchronous>, transform_indices = @transform_1, window_bounds = array<i64: 64, 32>}, {pipeline_mode = #tpu.pipeline_mode<synchronous>, transform_indices = @transform_2, window_bounds = array<i64: 1, 32>}, {transform_indices = @transform_3, window_bounds = array<i64: 14, 32>}, {transform_indices = @transform_4, window_bounds = array<i64: 14, 32>}]} {
    %c0 = arith.constant 0 : index
    %c0_0 = arith.constant 0 : index
    %0 = vector.load %arg1[%c0, %c0_0] : memref<14x64xbf16, #tpu.memory_space<vmem>>, vector<14x64xbf16>
    %c0_1 = arith.constant 0 : index
    %c0_2 = arith.constant 0 : index
    %1 = vector.load %arg2[%c0_1, %c0_2] : memref<64x32xbf16, #tpu.memory_space<vmem>>, vector<64x32xbf16>
    %cst = arith.constant dense<0.000000e+00> : vector<14x32xf32>
    %2 = tpu.matmul %0, %1, %cst {dimension_numbers = #tpu.dot_dimension_numbers<[1], [0], [0], [1], [0, 0, 1, 1], [], []>} : vector<14x64xbf16>, vector<64x32xbf16>, vector<14x32xf32> -> vector<14x32xf32>
    %c0_3 = arith.constant 0 : index
    %c0_4 = arith.constant 0 : index
    %3 = vector.load %arg3[%c0_3, %c0_4] : memref<1x32xf32, #tpu.memory_space<vmem>>, vector<1x32xf32>
    %4 = vector.broadcast %3 : vector<1x32xf32> to vector<14x32xf32>
    %5 = arith.addf %2, %4 : vector<14x32xf32>
    %c0_5 = arith.constant 0 : index
    %c0_6 = arith.constant 0 : index
    %6 = vector.load %arg4[%c0_5, %c0_6] : memref<14x32xf32, #tpu.memory_space<vmem>>, vector<14x32xf32>
    %cst_7 = arith.constant 5.000000e-01 : f32
    %7 = vector.broadcast %cst_7 : f32 to vector<14x32xf32>
    %8 = arith.mulf %7, %5 : vector<14x32xf32>
    %9 = arith.addf %6, %8 : vector<14x32xf32>
    %c0_8 = arith.constant 0 : index
    %c0_9 = arith.constant 0 : index
    %10 = vector.load %arg5[%c0_8, %c0_9] : memref<14x32xf32, #tpu.memory_space<vmem>>, vector<14x32xf32>
    tpu.vector_store %arg5[%c0_8, %c0_9], %9 {strides = array<i32>} : memref<14x32xf32, #tpu.memory_space<vmem>>, vector<14x32xf32>,
    return
  }
  func.func @transform_0(%arg0: i32) -> (i32, i32) {
    %c0_i32 = arith.constant 0 : i32
    %c0_i32_0 = arith.constant 0 : i32
    return %arg0, %c0_i32 : i32, i32
  }
  func.func @transform_1(%arg0: i32) -> (i32, i32) {
    %c0_i32 = arith.constant 0 : i32
    %c0_i32_0 = arith.constant 0 : i32
    %c0_i32_1 = arith.constant 0 : i32
    return %c0_i32, %c0_i32_0 : i32, i32
  }
  func.func @transform_2(%arg0: i32) -> (i32, i32) {
    %c0_i32 = arith.constant 0 : i32
    %c0_i32_0 = arith.constant 0 : i32
    %c0_i32_1 = arith.constant 0 : i32
    return %c0_i32, %c0_i32_0 : i32, i32
  }
  func.func @transform_3(%arg0: i32) -> (i32, i32) {
    %c0_i32 = arith.constant 0 : i32
    %c0_i32_0 = arith.constant 0 : i32
    return %arg0, %c0_i32 : i32, i32
  }
  func.func @transform_4(%arg0: i32) -> (i32, i32) {
    %c0_i32 = arith.constant 0 : i32
    %c0_i32_0 = arith.constant 0 : i32
    return %arg0, %c0_i32 : i32, i32
  }
}

module attributes {stable_mosaic.version = 11 : i64} {
  func.func @_ln_mm_kernel(%arg0: i32, %arg1: i32, %arg2: memref<14x32xf32, #tpu.memory_space<vmem>>, %arg3: memref<1x32xf32, #tpu.memory_space<vmem>>, %arg4: memref<1x32xf32, #tpu.memory_space<vmem>>, %arg5: memref<32x96xbf16, #tpu.memory_space<vmem>>, %arg6: memref<1x96xf32, #tpu.memory_space<vmem>>, %arg7: memref<14x96xbf16, #tpu.memory_space<vmem>>) attributes {dimension_semantics = [#tpu.dimension_semantics<parallel>, #tpu.dimension_semantics<parallel>], iteration_bounds = array<i64: 1, 1>, scalar_prefetch = 0 : i64, scratch_operands = 0 : i64, tpu.core_type = #tpu.core_type<tc>, window_params = [{transform_indices = @transform_0, window_bounds = array<i64: 14, 32>}, {pipeline_mode = #tpu.pipeline_mode<synchronous>, transform_indices = @transform_1, window_bounds = array<i64: 1, 32>}, {pipeline_mode = #tpu.pipeline_mode<synchronous>, transform_indices = @transform_2, window_bounds = array<i64: 1, 32>}, {transform_indices = @transform_3, window_bounds = array<i64: 32, 96>}, {transform_indices = @transform_4, window_bounds = array<i64: 1, 96>}, {transform_indices = @transform_5, window_bounds = array<i64: 14, 96>}]} {
    %c0 = arith.constant 0 : index
    %c0_0 = arith.constant 0 : index
    %0 = vector.load %arg2[%c0, %c0_0] : memref<14x32xf32, #tpu.memory_space<vmem>>, vector<14x32xf32>
    %cst = arith.constant dense<0.000000e+00> : vector<14xf32>
    %1 = vector.multi_reduction <add>, %0, %cst [1] : vector<14x32xf32> to vector<14xf32>
    %2 = vector.shape_cast %1 : vector<14xf32> to vector<14x1xf32>
    %cst_1 = arith.constant 3.200000e+01 : f32
    %3 = vector.broadcast %cst_1 : f32 to vector<14x1xf32>
    %4 = arith.divf %2, %3 : vector<14x1xf32>
    %5 = vector.broadcast %4 : vector<14x1xf32> to vector<14x32xf32>
    %6 = arith.subf %0, %5 : vector<14x32xf32>
    %7 = arith.mulf %6, %6 : vector<14x32xf32>
    %cst_2 = arith.constant dense<0.000000e+00> : vector<14xf32>
    %8 = vector.multi_reduction <add>, %7, %cst_2 [1] : vector<14x32xf32> to vector<14xf32>
    %9 = vector.shape_cast %8 : vector<14xf32> to vector<14x1xf32>
    %cst_3 = arith.constant 3.200000e+01 : f32
    %10 = vector.broadcast %cst_3 : f32 to vector<14x1xf32>
    %11 = arith.divf %9, %10 : vector<14x1xf32>
    %12 = vector.broadcast %4 : vector<14x1xf32> to vector<14x32xf32>
    %13 = arith.subf %0, %12 : vector<14x32xf32>
    %cst_4 = arith.constant 9.99999974E-6 : f32
    %14 = vector.broadcast %cst_4 : f32 to vector<14x1xf32>
    %15 = arith.addf %11, %14 : vector<14x1xf32>
    %16 = math.rsqrt %15 : vector<14x1xf32>
    %17 = vector.broadcast %16 : vector<14x1xf32> to vector<14x32xf32>
    %18 = arith.mulf %13, %17 : vector<14x32xf32>
    %c0_5 = arith.constant 0 : index
    %c0_6 = arith.constant 0 : index
    %19 = vector.load %arg3[%c0_5, %c0_6] : memref<1x32xf32, #tpu.memory_space<vmem>>, vector<1x32xf32>
    %20 = vector.broadcast %19 : vector<1x32xf32> to vector<14x32xf32>
    %21 = arith.mulf %18, %20 : vector<14x32xf32>
    %c0_7 = arith.constant 0 : index
    %c0_8 = arith.constant 0 : index
    %22 = vector.load %arg4[%c0_7, %c0_8] : memref<1x32xf32, #tpu.memory_space<vmem>>, vector<1x32xf32>
    %23 = vector.broadcast %22 : vector<1x32xf32> to vector<14x32xf32>
    %24 = arith.addf %21, %23 : vector<14x32xf32>
    %25 = arith.truncf %24 : vector<14x32xf32> to vector<14x32xbf16>
    %c0_9 = arith.constant 0 : index
    %c0_10 = arith.constant 0 : index
    %26 = vector.load %arg5[%c0_9, %c0_10] : memref<32x96xbf16, #tpu.memory_space<vmem>>, vector<32x96xbf16>
    %cst_11 = arith.constant dense<0.000000e+00> : vector<14x96xf32>
    %27 = tpu.matmul %25, %26, %cst_11 {dimension_numbers = #tpu.dot_dimension_numbers<[1], [0], [0], [1], [0, 0, 1, 1], [], []>} : vector<14x32xbf16>, vector<32x96xbf16>, vector<14x96xf32> -> vector<14x96xf32>
    %c0_12 = arith.constant 0 : index
    %c0_13 = arith.constant 0 : index
    %28 = vector.load %arg6[%c0_12, %c0_13] : memref<1x96xf32, #tpu.memory_space<vmem>>, vector<1x96xf32>
    %29 = vector.broadcast %28 : vector<1x96xf32> to vector<14x96xf32>
    %30 = arith.addf %27, %29 : vector<14x96xf32>
    %31 = arith.truncf %30 : vector<14x96xf32> to vector<14x96xbf16>
    %c0_14 = arith.constant 0 : index
    %c0_15 = arith.constant 0 : index
    %32 = vector.load %arg7[%c0_14, %c0_15] : memref<14x96xbf16, #tpu.memory_space<vmem>>, vector<14x96xbf16>
    tpu.vector_store %arg7[%c0_14, %c0_15], %31 {strides = array<i32>} : memref<14x96xbf16, #tpu.memory_space<vmem>>, vector<14x96xbf16>,
    return
  }
  func.func @transform_0(%arg0: i32, %arg1: i32) -> (i32, i32) {
    %c0_i32 = arith.constant 0 : i32
    %c0_i32_0 = arith.constant 0 : i32
    return %arg0, %c0_i32 : i32, i32
  }
  func.func @transform_1(%arg0: i32, %arg1: i32) -> (i32, i32) {
    %c0_i32 = arith.constant 0 : i32
    %c0_i32_0 = arith.constant 0 : i32
    %c0_i32_1 = arith.constant 0 : i32
    return %c0_i32, %c0_i32_0 : i32, i32
  }
  func.func @transform_2(%arg0: i32, %arg1: i32) -> (i32, i32) {
    %c0_i32 = arith.constant 0 : i32
    %c0_i32_0 = arith.constant 0 : i32
    %c0_i32_1 = arith.constant 0 : i32
    return %c0_i32, %c0_i32_0 : i32, i32
  }
  func.func @transform_3(%arg0: i32, %arg1: i32) -> (i32, i32) {
    %c0_i32 = arith.constant 0 : i32
    %c0_i32_0 = arith.constant 0 : i32
    return %c0_i32, %arg1 : i32, i32
  }
  func.func @transform_4(%arg0: i32, %arg1: i32) -> (i32, i32) {
    %c0_i32 = arith.constant 0 : i32
    %c0_i32_0 = arith.constant 0 : i32
    return %c0_i32, %arg1 : i32, i32
  }
  func.func @transform_5(%arg0: i32, %arg1: i32) -> (i32, i32) {
    %c0_i32 = arith.constant 0 : i32
    return %arg0, %arg1 : i32, i32
  }
}

module attributes {stable_mosaic.version = 11 : i64} {
  func.func @_attention_kernel(%arg0: i32, %arg1: memref<2xi32, #tpu.memory_space<smem>>, %arg2: memref<1x7x96xbf16, #tpu.memory_space<vmem>>, %arg3: memref<1x7x32xbf16, #tpu.memory_space<vmem>>, %arg4: memref<7x32xf32, #tpu.memory_space<vmem>>) attributes {dimension_semantics = [#tpu.dimension_semantics<parallel>], iteration_bounds = array<i64: 2>, scalar_prefetch = 1 : i64, scratch_operands = 1 : i64, tpu.core_type = #tpu.core_type<tc>, window_params = [{transform_indices = @transform_0, window_bounds = array<i64: 1, 7, 96>}, {transform_indices = @transform_1, window_bounds = array<i64: 1, 7, 32>}]} {
    %0 = arith.index_cast %arg0 : i32 to index
    %1 = memref.load %arg1[%0] : memref<2xi32, #tpu.memory_space<smem>>
    %c0 = arith.constant 0 : index
    %c0_0 = arith.constant 0 : index
    %c0_1 = arith.constant 0 : index
    %2 = vector.load %arg2[%c0, %c0_0, %c0_1] : memref<1x7x96xbf16, #tpu.memory_space<vmem>>, vector<1x7x96xbf16>
    %3 = vector.shape_cast %2 : vector<1x7x96xbf16> to vector<7x96xbf16>
    %4 = tpu.iota {dimensions = array<i32: 1>} : vector<1x7xi32>
    %5 = vector.broadcast %1 : i32 to vector<1x7xi32>
    %6 = arith.cmpi slt, %4, %5 : vector<1x7xi32>
    %7 = vector.extract_strided_slice %3 {offsets = [0, 0], sizes = [7, 8], strides = [1, 1]} : vector<7x96xbf16> to vector<7x8xbf16>
    %8 = vector.extract_strided_slice %3 {offsets = [0, 32], sizes = [7, 8], strides = [1, 1]} : vector<7x96xbf16> to vector<7x8xbf16>
    %9 = vector.extract_strided_slice %3 {offsets = [0, 64], sizes = [7, 8], strides = [1, 1]} : vector<7x96xbf16> to vector<7x8xbf16>
    %cst = arith.constant dense<0.000000e+00> : vector<7x7xf32>
    %10 = tpu.matmul %7, %8, %cst {dimension_numbers = #tpu.dot_dimension_numbers<[1], [1], [0], [0], [0, 0, 1, 0], [], []>} : vector<7x8xbf16>, vector<7x8xbf16>, vector<7x7xf32> -> vector<7x7xf32>
    %cst_2 = arith.constant -1.000000e+09 : f32
    %11 = vector.shape_cast %6 : vector<1x7xi1> to vector<1x7xi1>
    %12 = vector.broadcast %11 : vector<1x7xi1> to vector<7x7xi1>
    %13 = vector.broadcast %cst_2 : f32 to vector<7x7xf32>
    %14 = arith.select %12, %10, %13 : vector<7x7xi1>, vector<7x7xf32>
    %cst_3 = arith.constant dense<0xFF800000> : vector<7xf32>
    %15 = vector.multi_reduction <maximumf>, %14, %cst_3 [1] : vector<7x7xf32> to vector<7xf32>
    %16 = vector.shape_cast %15 : vector<7xf32> to vector<7x1xf32>
    %17 = vector.broadcast %16 : vector<7x1xf32> to vector<7x7xf32>
    %18 = arith.subf %14, %17 : vector<7x7xf32>
    %19 = math.exp %18 : vector<7x7xf32>
    %cst_4 = arith.constant dense<0.000000e+00> : vector<7xf32>
    %20 = vector.multi_reduction <add>, %19, %cst_4 [1] : vector<7x7xf32> to vector<7xf32>
    %21 = vector.shape_cast %20 : vector<7xf32> to vector<7x1xf32>
    %22 = tpu.reciprocal %21 {approx = true} : vector<7x1xf32> -> vector<7x1xf32>
    %23 = vector.broadcast %22 : vector<7x1xf32> to vector<7x7xf32>
    %24 = arith.mulf %19, %23 : vector<7x7xf32>
    %25 = arith.truncf %24 : vector<7x7xf32> to vector<7x7xbf16>
    %cst_5 = arith.constant dense<0.000000e+00> : vector<7x8xf32>
    %26 = tpu.matmul %25, %9, %cst_5 {dimension_numbers = #tpu.dot_dimension_numbers<[1], [0], [0], [1], [0, 0, 1, 1], [], []>} : vector<7x7xbf16>, vector<7x8xbf16>, vector<7x8xf32> -> vector<7x8xf32>
    %c0_6 = arith.constant 0 : index
    %c0_7 = arith.constant 0 : index
    %27 = vector.load %arg4[%c0_6, %c0_7] : memref<7x32xf32, #tpu.memory_space<vmem>>, vector<7x8xf32>
    tpu.vector_store %arg4[%c0_6, %c0_7], %26 {strides = array<i32>} : memref<7x32xf32, #tpu.memory_space<vmem>>, vector<7x8xf32>,
    %28 = vector.extract_strided_slice %3 {offsets = [0, 8], sizes = [7, 8], strides = [1, 1]} : vector<7x96xbf16> to vector<7x8xbf16>
    %29 = vector.extract_strided_slice %3 {offsets = [0, 40], sizes = [7, 8], strides = [1, 1]} : vector<7x96xbf16> to vector<7x8xbf16>
    %30 = vector.extract_strided_slice %3 {offsets = [0, 72], sizes = [7, 8], strides = [1, 1]} : vector<7x96xbf16> to vector<7x8xbf16>
    %cst_8 = arith.constant dense<0.000000e+00> : vector<7x7xf32>
    %31 = tpu.matmul %28, %29, %cst_8 {dimension_numbers = #tpu.dot_dimension_numbers<[1], [1], [0], [0], [0, 0, 1, 0], [], []>} : vector<7x8xbf16>, vector<7x8xbf16>, vector<7x7xf32> -> vector<7x7xf32>
    %cst_9 = arith.constant -1.000000e+09 : f32
    %32 = vector.shape_cast %6 : vector<1x7xi1> to vector<1x7xi1>
    %33 = vector.broadcast %32 : vector<1x7xi1> to vector<7x7xi1>
    %34 = vector.broadcast %cst_9 : f32 to vector<7x7xf32>
    %35 = arith.select %33, %31, %34 : vector<7x7xi1>, vector<7x7xf32>
    %cst_10 = arith.constant dense<0xFF800000> : vector<7xf32>
    %36 = vector.multi_reduction <maximumf>, %35, %cst_10 [1] : vector<7x7xf32> to vector<7xf32>
    %37 = vector.shape_cast %36 : vector<7xf32> to vector<7x1xf32>
    %38 = vector.broadcast %37 : vector<7x1xf32> to vector<7x7xf32>
    %39 = arith.subf %35, %38 : vector<7x7xf32>
    %40 = math.exp %39 : vector<7x7xf32>
    %cst_11 = arith.constant dense<0.000000e+00> : vector<7xf32>
    %41 = vector.multi_reduction <add>, %40, %cst_11 [1] : vector<7x7xf32> to vector<7xf32>
    %42 = vector.shape_cast %41 : vector<7xf32> to vector<7x1xf32>
    %43 = tpu.reciprocal %42 {approx = true} : vector<7x1xf32> -> vector<7x1xf32>
    %44 = vector.broadcast %43 : vector<7x1xf32> to vector<7x7xf32>
    %45 = arith.mulf %40, %44 : vector<7x7xf32>
    %46 = arith.truncf %45 : vector<7x7xf32> to vector<7x7xbf16>
    %cst_12 = arith.constant dense<0.000000e+00> : vector<7x8xf32>
    %47 = tpu.matmul %46, %30, %cst_12 {dimension_numbers = #tpu.dot_dimension_numbers<[1], [0], [0], [1], [0, 0, 1, 1], [], []>} : vector<7x7xbf16>, vector<7x8xbf16>, vector<7x8xf32> -> vector<7x8xf32>
    %c0_13 = arith.constant 0 : index
    %c8 = arith.constant 8 : index
    %48 = vector.load %arg4[%c0_13, %c8] : memref<7x32xf32, #tpu.memory_space<vmem>>, vector<7x8xf32>
    tpu.vector_store %arg4[%c0_13, %c8], %47 {strides = array<i32>} : memref<7x32xf32, #tpu.memory_space<vmem>>, vector<7x8xf32>,
    %49 = vector.extract_strided_slice %3 {offsets = [0, 16], sizes = [7, 8], strides = [1, 1]} : vector<7x96xbf16> to vector<7x8xbf16>
    %50 = vector.extract_strided_slice %3 {offsets = [0, 48], sizes = [7, 8], strides = [1, 1]} : vector<7x96xbf16> to vector<7x8xbf16>
    %51 = vector.extract_strided_slice %3 {offsets = [0, 80], sizes = [7, 8], strides = [1, 1]} : vector<7x96xbf16> to vector<7x8xbf16>
    %cst_14 = arith.constant dense<0.000000e+00> : vector<7x7xf32>
    %52 = tpu.matmul %49, %50, %cst_14 {dimension_numbers = #tpu.dot_dimension_numbers<[1], [1], [0], [0], [0, 0, 1, 0], [], []>} : vector<7x8xbf16>, vector<7x8xbf16>, vector<7x7xf32> -> vector<7x7xf32>
    %cst_15 = arith.constant -1.000000e+09 : f32
    %53 = vector.shape_cast %6 : vector<1x7xi1> to vector<1x7xi1>
    %54 = vector.broadcast %53 : vector<1x7xi1> to vector<7x7xi1>
    %55 = vector.broadcast %cst_15 : f32 to vector<7x7xf32>
    %56 = arith.select %54, %52, %55 : vector<7x7xi1>, vector<7x7xf32>
    %cst_16 = arith.constant dense<0xFF800000> : vector<7xf32>
    %57 = vector.multi_reduction <maximumf>, %56, %cst_16 [1] : vector<7x7xf32> to vector<7xf32>
    %58 = vector.shape_cast %57 : vector<7xf32> to vector<7x1xf32>
    %59 = vector.broadcast %58 : vector<7x1xf32> to vector<7x7xf32>
    %60 = arith.subf %56, %59 : vector<7x7xf32>
    %61 = math.exp %60 : vector<7x7xf32>
    %cst_17 = arith.constant dense<0.000000e+00> : vector<7xf32>
    %62 = vector.multi_reduction <add>, %61, %cst_17 [1] : vector<7x7xf32> to vector<7xf32>
    %63 = vector.shape_cast %62 : vector<7xf32> to vector<7x1xf32>
    %64 = tpu.reciprocal %63 {approx = true} : vector<7x1xf32> -> vector<7x1xf32>
    %65 = vector.broadcast %64 : vector<7x1xf32> to vector<7x7xf32>
    %66 = arith.mulf %61, %65 : vector<7x7xf32>
    %67 = arith.truncf %66 : vector<7x7xf32> to vector<7x7xbf16>
    %cst_18 = arith.constant dense<0.000000e+00> : vector<7x8xf32>
    %68 = tpu.matmul %67, %51, %cst_18 {dimension_numbers = #tpu.dot_dimension_numbers<[1], [0], [0], [1], [0, 0, 1, 1], [], []>} : vector<7x7xbf16>, vector<7x8xbf16>, vector<7x8xf32> -> vector<7x8xf32>
    %c0_19 = arith.constant 0 : index
    %c16 = arith.constant 16 : index
    %69 = vector.load %arg4[%c0_19, %c16] : memref<7x32xf32, #tpu.memory_space<vmem>>, vector<7x8xf32>
    tpu.vector_store %arg4[%c0_19, %c16], %68 {strides = array<i32>} : memref<7x32xf32, #tpu.memory_space<vmem>>, vector<7x8xf32>,
    %70 = vector.extract_strided_slice %3 {offsets = [0, 24], sizes = [7, 8], strides = [1, 1]} : vector<7x96xbf16> to vector<7x8xbf16>
    %71 = vector.extract_strided_slice %3 {offsets = [0, 56], sizes = [7, 8], strides = [1, 1]} : vector<7x96xbf16> to vector<7x8xbf16>
    %72 = vector.extract_strided_slice %3 {offsets = [0, 88], sizes = [7, 8], strides = [1, 1]} : vector<7x96xbf16> to vector<7x8xbf16>
    %cst_20 = arith.constant dense<0.000000e+00> : vector<7x7xf32>
    %73 = tpu.matmul %70, %71, %cst_20 {dimension_numbers = #tpu.dot_dimension_numbers<[1], [1], [0], [0], [0, 0, 1, 0], [], []>} : vector<7x8xbf16>, vector<7x8xbf16>, vector<7x7xf32> -> vector<7x7xf32>
    %cst_21 = arith.constant -1.000000e+09 : f32
    %74 = vector.shape_cast %6 : vector<1x7xi1> to vector<1x7xi1>
    %75 = vector.broadcast %74 : vector<1x7xi1> to vector<7x7xi1>
    %76 = vector.broadcast %cst_21 : f32 to vector<7x7xf32>
    %77 = arith.select %75, %73, %76 : vector<7x7xi1>, vector<7x7xf32>
    %cst_22 = arith.constant dense<0xFF800000> : vector<7xf32>
    %78 = vector.multi_reduction <maximumf>, %77, %cst_22 [1] : vector<7x7xf32> to vector<7xf32>
    %79 = vector.shape_cast %78 : vector<7xf32> to vector<7x1xf32>
    %80 = vector.broadcast %79 : vector<7x1xf32> to vector<7x7xf32>
    %81 = arith.subf %77, %80 : vector<7x7xf32>
    %82 = math.exp %81 : vector<7x7xf32>
    %cst_23 = arith.constant dense<0.000000e+00> : vector<7xf32>
    %83 = vector.multi_reduction <add>, %82, %cst_23 [1] : vector<7x7xf32> to vector<7xf32>
    %84 = vector.shape_cast %83 : vector<7xf32> to vector<7x1xf32>
    %85 = tpu.reciprocal %84 {approx = true} : vector<7x1xf32> -> vector<7x1xf32>
    %86 = vector.broadcast %85 : vector<7x1xf32> to vector<7x7xf32>
    %87 = arith.mulf %82, %86 : vector<7x7xf32>
    %88 = arith.truncf %87 : vector<7x7xf32> to vector<7x7xbf16>
    %cst_24 = arith.constant dense<0.000000e+00> : vector<7x8xf32>
    %89 = tpu.matmul %88, %72, %cst_24 {dimension_numbers = #tpu.dot_dimension_numbers<[1], [0], [0], [1], [0, 0, 1, 1], [], []>} : vector<7x7xbf16>, vector<7x8xbf16>, vector<7x8xf32> -> vector<7x8xf32>
    %c0_25 = arith.constant 0 : index
    %c24 = arith.constant 24 : index
    %90 = vector.load %arg4[%c0_25, %c24] : memref<7x32xf32, #tpu.memory_space<vmem>>, vector<7x8xf32>
    tpu.vector_store %arg4[%c0_25, %c24], %89 {strides = array<i32>} : memref<7x32xf32, #tpu.memory_space<vmem>>, vector<7x8xf32>,
    %c0_26 = arith.constant 0 : index
    %c0_27 = arith.constant 0 : index
    %91 = vector.load %arg4[%c0_26, %c0_27] : memref<7x32xf32, #tpu.memory_space<vmem>>, vector<7x32xf32>
    %92 = arith.truncf %91 : vector<7x32xf32> to vector<7x32xbf16>
    %c0_28 = arith.constant 0 : index
    %c0_29 = arith.constant 0 : index
    %c0_30 = arith.constant 0 : index
    %93 = vector.load %arg3[%c0_28, %c0_29, %c0_30] : memref<1x7x32xbf16, #tpu.memory_space<vmem>>, vector<1x7x32xbf16>
    %94 = vector.shape_cast %93 : vector<1x7x32xbf16> to vector<7x32xbf16>
    %95 = vector.shape_cast %92 : vector<7x32xbf16> to vector<1x7x32xbf16>
    tpu.vector_store %arg3[%c0_28, %c0_29, %c0_30], %95 {strides = array<i32>} : memref<1x7x32xbf16, #tpu.memory_space<vmem>>, vector<1x7x32xbf16>,
    return
  }
  func.func @transform_0(%arg0: i32, %arg1: memref<2xi32, #tpu.memory_space<smem>>) -> (i32, i32, i32) {
    %c0_i32 = arith.constant 0 : i32
    %c0_i32_0 = arith.constant 0 : i32
    %c0_i32_1 = arith.constant 0 : i32
    return %arg0, %c0_i32, %c0_i32_0 : i32, i32, i32
  }
  func.func @transform_1(%arg0: i32, %arg1: memref<2xi32, #tpu.memory_space<smem>>) -> (i32, i32, i32) {
    %c0_i32 = arith.constant 0 : i32
    %c0_i32_0 = arith.constant 0 : i32
    %c0_i32_1 = arith.constant 0 : i32
    return %arg0, %c0_i32, %c0_i32_0 : i32, i32, i32
  }
}

module attributes {stable_mosaic.version = 11 : i64} {
  func.func @_mm1_res_kernel(%arg0: i32, %arg1: memref<14x32xbf16, #tpu.memory_space<vmem>>, %arg2: memref<32x32xbf16, #tpu.memory_space<vmem>>, %arg3: memref<1x32xf32, #tpu.memory_space<vmem>>, %arg4: memref<14x32xf32, #tpu.memory_space<vmem>>, %arg5: memref<14x32xf32, #tpu.memory_space<vmem>>) attributes {dimension_semantics = [#tpu.dimension_semantics<parallel>], iteration_bounds = array<i64: 1>, scalar_prefetch = 0 : i64, scratch_operands = 0 : i64, tpu.core_type = #tpu.core_type<tc>, window_params = [{transform_indices = @transform_0, window_bounds = array<i64: 14, 32>}, {pipeline_mode = #tpu.pipeline_mode<synchronous>, transform_indices = @transform_1, window_bounds = array<i64: 32, 32>}, {pipeline_mode = #tpu.pipeline_mode<synchronous>, transform_indices = @transform_2, window_bounds = array<i64: 1, 32>}, {transform_indices = @transform_3, window_bounds = array<i64: 14, 32>}, {transform_indices = @transform_4, window_bounds = array<i64: 14, 32>}]} {
    %c0 = arith.constant 0 : index
    %c0_0 = arith.constant 0 : index
    %0 = vector.load %arg1[%c0, %c0_0] : memref<14x32xbf16, #tpu.memory_space<vmem>>, vector<14x32xbf16>
    %c0_1 = arith.constant 0 : index
    %c0_2 = arith.constant 0 : index
    %1 = vector.load %arg2[%c0_1, %c0_2] : memref<32x32xbf16, #tpu.memory_space<vmem>>, vector<32x32xbf16>
    %cst = arith.constant dense<0.000000e+00> : vector<14x32xf32>
    %2 = tpu.matmul %0, %1, %cst {dimension_numbers = #tpu.dot_dimension_numbers<[1], [0], [0], [1], [0, 0, 1, 1], [], []>} : vector<14x32xbf16>, vector<32x32xbf16>, vector<14x32xf32> -> vector<14x32xf32>
    %c0_3 = arith.constant 0 : index
    %c0_4 = arith.constant 0 : index
    %3 = vector.load %arg3[%c0_3, %c0_4] : memref<1x32xf32, #tpu.memory_space<vmem>>, vector<1x32xf32>
    %4 = vector.broadcast %3 : vector<1x32xf32> to vector<14x32xf32>
    %5 = arith.addf %2, %4 : vector<14x32xf32>
    %c0_5 = arith.constant 0 : index
    %c0_6 = arith.constant 0 : index
    %6 = vector.load %arg4[%c0_5, %c0_6] : memref<14x32xf32, #tpu.memory_space<vmem>>, vector<14x32xf32>
    %cst_7 = arith.constant 1.000000e+00 : f32
    %7 = vector.broadcast %cst_7 : f32 to vector<14x32xf32>
    %8 = arith.mulf %7, %5 : vector<14x32xf32>
    %9 = arith.addf %6, %8 : vector<14x32xf32>
    %c0_8 = arith.constant 0 : index
    %c0_9 = arith.constant 0 : index
    %10 = vector.load %arg5[%c0_8, %c0_9] : memref<14x32xf32, #tpu.memory_space<vmem>>, vector<14x32xf32>
    tpu.vector_store %arg5[%c0_8, %c0_9], %9 {strides = array<i32>} : memref<14x32xf32, #tpu.memory_space<vmem>>, vector<14x32xf32>,
    return
  }
  func.func @transform_0(%arg0: i32) -> (i32, i32) {
    %c0_i32 = arith.constant 0 : i32
    %c0_i32_0 = arith.constant 0 : i32
    return %arg0, %c0_i32 : i32, i32
  }
  func.func @transform_1(%arg0: i32) -> (i32, i32) {
    %c0_i32 = arith.constant 0 : i32
    %c0_i32_0 = arith.constant 0 : i32
    %c0_i32_1 = arith.constant 0 : i32
    return %c0_i32, %c0_i32_0 : i32, i32
  }
  func.func @transform_2(%arg0: i32) -> (i32, i32) {
    %c0_i32 = arith.constant 0 : i32
    %c0_i32_0 = arith.constant 0 : i32
    %c0_i32_1 = arith.constant 0 : i32
    return %c0_i32, %c0_i32_0 : i32, i32
  }
  func.func @transform_3(%arg0: i32) -> (i32, i32) {
    %c0_i32 = arith.constant 0 : i32
    %c0_i32_0 = arith.constant 0 : i32
    return %arg0, %c0_i32 : i32, i32
  }
  func.func @transform_4(%arg0: i32) -> (i32, i32) {
    %c0_i32 = arith.constant 0 : i32
    %c0_i32_0 = arith.constant 0 : i32
    return %arg0, %c0_i32 : i32, i32
  }
}

module attributes {stable_mosaic.version = 11 : i64} {
  func.func @_ln_glu_kernel(%arg0: i32, %arg1: i32, %arg2: memref<14x32xf32, #tpu.memory_space<vmem>>, %arg3: memref<1x32xf32, #tpu.memory_space<vmem>>, %arg4: memref<1x32xf32, #tpu.memory_space<vmem>>, %arg5: memref<32x32xbf16, #tpu.memory_space<vmem>>, %arg6: memref<1x32xf32, #tpu.memory_space<vmem>>, %arg7: memref<32x32xbf16, #tpu.memory_space<vmem>>, %arg8: memref<1x32xf32, #tpu.memory_space<vmem>>, %arg9: memref<14x32xbf16, #tpu.memory_space<vmem>>) attributes {dimension_semantics = [#tpu.dimension_semantics<parallel>, #tpu.dimension_semantics<parallel>], iteration_bounds = array<i64: 1, 1>, scalar_prefetch = 0 : i64, scratch_operands = 0 : i64, tpu.core_type = #tpu.core_type<tc>, window_params = [{transform_indices = @transform_0, window_bounds = array<i64: 14, 32>}, {pipeline_mode = #tpu.pipeline_mode<synchronous>, transform_indices = @transform_1, window_bounds = array<i64: 1, 32>}, {pipeline_mode = #tpu.pipeline_mode<synchronous>, transform_indices = @transform_2, window_bounds = array<i64: 1, 32>}, {transform_indices = @transform_3, window_bounds = array<i64: 32, 32>}, {transform_indices = @transform_4, window_bounds = array<i64: 1, 32>}, {transform_indices = @transform_5, window_bounds = array<i64: 32, 32>}, {transform_indices = @transform_6, window_bounds = array<i64: 1, 32>}, {transform_indices = @transform_7, window_bounds = array<i64: 14, 32>}]} {
    %c0 = arith.constant 0 : index
    %c0_0 = arith.constant 0 : index
    %0 = vector.load %arg2[%c0, %c0_0] : memref<14x32xf32, #tpu.memory_space<vmem>>, vector<14x32xf32>
    %cst = arith.constant dense<0.000000e+00> : vector<14xf32>
    %1 = vector.multi_reduction <add>, %0, %cst [1] : vector<14x32xf32> to vector<14xf32>
    %2 = vector.shape_cast %1 : vector<14xf32> to vector<14x1xf32>
    %cst_1 = arith.constant 3.200000e+01 : f32
    %3 = vector.broadcast %cst_1 : f32 to vector<14x1xf32>
    %4 = arith.divf %2, %3 : vector<14x1xf32>
    %5 = vector.broadcast %4 : vector<14x1xf32> to vector<14x32xf32>
    %6 = arith.subf %0, %5 : vector<14x32xf32>
    %7 = arith.mulf %6, %6 : vector<14x32xf32>
    %cst_2 = arith.constant dense<0.000000e+00> : vector<14xf32>
    %8 = vector.multi_reduction <add>, %7, %cst_2 [1] : vector<14x32xf32> to vector<14xf32>
    %9 = vector.shape_cast %8 : vector<14xf32> to vector<14x1xf32>
    %cst_3 = arith.constant 3.200000e+01 : f32
    %10 = vector.broadcast %cst_3 : f32 to vector<14x1xf32>
    %11 = arith.divf %9, %10 : vector<14x1xf32>
    %12 = vector.broadcast %4 : vector<14x1xf32> to vector<14x32xf32>
    %13 = arith.subf %0, %12 : vector<14x32xf32>
    %cst_4 = arith.constant 9.99999974E-6 : f32
    %14 = vector.broadcast %cst_4 : f32 to vector<14x1xf32>
    %15 = arith.addf %11, %14 : vector<14x1xf32>
    %16 = math.rsqrt %15 : vector<14x1xf32>
    %17 = vector.broadcast %16 : vector<14x1xf32> to vector<14x32xf32>
    %18 = arith.mulf %13, %17 : vector<14x32xf32>
    %c0_5 = arith.constant 0 : index
    %c0_6 = arith.constant 0 : index
    %19 = vector.load %arg3[%c0_5, %c0_6] : memref<1x32xf32, #tpu.memory_space<vmem>>, vector<1x32xf32>
    %20 = vector.broadcast %19 : vector<1x32xf32> to vector<14x32xf32>
    %21 = arith.mulf %18, %20 : vector<14x32xf32>
    %c0_7 = arith.constant 0 : index
    %c0_8 = arith.constant 0 : index
    %22 = vector.load %arg4[%c0_7, %c0_8] : memref<1x32xf32, #tpu.memory_space<vmem>>, vector<1x32xf32>
    %23 = vector.broadcast %22 : vector<1x32xf32> to vector<14x32xf32>
    %24 = arith.addf %21, %23 : vector<14x32xf32>
    %25 = arith.truncf %24 : vector<14x32xf32> to vector<14x32xbf16>
    %c0_9 = arith.constant 0 : index
    %c0_10 = arith.constant 0 : index
    %26 = vector.load %arg5[%c0_9, %c0_10] : memref<32x32xbf16, #tpu.memory_space<vmem>>, vector<32x32xbf16>
    %cst_11 = arith.constant dense<0.000000e+00> : vector<14x32xf32>
    %27 = tpu.matmul %25, %26, %cst_11 {dimension_numbers = #tpu.dot_dimension_numbers<[1], [0], [0], [1], [0, 0, 1, 1], [], []>} : vector<14x32xbf16>, vector<32x32xbf16>, vector<14x32xf32> -> vector<14x32xf32>
    %c0_12 = arith.constant 0 : index
    %c0_13 = arith.constant 0 : index
    %28 = vector.load %arg6[%c0_12, %c0_13] : memref<1x32xf32, #tpu.memory_space<vmem>>, vector<1x32xf32>
    %29 = vector.broadcast %28 : vector<1x32xf32> to vector<14x32xf32>
    %30 = arith.addf %27, %29 : vector<14x32xf32>
    %c0_14 = arith.constant 0 : index
    %c0_15 = arith.constant 0 : index
    %31 = vector.load %arg7[%c0_14, %c0_15] : memref<32x32xbf16, #tpu.memory_space<vmem>>, vector<32x32xbf16>
    %cst_16 = arith.constant dense<0.000000e+00> : vector<14x32xf32>
    %32 = tpu.matmul %25, %31, %cst_16 {dimension_numbers = #tpu.dot_dimension_numbers<[1], [0], [0], [1], [0, 0, 1, 1], [], []>} : vector<14x32xbf16>, vector<32x32xbf16>, vector<14x32xf32> -> vector<14x32xf32>
    %c0_17 = arith.constant 0 : index
    %c0_18 = arith.constant 0 : index
    %33 = vector.load %arg8[%c0_17, %c0_18] : memref<1x32xf32, #tpu.memory_space<vmem>>, vector<1x32xf32>
    %34 = vector.broadcast %33 : vector<1x32xf32> to vector<14x32xf32>
    %35 = arith.addf %32, %34 : vector<14x32xf32>
    %cst_19 = arith.constant 0.000000e+00 : f32
    %36 = vector.broadcast %cst_19 : f32 to vector<14x32xf32>
    %37 = arith.subf %36, %35 : vector<14x32xf32>
    %38 = math.exp %37 : vector<14x32xf32>
    %cst_20 = arith.constant 1.000000e+00 : f32
    %39 = vector.broadcast %cst_20 : f32 to vector<14x32xf32>
    %40 = arith.addf %39, %38 : vector<14x32xf32>
    %41 = tpu.reciprocal %40 {approx = true} : vector<14x32xf32> -> vector<14x32xf32>
    %42 = arith.mulf %30, %41 : vector<14x32xf32>
    %43 = arith.truncf %42 : vector<14x32xf32> to vector<14x32xbf16>
    %c0_21 = arith.constant 0 : index
    %c0_22 = arith.constant 0 : index
    %44 = vector.load %arg9[%c0_21, %c0_22] : memref<14x32xbf16, #tpu.memory_space<vmem>>, vector<14x32xbf16>
    tpu.vector_store %arg9[%c0_21, %c0_22], %43 {strides = array<i32>} : memref<14x32xbf16, #tpu.memory_space<vmem>>, vector<14x32xbf16>,
    return
  }
  func.func @transform_0(%arg0: i32, %arg1: i32) -> (i32, i32) {
    %c0_i32 = arith.constant 0 : i32
    %c0_i32_0 = arith.constant 0 : i32
    return %arg0, %c0_i32 : i32, i32
  }
  func.func @transform_1(%arg0: i32, %arg1: i32) -> (i32, i32) {
    %c0_i32 = arith.constant 0 : i32
    %c0_i32_0 = arith.constant 0 : i32
    %c0_i32_1 = arith.constant 0 : i32
    return %c0_i32, %c0_i32_0 : i32, i32
  }
  func.func @transform_2(%arg0: i32, %arg1: i32) -> (i32, i32) {
    %c0_i32 = arith.constant 0 : i32
    %c0_i32_0 = arith.constant 0 : i32
    %c0_i32_1 = arith.constant 0 : i32
    return %c0_i32, %c0_i32_0 : i32, i32
  }
  func.func @transform_3(%arg0: i32, %arg1: i32) -> (i32, i32) {
    %c0_i32 = arith.constant 0 : i32
    %c0_i32_0 = arith.constant 0 : i32
    return %c0_i32, %arg1 : i32, i32
  }
  func.func @transform_4(%arg0: i32, %arg1: i32) -> (i32, i32) {
    %c0_i32 = arith.constant 0 : i32
    %c0_i32_0 = arith.constant 0 : i32
    return %c0_i32, %arg1 : i32, i32
  }
  func.func @transform_5(%arg0: i32, %arg1: i32) -> (i32, i32) {
    %c0_i32 = arith.constant 0 : i32
    %c0_i32_0 = arith.constant 0 : i32
    return %c0_i32, %arg1 : i32, i32
  }
  func.func @transform_6(%arg0: i32, %arg1: i32) -> (i32, i32) {
    %c0_i32 = arith.constant 0 : i32
    %c0_i32_0 = arith.constant 0 : i32
    return %c0_i32, %arg1 : i32, i32
  }
  func.func @transform_7(%arg0: i32, %arg1: i32) -> (i32, i32) {
    %c0_i32 = arith.constant 0 : i32
    return %arg0, %arg1 : i32, i32
  }
}

module attributes {stable_mosaic.version = 11 : i64} {
  func.func @_dwconv_bn_silu_kernel(%arg0: i32, %arg1: memref<1x16x32xbf16, #tpu.memory_space<vmem>>, %arg2: memref<3x32xf32, #tpu.memory_space<vmem>>, %arg3: memref<1x32xf32, #tpu.memory_space<vmem>>, %arg4: memref<1x32xf32, #tpu.memory_space<vmem>>, %arg5: memref<1x32xf32, #tpu.memory_space<vmem>>, %arg6: memref<1x7x32xbf16, #tpu.memory_space<vmem>>) attributes {dimension_semantics = [#tpu.dimension_semantics<parallel>], iteration_bounds = array<i64: 2>, scalar_prefetch = 0 : i64, scratch_operands = 0 : i64, tpu.core_type = #tpu.core_type<tc>, window_params = [{transform_indices = @transform_0, window_bounds = array<i64: 1, 16, 32>}, {pipeline_mode = #tpu.pipeline_mode<synchronous>, transform_indices = @transform_1, window_bounds = array<i64: 3, 32>}, {pipeline_mode = #tpu.pipeline_mode<synchronous>, transform_indices = @transform_2, window_bounds = array<i64: 1, 32>}, {pipeline_mode = #tpu.pipeline_mode<synchronous>, transform_indices = @transform_3, window_bounds = array<i64: 1, 32>}, {pipeline_mode = #tpu.pipeline_mode<synchronous>, transform_indices = @transform_4, window_bounds = array<i64: 1, 32>}, {transform_indices = @transform_5, window_bounds = array<i64: 1, 7, 32>}]} {
    %c0 = arith.constant 0 : index
    %c0_0 = arith.constant 0 : index
    %c0_1 = arith.constant 0 : index
    %0 = vector.load %arg1[%c0, %c0_0, %c0_1] : memref<1x16x32xbf16, #tpu.memory_space<vmem>>, vector<1x16x32xbf16>
    %1 = vector.shape_cast %0 : vector<1x16x32xbf16> to vector<16x32xbf16>
    %2 = arith.extf %1 : vector<16x32xbf16> to vector<16x32xf32>
    %c0_2 = arith.constant 0 : index
    %c0_3 = arith.constant 0 : index
    %3 = vector.load %arg2[%c0_2, %c0_3] : memref<3x32xf32, #tpu.memory_space<vmem>>, vector<3x32xf32>
    %4 = vector.extract_strided_slice %3 {offsets = [0, 0], sizes = [1, 32], strides = [1, 1]} : vector<3x32xf32> to vector<1x32xf32>
    %5 = vector.shape_cast %4 : vector<1x32xf32> to vector<32xf32>
    %6 = vector.shape_cast %5 : vector<32xf32> to vector<1x32xf32>
    %7 = vector.broadcast %6 : vector<1x32xf32> to vector<16x32xf32>
    %8 = arith.mulf %2, %7 : vector<16x32xf32>
    %c15_i32 = arith.constant 15 : i32
    %9 = tpu.dynamic_rotate %2 by %c15_i32 dim 0 : vector<16x32xf32>, i32 -> vector<16x32xf32>
    %10 = vector.extract_strided_slice %3 {offsets = [1, 0], sizes = [1, 32], strides = [1, 1]} : vector<3x32xf32> to vector<1x32xf32>
    %11 = vector.shape_cast %10 : vector<1x32xf32> to vector<32xf32>
    %12 = vector.shape_cast %11 : vector<32xf32> to vector<1x32xf32>
    %13 = vector.broadcast %12 : vector<1x32xf32> to vector<16x32xf32>
    %14 = arith.mulf %9, %13 : vector<16x32xf32>
    %15 = arith.addf %8, %14 : vector<16x32xf32>
    %c14_i32 = arith.constant 14 : i32
    %16 = tpu.dynamic_rotate %2 by %c14_i32 dim 0 : vector<16x32xf32>, i32 -> vector<16x32xf32>
    %17 = vector.extract_strided_slice %3 {offsets = [2, 0], sizes = [1, 32], strides = [1, 1]} : vector<3x32xf32> to vector<1x32xf32>
    %18 = vector.shape_cast %17 : vector<1x32xf32> to vector<32xf32>
    %19 = vector.shape_cast %18 : vector<32xf32> to vector<1x32xf32>
    %20 = vector.broadcast %19 : vector<1x32xf32> to vector<16x32xf32>
    %21 = arith.mulf %16, %20 : vector<16x32xf32>
    %22 = arith.addf %15, %21 : vector<16x32xf32>
    %23 = vector.extract_strided_slice %22 {offsets = [0, 0], sizes = [7, 32], strides = [1, 1]} : vector<16x32xf32> to vector<7x32xf32>
    %c0_4 = arith.constant 0 : index
    %c0_5 = arith.constant 0 : index
    %24 = vector.load %arg3[%c0_4, %c0_5] : memref<1x32xf32, #tpu.memory_space<vmem>>, vector<1x32xf32>
    %25 = vector.broadcast %24 : vector<1x32xf32> to vector<7x32xf32>
    %26 = arith.addf %23, %25 : vector<7x32xf32>
    %c0_6 = arith.constant 0 : index
    %c0_7 = arith.constant 0 : index
    %27 = vector.load %arg4[%c0_6, %c0_7] : memref<1x32xf32, #tpu.memory_space<vmem>>, vector<1x32xf32>
    %28 = vector.broadcast %27 : vector<1x32xf32> to vector<7x32xf32>
    %29 = arith.mulf %26, %28 : vector<7x32xf32>
    %c0_8 = arith.constant 0 : index
    %c0_9 = arith.constant 0 : index
    %30 = vector.load %arg5[%c0_8, %c0_9] : memref<1x32xf32, #tpu.memory_space<vmem>>, vector<1x32xf32>
    %31 = vector.broadcast %30 : vector<1x32xf32> to vector<7x32xf32>
    %32 = arith.addf %29, %31 : vector<7x32xf32>
    %cst = arith.constant 0.000000e+00 : f32
    %33 = vector.broadcast %cst : f32 to vector<7x32xf32>
    %34 = arith.subf %33, %32 : vector<7x32xf32>
    %35 = math.exp %34 : vector<7x32xf32>
    %cst_10 = arith.constant 1.000000e+00 : f32
    %36 = vector.broadcast %cst_10 : f32 to vector<7x32xf32>
    %37 = arith.addf %36, %35 : vector<7x32xf32>
    %38 = tpu.reciprocal %37 {approx = true} : vector<7x32xf32> -> vector<7x32xf32>
    %39 = arith.mulf %32, %38 : vector<7x32xf32>
    %40 = arith.truncf %39 : vector<7x32xf32> to vector<7x32xbf16>
    %c0_11 = arith.constant 0 : index
    %c0_12 = arith.constant 0 : index
    %c0_13 = arith.constant 0 : index
    %41 = vector.load %arg6[%c0_11, %c0_12, %c0_13] : memref<1x7x32xbf16, #tpu.memory_space<vmem>>, vector<1x7x32xbf16>
    %42 = vector.shape_cast %41 : vector<1x7x32xbf16> to vector<7x32xbf16>
    %43 = vector.shape_cast %40 : vector<7x32xbf16> to vector<1x7x32xbf16>
    tpu.vector_store %arg6[%c0_11, %c0_12, %c0_13], %43 {strides = array<i32>} : memref<1x7x32xbf16, #tpu.memory_space<vmem>>, vector<1x7x32xbf16>,
    return
  }
  func.func @transform_0(%arg0: i32) -> (i32, i32, i32) {
    %c0_i32 = arith.constant 0 : i32
    %c0_i32_0 = arith.constant 0 : i32
    %c0_i32_1 = arith.constant 0 : i32
    return %arg0, %c0_i32, %c0_i32_0 : i32, i32, i32
  }
  func.func @transform_1(%arg0: i32) -> (i32, i32) {
    %c0_i32 = arith.constant 0 : i32
    %c0_i32_0 = arith.constant 0 : i32
    %c0_i32_1 = arith.constant 0 : i32
    return %c0_i32, %c0_i32_0 : i32, i32
  }
  func.func @transform_2(%arg0: i32) -> (i32, i32) {
    %c0_i32 = arith.constant 0 : i32
    %c0_i32_0 = arith.constant 0 : i32
    %c0_i32_1 = arith.constant 0 : i32
    return %c0_i32, %c0_i32_0 : i32, i32
  }
  func.func @transform_3(%arg0: i32) -> (i32, i32) {
    %c0_i32 = arith.constant 0 : i32
    %c0_i32_0 = arith.constant 0 : i32
    %c0_i32_1 = arith.constant 0 : i32
    return %c0_i32, %c0_i32_0 : i32, i32
  }
  func.func @transform_4(%arg0: i32) -> (i32, i32) {
    %c0_i32 = arith.constant 0 : i32
    %c0_i32_0 = arith.constant 0 : i32
    %c0_i32_1 = arith.constant 0 : i32
    return %c0_i32, %c0_i32_0 : i32, i32
  }
  func.func @transform_5(%arg0: i32) -> (i32, i32, i32) {
    %c0_i32 = arith.constant 0 : i32
    %c0_i32_0 = arith.constant 0 : i32
    %c0_i32_1 = arith.constant 0 : i32
    return %arg0, %c0_i32, %c0_i32_0 : i32, i32, i32
  }
}

module attributes {stable_mosaic.version = 11 : i64} {
  func.func @_mm1_res_ln_kernel(%arg0: i32, %arg1: memref<14x64xbf16, #tpu.memory_space<vmem>>, %arg2: memref<64x32xbf16, #tpu.memory_space<vmem>>, %arg3: memref<1x32xf32, #tpu.memory_space<vmem>>, %arg4: memref<14x32xf32, #tpu.memory_space<vmem>>, %arg5: memref<1x32xf32, #tpu.memory_space<vmem>>, %arg6: memref<1x32xf32, #tpu.memory_space<vmem>>, %arg7: memref<14x32xf32, #tpu.memory_space<vmem>>) attributes {dimension_semantics = [#tpu.dimension_semantics<parallel>], iteration_bounds = array<i64: 1>, scalar_prefetch = 0 : i64, scratch_operands = 0 : i64, tpu.core_type = #tpu.core_type<tc>, window_params = [{transform_indices = @transform_0, window_bounds = array<i64: 14, 64>}, {pipeline_mode = #tpu.pipeline_mode<synchronous>, transform_indices = @transform_1, window_bounds = array<i64: 64, 32>}, {pipeline_mode = #tpu.pipeline_mode<synchronous>, transform_indices = @transform_2, window_bounds = array<i64: 1, 32>}, {transform_indices = @transform_3, window_bounds = array<i64: 14, 32>}, {pipeline_mode = #tpu.pipeline_mode<synchronous>, transform_indices = @transform_4, window_bounds = array<i64: 1, 32>}, {pipeline_mode = #tpu.pipeline_mode<synchronous>, transform_indices = @transform_5, window_bounds = array<i64: 1, 32>}, {transform_indices = @transform_6, window_bounds = array<i64: 14, 32>}]} {
    %c0 = arith.constant 0 : index
    %c0_0 = arith.constant 0 : index
    %0 = vector.load %arg1[%c0, %c0_0] : memref<14x64xbf16, #tpu.memory_space<vmem>>, vector<14x64xbf16>
    %c0_1 = arith.constant 0 : index
    %c0_2 = arith.constant 0 : index
    %1 = vector.load %arg2[%c0_1, %c0_2] : memref<64x32xbf16, #tpu.memory_space<vmem>>, vector<64x32xbf16>
    %cst = arith.constant dense<0.000000e+00> : vector<14x32xf32>
    %2 = tpu.matmul %0, %1, %cst {dimension_numbers = #tpu.dot_dimension_numbers<[1], [0], [0], [1], [0, 0, 1, 1], [], []>} : vector<14x64xbf16>, vector<64x32xbf16>, vector<14x32xf32> -> vector<14x32xf32>
    %c0_3 = arith.constant 0 : index
    %c0_4 = arith.constant 0 : index
    %3 = vector.load %arg3[%c0_3, %c0_4] : memref<1x32xf32, #tpu.memory_space<vmem>>, vector<1x32xf32>
    %4 = vector.broadcast %3 : vector<1x32xf32> to vector<14x32xf32>
    %5 = arith.addf %2, %4 : vector<14x32xf32>
    %c0_5 = arith.constant 0 : index
    %c0_6 = arith.constant 0 : index
    %6 = vector.load %arg4[%c0_5, %c0_6] : memref<14x32xf32, #tpu.memory_space<vmem>>, vector<14x32xf32>
    %cst_7 = arith.constant 5.000000e-01 : f32
    %7 = vector.broadcast %cst_7 : f32 to vector<14x32xf32>
    %8 = arith.mulf %7, %5 : vector<14x32xf32>
    %9 = arith.addf %6, %8 : vector<14x32xf32>
    %cst_8 = arith.constant dense<0.000000e+00> : vector<14xf32>
    %10 = vector.multi_reduction <add>, %9, %cst_8 [1] : vector<14x32xf32> to vector<14xf32>
    %11 = vector.shape_cast %10 : vector<14xf32> to vector<14x1xf32>
    %cst_9 = arith.constant 3.200000e+01 : f32
    %12 = vector.broadcast %cst_9 : f32 to vector<14x1xf32>
    %13 = arith.divf %11, %12 : vector<14x1xf32>
    %14 = vector.broadcast %13 : vector<14x1xf32> to vector<14x32xf32>
    %15 = arith.subf %9, %14 : vector<14x32xf32>
    %16 = arith.mulf %15, %15 : vector<14x32xf32>
    %cst_10 = arith.constant dense<0.000000e+00> : vector<14xf32>
    %17 = vector.multi_reduction <add>, %16, %cst_10 [1] : vector<14x32xf32> to vector<14xf32>
    %18 = vector.shape_cast %17 : vector<14xf32> to vector<14x1xf32>
    %cst_11 = arith.constant 3.200000e+01 : f32
    %19 = vector.broadcast %cst_11 : f32 to vector<14x1xf32>
    %20 = arith.divf %18, %19 : vector<14x1xf32>
    %21 = vector.broadcast %13 : vector<14x1xf32> to vector<14x32xf32>
    %22 = arith.subf %9, %21 : vector<14x32xf32>
    %cst_12 = arith.constant 9.99999974E-6 : f32
    %23 = vector.broadcast %cst_12 : f32 to vector<14x1xf32>
    %24 = arith.addf %20, %23 : vector<14x1xf32>
    %25 = math.rsqrt %24 : vector<14x1xf32>
    %26 = vector.broadcast %25 : vector<14x1xf32> to vector<14x32xf32>
    %27 = arith.mulf %22, %26 : vector<14x32xf32>
    %c0_13 = arith.constant 0 : index
    %c0_14 = arith.constant 0 : index
    %28 = vector.load %arg5[%c0_13, %c0_14] : memref<1x32xf32, #tpu.memory_space<vmem>>, vector<1x32xf32>
    %29 = vector.broadcast %28 : vector<1x32xf32> to vector<14x32xf32>
    %30 = arith.mulf %27, %29 : vector<14x32xf32>
    %c0_15 = arith.constant 0 : index
    %c0_16 = arith.constant 0 : index
    %31 = vector.load %arg6[%c0_15, %c0_16] : memref<1x32xf32, #tpu.memory_space<vmem>>, vector<1x32xf32>
    %32 = vector.broadcast %31 : vector<1x32xf32> to vector<14x32xf32>
    %33 = arith.addf %30, %32 : vector<14x32xf32>
    %c0_17 = arith.constant 0 : index
    %c0_18 = arith.constant 0 : index
    %34 = vector.load %arg7[%c0_17, %c0_18] : memref<14x32xf32, #tpu.memory_space<vmem>>, vector<14x32xf32>
    tpu.vector_store %arg7[%c0_17, %c0_18], %33 {strides = array<i32>} : memref<14x32xf32, #tpu.memory_space<vmem>>, vector<14x32xf32>,
    return
  }
  func.func @transform_0(%arg0: i32) -> (i32, i32) {
    %c0_i32 = arith.constant 0 : i32
    %c0_i32_0 = arith.constant 0 : i32
    return %arg0, %c0_i32 : i32, i32
  }
  func.func @transform_1(%arg0: i32) -> (i32, i32) {
    %c0_i32 = arith.constant 0 : i32
    %c0_i32_0 = arith.constant 0 : i32
    %c0_i32_1 = arith.constant 0 : i32
    return %c0_i32, %c0_i32_0 : i32, i32
  }
  func.func @transform_2(%arg0: i32) -> (i32, i32) {
    %c0_i32 = arith.constant 0 : i32
    %c0_i32_0 = arith.constant 0 : i32
    %c0_i32_1 = arith.constant 0 : i32
    return %c0_i32, %c0_i32_0 : i32, i32
  }
  func.func @transform_3(%arg0: i32) -> (i32, i32) {
    %c0_i32 = arith.constant 0 : i32
    %c0_i32_0 = arith.constant 0 : i32
    return %arg0, %c0_i32 : i32, i32
  }
  func.func @transform_4(%arg0: i32) -> (i32, i32) {
    %c0_i32 = arith.constant 0 : i32
    %c0_i32_0 = arith.constant 0 : i32
    %c0_i32_1 = arith.constant 0 : i32
    return %c0_i32, %c0_i32_0 : i32, i32
  }
  func.func @transform_5(%arg0: i32) -> (i32, i32) {
    %c0_i32 = arith.constant 0 : i32
    %c0_i32_0 = arith.constant 0 : i32
    %c0_i32_1 = arith.constant 0 : i32
    return %c0_i32, %c0_i32_0 : i32, i32
  }
  func.func @transform_6(%arg0: i32) -> (i32, i32) {
    %c0_i32 = arith.constant 0 : i32
    %c0_i32_0 = arith.constant 0 : i32
    return %arg0, %c0_i32 : i32, i32
  }
}

</mosaic_0001>

<bundles_post_ra>
// kernel: conformer_encoder_forward.23
= control target key start
LH: loop header
LB: loop body
LE: loop exit
PB: predicated region body
PF: predicated region fallthrough
CT: control target
= control target key end

     0   :  { %vm164_vm0 = vcmask 1043456   ;;  %vm165_vm1 = vcmask 1044480   ;;  %v425_v2 = vmov 65535   ;;  %vm121_vm2 = vcmask 72704   ;;  %s647_s1 = inlined_call_operand.vmem [shape: bf16[9,32], index: 1, kind: input, shape index: {}]   ;;  %s648_s0 = inlined_call_operand.vmem [shape: bf16[210,9], index: 0, kind: input, shape index: {}]   ;;  %s649_s2 = inlined_call_operand.vmem [shape: f32[1,32], index: 2, kind: input, shape index: {}]   ;;  %s650_s3 = inlined_call_operand.vmem [shape: bf16[210,32], index: 3, kind: output, shape index: {}]  }
   0x1   :  { %v390_v0 = vld [vmem:[%s647_s1] sm:$0xf]  ;;  %v419_v1 = vld [vmem:[%s647_s1] sm:$0x10]  ;;  %v166_v3 = vsel %vm164_vm0, 4294967295, %v425_v2  ;;  %v407_v13 = vld [vmem:[%s648_s0 + $0x8] sm:$0xff] }
   0x2   :  { %v391_v4 = vor.u32 %v419_v1, %v390_v0  ;;  %v167_v5 = vsel %vm165_vm1, %v166_v3, 0  ;;  %v406_v7 = vld [vmem:[%s648_s0] sm:$0xff]  ;;  %v41_v11 = vld [vmem:[%s648_s0 + $0x68] sm:$0x1]  ;;  %v408_v17 = vld [vmem:[%s648_s0 + $0x10] sm:$0xff]  ;;  %vm303_vm3 = vcmask 257024  }
   0x3   :  { %v410_v8 = vld [vmem:[%s648_s0 + $0x20] sm:$0xff]  ;;  %v101_v12 = vunpack.c.l.b16 %v41_v11  ;;  %v411_v14 = vld [vmem:[%s648_s0 + $0x28] sm:$0xff]  ;;  %v412_v18 = vld [vmem:[%s648_s0 + $0x30] sm:$0xff]  ;;  %vm330_vm4 = vcmask 253952  }
   0x4   :  { %v169_v6 = vand.u32 %v391_v4, %v167_v5  ;;  %v414_v9 = vld [vmem:[%s648_s0 + $0x40] sm:$0xff]  ;;  %v415_v15 = vld [vmem:[%s648_s0 + $0x48] sm:$0xff]  ;;  %v416_v19 = vld [vmem:[%s648_s0 + $0x50] sm:$0xff] }
   0x5   :  { %v418_v10 = vld [vmem:[%s648_s0 + $0x60] sm:$0xff]  ;;  %v115_v16 = vpack.c.b16 %v101_v12, %v101_v12  ;;  %v409_v20 = vld [vmem:[%s648_s0 + $0x18] sm:$0xff] }
   0x6   :  { %178 = vmatpush.bf16.msra.mxu0 %v169_v6  ;;  %420 = vmatpush.bf16.msra.mxu1 %v169_v6  ;;  %v413_v21 = vld [vmem:[%s648_s0 + $0x38] sm:$0xff]  ;;  %v511_v23 = vld [vmem:[%s649_s2] ss:$0 sm:$0xff] }
   0x7   :  { %421 = vmatpush.bf16.msra.mxu2 %v169_v6  ;;  %422 = vmatpush.bf16.msra.mxu3 %v169_v6  ;;  %v417_v22 = vld [vmem:[%s648_s0 + $0x58] sm:$0xff] }
   0x9   :  { %392 = vmatmul.msk.bf16.vlgmr.msra.gmra.mxu0 %vm121_vm2, %v406_v7  ;;  %396 = vmatmul.msk.bf16.vlgmr.msra.gmra.mxu1 %vm121_vm2, %v410_v8 }
   0xa   :  { %400 = vmatmul.msk.bf16.vlgmr.msra.gmra.mxu2 %vm121_vm2, %v414_v9  ;;  %404 = vmatmul.msk.bf16.vlgmr.msra.gmra.mxu3 %vm121_vm2, %v418_v10 }
  0x19   :  { %393 = vmatmul.msk.bf16.gmra.mxu0 %vm121_vm2, %v407_v13  ;;  %397 = vmatmul.msk.bf16.gmra.mxu1 %vm121_vm2, %v411_v14 }
  0x1a   :  { %401 = vmatmul.msk.bf16.gmra.mxu2 %vm121_vm2, %v415_v15  ;;  %405 = vmatmul.msk.bf16.gmra.mxu3 %vm121_vm2, %v115_v16 }
  0x29   :  { %394 = vmatmul.msk.bf16.gmra.mxu0 %vm121_vm2, %v408_v17  ;;  %398 = vmatmul.msk.bf16.gmra.mxu1 %vm121_vm2, %v412_v18 }
  0x2a   :  { %402 = vmatmul.msk.bf16.gmra.mxu2 %vm121_vm2, %v416_v19 }
  0x39   :  { %395 = vmatmul.msk.bf16.gmra.mxu0 %vm121_vm2, %v409_v20  ;;  %399 = vmatmul.msk.bf16.gmra.mxu1 %vm121_vm2, %v413_v21 }
  0x3a   :  { %403 = vmatmul.msk.bf16.gmra.mxu2 %vm121_vm2, %v417_v22 }
  0x86   :  { %v180_v24 = vpop.f32.mrf.mxu0  ;;  %v200_v25 = vpop.f32.mrf.mxu1 }
  0x87   :  { %v181_v26 = vadd.f32 %v511_v23, %v180_v24  ;;  %v201_v27 = vadd.f32 %v511_v23, %v200_v25 }
  0x89   :  { %v249_v28 = vmax.f32 %v181_v26, 0.0  ;;  %v257_v29 = vmax.f32 %v201_v27, 0.0 }
  0x8b   :  { %v276_v30 = vpack.c.bf16 %v249_v28, %v249_v28  ;;  %v284_v31 = vpack.c.bf16 %v257_v29, %v257_v29 }
  0x8d   :  { %304 = vst.msk [vmem:[%s650_s3] sm:$0xf] %vm303_vm3, %v276_v30  ;;  %v220_v32 = vpop.f32.mrf.mxu2  ;;  %v240_v33 = vpop.f32.mrf.mxu3 }
  0x8e   :  { %312 = vst.msk [vmem:[%s650_s3 + $0x20] sm:$0xf] %vm303_vm3, %v284_v31  ;;  %v221_v34 = vadd.f32 %v511_v23, %v220_v32  ;;  %v182_v35 = vpop.f32.mrf.mxu0  ;;  %v202_v36 = vpop.f32.mrf.mxu1  ;;  %v241_v37 = vadd.f32 %v511_v23, %v240_v33 }
  0x8f   :  { %v183_v38 = vadd.f32 %v511_v23, %v182_v35  ;;  %v203_v39 = vadd.f32 %v511_v23, %v202_v36 }
  0x90   :  { %v265_v40 = vmax.f32 %v221_v34, 0.0  ;;  %v273_v41 = vmax.f32 %v241_v37, 0.0 }
  0x91   :  { %v250_v42 = vmax.f32 %v183_v38, 0.0  ;;  %v258_v43 = vmax.f32 %v203_v39, 0.0 }
  0x92   :  { %v292_v44 = vpack.c.bf16 %v265_v40, %v265_v40  ;;  %v300_v47 = vpack.c.bf16 %v273_v41, %v273_v41 }
  0x93   :  { %v277_v45 = vpack.c.bf16 %v250_v42, %v250_v42  ;;  %v285_v46 = vpack.c.bf16 %v258_v43, %v258_v43 }
  0x94   :  { %320 = vst.msk [vmem:[%s650_s3 + $0x40] sm:$0xf] %vm303_vm3, %v292_v44 }
  0x95   :  { %305 = vst.msk [vmem:[%s650_s3 + $0x4] sm:$0xf] %vm303_vm3, %v277_v45  ;;  %v222_v48 = vpop.f32.mrf.mxu2  ;;  %v242_v49 = vpop.f32.mrf.mxu3 }
  0x96   :  { %313 = vst.msk [vmem:[%s650_s3 + $0x24] sm:$0xf] %vm303_vm3, %v285_v46  ;;  %v223_v50 = vadd.f32 %v511_v23, %v222_v48  ;;  %v185_v51 = vpop.f32.mrf.mxu0  ;;  %v205_v52 = vpop.f32.mrf.mxu1  ;;  %v243_v53 = vadd.f32 %v511_v23, %v242_v49 }
  0x97   :  { %v186_v54 = vadd.f32 %v511_v23, %v185_v51  ;;  %v206_v55 = vadd.f32 %v511_v23, %v205_v52  ;;  %328 = vst.msk [vmem:[%s650_s3 + $0x60] sm:$0xf] %vm303_vm3, %v300_v47 }
  0x98   :  { %v266_v56 = vmax.f32 %v223_v50, 0.0  ;;  %v274_v57 = vmax.f32 %v243_v53, 0.0 }
  0x99   :  { %v251_v58 = vmax.f32 %v186_v54, 0.0  ;;  %v259_v59 = vmax.f32 %v206_v55, 0.0 }
  0x9a   :  { %v293_v60 = vpack.c.bf16 %v266_v56, %v266_v56  ;;  %v301_v63 = vpack.c.bf16 %v274_v57, %v274_v57 }
  0x9b   :  { %v278_v61 = vpack.c.bf16 %v251_v58, %v251_v58  ;;  %v286_v62 = vpack.c.bf16 %v259_v59, %v259_v59 }
  0x9c   :  { %321 = vst.msk [vmem:[%s650_s3 + $0x44] sm:$0xf] %vm303_vm3, %v293_v60 }
  0x9d   :  { %306 = vst.msk [vmem:[%s650_s3 + $0x8] sm:$0xf] %vm303_vm3, %v278_v61  ;;  %v225_v0 = vpop.f32.mrf.mxu2  ;;  %v245_v1 = vpop.f32.mrf.mxu3 }
  0x9e   :  { %314 = vst.msk [vmem:[%s650_s3 + $0x28] sm:$0xf] %vm303_vm3, %v286_v62  ;;  %v226_v2 = vadd.f32 %v511_v23, %v225_v0  ;;  %v187_v3 = vpop.f32.mrf.mxu0  ;;  %v207_v4 = vpop.f32.mrf.mxu1  ;;  %v246_v5 = vadd.f32 %v511_v23, %v245_v1 }
  0x9f   :  { %v188_v6 = vadd.f32 %v511_v23, %v187_v3  ;;  %v208_v7 = vadd.f32 %v511_v23, %v207_v4  ;;  %329 = vst.msk [vmem:[%s650_s3 + $0x64] sm:$0xf] %vm303_vm3, %v301_v63 }
  0xa0   :  { %v267_v8 = vmax.f32 %v226_v2, 0.0  ;;  %v275_v9 = vmax.f32 %v246_v5, 0.0 }
  0xa1   :  { %v252_v10 = vmax.f32 %v188_v6, 0.0  ;;  %v260_v11 = vmax.f32 %v208_v7, 0.0 }
  0xa2   :  { %v294_v12 = vpack.c.bf16 %v267_v8, %v267_v8  ;;  %v302_v15 = vpack.c.bf16 %v275_v9, %v275_v9 }
  0xa3   :  { %v279_v13 = vpack.c.bf16 %v252_v10, %v252_v10  ;;  %v287_v14 = vpack.c.bf16 %v260_v11, %v260_v11 }
  0xa4   :  { %322 = vst.msk [vmem:[%s650_s3 + $0x48] sm:$0xf] %vm303_vm3, %v294_v12 }
  0xa5   :  { %307 = vst.msk [vmem:[%s650_s3 + $0xc] sm:$0xf] %vm303_vm3, %v279_v13  ;;  %v227_v16 = vpop.f32.mrf.mxu2  ;;  %v247_v17 = vpop.f32.mrf.mxu3 }
  0xa6   :  { %315 = vst.msk [vmem:[%s650_s3 + $0x2c] sm:$0xf] %vm303_vm3, %v287_v14  ;;  %v228_v18 = vadd.f32 %v511_v23, %v227_v16  ;;  %v190_v19 = vpop.f32.mrf.mxu0  ;;  %v210_v20 = vpop.f32.mrf.mxu1 }
  0xa7   :  { %v191_v21 = vadd.f32 %v511_v23, %v190_v19  ;;  %v211_v22 = vadd.f32 %v511_v23, %v210_v20  ;;  %331 = vst.msk [vmem:[%s650_s3 + $0x68] sm:$0x1] %vm330_vm4, %v302_v15 }
  0xa8   :  { %v268_v24 = vmax.f32 %v228_v18, 0.0 }
  0xa9   :  { %v253_v25 = vmax.f32 %v191_v21, 0.0  ;;  %v261_v26 = vmax.f32 %v211_v22, 0.0 }
  0xaa   :  { %v295_v27 = vpack.c.bf16 %v268_v24, %v268_v24 }
  0xab   :  { %v280_v28 = vpack.c.bf16 %v253_v25, %v253_v25  ;;  %v288_v29 = vpack.c.bf16 %v261_v26, %v261_v26 }
  0xac   :  { %323 = vst.msk [vmem:[%s650_s3 + $0x4c] sm:$0xf] %vm303_vm3, %v295_v27 }
  0xad   :  { %308 = vst.msk [vmem:[%s650_s3 + $0x10] sm:$0xf] %vm303_vm3, %v280_v28  ;;  %v230_v30 = vpop.f32.mrf.mxu2 }
  0xae   :  { %316 = vst.msk [vmem:[%s650_s3 + $0x30] sm:$0xf] %vm303_vm3, %v288_v29  ;;  %v231_v31 = vadd.f32 %v511_v23, %v230_v30  ;;  %v192_v32 = vpop.f32.mrf.mxu0  ;;  %v212_v33 = vpop.f32.mrf.mxu1 }
  0xaf   :  { %v193_v34 = vadd.f32 %v511_v23, %v192_v32  ;;  %v213_v35 = vadd.f32 %v511_v23, %v212_v33 }
  0xb0   :  { %v269_v36 = vmax.f32 %v231_v31, 0.0 }
  0xb1   :  { %v254_v37 = vmax.f32 %v193_v34, 0.0  ;;  %v262_v38 = vmax.f32 %v213_v35, 0.0 }
  0xb2   :  { %v296_v39 = vpack.c.bf16 %v269_v36, %v269_v36 }
  0xb3   :  { %v281_v40 = vpack.c.bf16 %v254_v37, %v254_v37  ;;  %v289_v41 = vpack.c.bf16 %v262_v38, %v262_v38 }
  0xb4   :  { %324 = vst.msk [vmem:[%s650_s3 + $0x50] sm:$0xf] %vm303_vm3, %v296_v39 }
  0xb5   :  { %309 = vst.msk [vmem:[%s650_s3 + $0x14] sm:$0xf] %vm303_vm3, %v281_v40  ;;  %v232_v42 = vpop.f32.mrf.mxu2 }
  0xb6   :  { %317 = vst.msk [vmem:[%s650_s3 + $0x34] sm:$0xf] %vm303_vm3, %v289_v41  ;;  %v233_v43 = vadd.f32 %v511_v23, %v232_v42  ;;  %v195_v44 = vpop.f32.mrf.mxu0  ;;  %v215_v45 = vpop.f32.mrf.mxu1 }
  0xb7   :  { %v196_v46 = vadd.f32 %v511_v23, %v195_v44  ;;  %v216_v47 = vadd.f32 %v511_v23, %v215_v45 }
  0xb8   :  { %v270_v48 = vmax.f32 %v233_v43, 0.0 }
  0xb9   :  { %v255_v49 = vmax.f32 %v196_v46, 0.0  ;;  %v263_v50 = vmax.f32 %v216_v47, 0.0 }
  0xba   :  { %v297_v51 = vpack.c.bf16 %v270_v48, %v270_v48 }
  0xbb   :  { %v282_v52 = vpack.c.bf16 %v255_v49, %v255_v49  ;;  %v290_v53 = vpack.c.bf16 %v263_v50, %v263_v50 }
  0xbc   :  { %325 = vst.msk [vmem:[%s650_s3 + $0x54] sm:$0xf] %vm303_vm3, %v297_v51 }
  0xbd   :  { %310 = vst.msk [vmem:[%s650_s3 + $0x18] sm:$0xf] %vm303_vm3, %v282_v52  ;;  %v235_v54 = vpop.f32.mrf.mxu2 }
  0xbe   :  { %318 = vst.msk [vmem:[%s650_s3 + $0x38] sm:$0xf] %vm303_vm3, %v290_v53  ;;  %v236_v55 = vadd.f32 %v511_v23, %v235_v54  ;;  %v197_v56 = vpop.f32.mrf.mxu0  ;;  %v217_v57 = vpop.f32.mrf.mxu1 }
  0xbf   :  { %v198_v58 = vadd.f32 %v511_v23, %v197_v56  ;;  %v218_v59 = vadd.f32 %v511_v23, %v217_v57 }
  0xc0   :  { %v271_v60 = vmax.f32 %v236_v55, 0.0 }
  0xc1   :  { %v256_v61 = vmax.f32 %v198_v58, 0.0  ;;  %v264_v62 = vmax.f32 %v218_v59, 0.0 }
  0xc2   :  { %v298_v63 = vpack.c.bf16 %v271_v60, %v271_v60 }
  0xc3   :  { %v283_v0 = vpack.c.bf16 %v256_v61, %v256_v61  ;;  %v291_v1 = vpack.c.bf16 %v264_v62, %v264_v62 }
  0xc4   :  { %326 = vst.msk [vmem:[%s650_s3 + $0x58] sm:$0xf] %vm303_vm3, %v298_v63 }
  0xc5   :  { %311 = vst.msk [vmem:[%s650_s3 + $0x1c] sm:$0xf] %vm303_vm3, %v283_v0  ;;  %v237_v2 = vpop.f32.mrf.mxu2 }
  0xc6   :  { %319 = vst.msk [vmem:[%s650_s3 + $0x3c] sm:$0xf] %vm303_vm3, %v291_v1  ;;  %v238_v3 = vadd.f32 %v511_v23, %v237_v2 }
  0xc8   :  { %v272_v4 = vmax.f32 %v238_v3, 0.0 }
  0xca   :  { %v299_v5 = vpack.c.bf16 %v272_v4, %v272_v4 }
  0xcc   :  { %327 = vst.msk [vmem:[%s650_s3 + $0x5c] sm:$0xf] %vm303_vm3, %v299_v5 }

// kernel: conformer_encoder_forward.24
= control target key start
LH: loop header
LB: loop body
LE: loop exit
PB: predicated region body
PF: predicated region fallthrough
CT: control target
= control target key end

     0   :  { %vm220_vm0 = vcmask 261120   ;;  %vm314_vm1 = vcmask 257024   ;;  %vm320_vm2 = vcmask 253952   ;;  %s630_s1 = inlined_call_operand.vmem [shape: bf16[288,32], index: 1, kind: input, shape index: {}]   ;;  %s631_s0 = inlined_call_operand.vmem [shape: bf16[42,288], index: 0, kind: input, shape index: {}]   ;;  %s632_s2 = inlined_call_operand.vmem [shape: f32[1,32], index: 2, kind: input, shape index: {}]   ;;  %s633_s3 = inlined_call_operand.vmem [shape: bf16[42,32], index: 3, kind: output, shape index: {}]  }
   0x1   :  { %v453_v0 = vld [vmem:[%s630_s1 + $0x38] sm:$0xff]  ;;  %v452_v2 = vld [vmem:[%s630_s1 + $0x30] sm:$0xff]  ;;  %v463_v3 = vld [vmem:[%s630_s1 + $0x88] sm:$0xff] }
   0x2   :  { %v461_v1 = vld [vmem:[%s630_s1 + $0x78] sm:$0xff]  ;;  %230 = vmatpush.bf16.msra.mxu0 %v453_v0  ;;  %464 = vmatpush.bf16.msra.mxu3 %v453_v0  ;;  %v460_v4 = vld [vmem:[%s630_s1 + $0x70] sm:$0xff]  ;;  %v462_v5 = vld [vmem:[%s630_s1 + $0x80] sm:$0xff] }
   0x3   :  { %254 = vmatpush.bf16.msra.mxu1 %v461_v1  ;;  %284 = vmatpush.bf16.msra.mxu2 %v463_v3  ;;  %v336_v6 = vld [vmem:[%s631_s0 + $0x8] sm:$0xf]  ;;  %v439_v7 = vld [vmem:[%s631_s0 + $0x10] sm:$0xf0]  ;;  %v450_v11 = vld [vmem:[%s630_s1 + $0x20] sm:$0xff] }
   0x4   :  { %v451_v8 = vld [vmem:[%s630_s1 + $0x28] sm:$0xff]  ;;  %v337_v10 = vor.u32 %v439_v7, %v336_v6  ;;  %v458_v12 = vld [vmem:[%s630_s1 + $0x60] sm:$0xff]  ;;  %v449_v13 = vld [vmem:[%s630_s1 + $0x18] sm:$0xff] }
   0x5   :  { %v459_v9 = vld [vmem:[%s630_s1 + $0x68] sm:$0xff]  ;;  %v457_v14 = vld [vmem:[%s630_s1 + $0x58] sm:$0xff]  ;;  %v448_v15 = vld [vmem:[%s630_s1 + $0x10] sm:$0xff] }
   0x6   :  { %231 = vmatpush.bf16.msra.mxu0 %v452_v2  ;;  %465 = vmatpush.bf16.msra.mxu3 %v452_v2  ;;  %v456_v16 = vld [vmem:[%s630_s1 + $0x50] sm:$0xff]  ;;  %v348_v17 = vld [vmem:[%s631_s0 + $0x20] sm:$0xf]  ;;  %v442_v18 = vld [vmem:[%s631_s0 + $0x28] sm:$0xf0] }
   0x7   :  { %255 = vmatpush.bf16.msra.mxu1 %v460_v4  ;;  %285 = vmatpush.bf16.msra.mxu2 %v462_v5  ;;  %v447_v19 = vld [vmem:[%s630_s1 + $0x8] sm:$0xff]  ;;  %v349_v21 = vor.u32 %v442_v18, %v348_v17  ;;  %v446_v22 = vld [vmem:[%s630_s1] sm:$0xff]  ;;  %v340_v25 = vld [vmem:[%s631_s0 + $0x18] sm:$0xf] }
   0x8   :  { %v455_v20 = vld [vmem:[%s630_s1 + $0x48] sm:$0xff]  ;;  %v328_v23 = vld [vmem:[%s631_s0] sm:$0xf]  ;;  %v441_v26 = vld [vmem:[%s631_s0 + $0x20] sm:$0xf0] }
   0x9   :  { %v438_v24 = vld [vmem:[%s631_s0 + $0x8] sm:$0xf0]  ;;  %v454_v27 = vld [vmem:[%s630_s1 + $0x40] sm:$0xff]  ;;  %v330_v29 = vld [vmem:[%s631_s0 + $0xc] sm:$0xf0]  ;;  %v341_v31 = vor.u32 %v441_v26, %v340_v25 }
   0xa   :  { %232 = vmatpush.bf16.msra.mxu0 %v451_v8  ;;  %466 = vmatpush.bf16.msra.mxu3 %v451_v8  ;;  %v437_v28 = vld [vmem:[%s631_s0 + $0x4] sm:$0xf]  ;;  %v329_v30 = vor.u32 %v438_v24, %v328_v23  ;;  %v360_v33 = vld [vmem:[%s631_s0 + $0x38] sm:$0xf]  ;;  %v352_v36 = vld [vmem:[%s631_s0 + $0x30] sm:$0xf] }
   0xb   :  { %256 = vmatpush.bf16.msra.mxu1 %v459_v9  ;;  %434 = vmatmul.msk.bf16.vlgmr.msra.gmra.mxu2 %vm220_vm0, %v337_v10  ;;  %v333_v32 = vor.u32 %v437_v28, %v330_v29  ;;  %v445_v34 = vld [vmem:[%s631_s0 + $0x40] sm:$0x10]  ;;  %v444_v37 = vld [vmem:[%s631_s0 + $0x38] sm:$0x10]  ;;  %v342_v39 = vld [vmem:[%s631_s0 + $0x24] sm:$0xf0] }
   0xc   :  { %v361_v35 = vor.u32 %v445_v34, %v360_v33  ;;  %v440_v38 = vld [vmem:[%s631_s0 + $0x1c] sm:$0xf]  ;;  %v353_v40 = vor.u32 %v444_v37, %v352_v36  ;;  %v443_v42 = vld [vmem:[%s631_s0 + $0x34] sm:$0xf]  ;;  %v354_v43 = vld [vmem:[%s631_s0 + $0x3c] sm:$0x10] }
   0xd   :  { %v345_v41 = vor.u32 %v440_v38, %v342_v39  ;;  %v357_v44 = vor.u32 %v443_v42, %v354_v43  ;;  %v472_v46 = vld [vmem:[%s632_s2] ss:$0 sm:$0xff] }
   0xe   :  { %233 = vmatpush.bf16.msra.mxu0 %v450_v11  ;;  %467 = vmatpush.bf16.msra.mxu3 %v450_v11 }
   0xf   :  { %257 = vmatpush.bf16.msra.mxu1 %v458_v12 }
  0x12   :  { %234 = vmatpush.bf16.msra.mxu0 %v449_v13  ;;  %468 = vmatpush.bf16.msra.mxu3 %v449_v13 }
  0x13   :  { %258 = vmatpush.bf16.msra.mxu1 %v457_v14 }
  0x16   :  { %235 = vmatpush.bf16.msra.mxu0 %v448_v15  ;;  %469 = vmatpush.bf16.msra.mxu3 %v448_v15 }
  0x17   :  { %259 = vmatpush.bf16.msra.mxu1 %v456_v16 }
  0x1a   :  { %236 = vmatpush.bf16.msra.mxu0 %v447_v19  ;;  %470 = vmatpush.bf16.msra.mxu3 %v447_v19 }
  0x1b   :  { %260 = vmatpush.bf16.msra.mxu1 %v455_v20  ;;  %435 = vmatmul.msk.bf16.gmra.mxu2 %vm220_vm0, %v349_v21 }
  0x1e   :  { %237 = vmatpush.bf16.msra.mxu0 %v446_v22  ;;  %471 = vmatpush.bf16.msra.mxu3 %v446_v22 }
  0x1f   :  { %261 = vmatpush.bf16.msra.mxu1 %v454_v27 }
  0x21   :  { %238 = vmatmul.bf16.vlgmr.msra.gmra.mxu0 %v329_v30  ;;  %243 = vmatmul.bf16.vlgmr.msra.gmra.mxu3 %v341_v31 }
  0x22   :  { %262 = vmatmul.bf16.vlgmr.msra.gmra.mxu1 %v333_v32 }
  0x2b   :  { %436 = vmatmul.msk.bf16.gmra.mxu2 %vm220_vm0, %v361_v35 }
  0x31   :  { %248 = vmatmul.bf16.gmra.mxu3 %v353_v40 }
  0x32   :  { %267 = vmatmul.bf16.gmra.mxu1 %v345_v41 }
  0x42   :  { %272 = vmatmul.bf16.gmra.mxu1 %v357_v44 }
  0x8e   :  { %v287_v45 = vpop.f32.mrf.mxu2 }
  0x96   :  { %v289_v51 = vpop.f32.mrf.mxu2 }
  0x9e   :  { %v239_v47 = vpop.f32.mrf.mxu0  ;;  %v292_v61 = vpop.f32.mrf.mxu2 }
  0x9f   :  { %v240_v48 = vadd.f32 %v472_v46, %v239_v47  ;;  %v263_v49 = vpop.f32.mrf.mxu1 }
  0xa1   :  { %v264_v50 = vadd.f32 %v263_v49, %v240_v48 }
  0xa3   :  { %v288_v52 = vadd.f32 %v287_v45, %v264_v50 }
  0xa4   :  { %v244_v54 = vpop.f32.mrf.mxu3 }
  0xa5   :  { %v302_v53 = vmax.f32 %v288_v52, 0.0  ;;  %v245_v62 = vadd.f32 %v472_v46, %v244_v54 }
  0xa6   :  { %v241_v55 = vpop.f32.mrf.mxu0  ;;  %v294_v6 = vpop.f32.mrf.mxu2 }
  0xa7   :  { %v308_v56 = vpack.c.bf16 %v302_v53, %v302_v53  ;;  %v242_v57 = vadd.f32 %v472_v46, %v241_v55  ;;  %v265_v58 = vpop.f32.mrf.mxu1 }
  0xa9   :  { %315 = vst.msk [vmem:[%s633_s3] sm:$0xf] %vm314_vm1, %v308_v56  ;;  %v266_v59 = vadd.f32 %v265_v58, %v242_v57 }
  0xab   :  { %v290_v60 = vadd.f32 %v289_v51, %v266_v59 }
  0xac   :  { %v246_v1 = vpop.f32.mrf.mxu3 }
  0xad   :  { %v303_v63 = vmax.f32 %v290_v60, 0.0  ;;  %v247_v7 = vadd.f32 %v472_v46, %v246_v1 }
  0xae   :  { %v297_v16 = vpop.f32.mrf.mxu2 }
  0xaf   :  { %v309_v0 = vpack.c.bf16 %v303_v63, %v303_v63  ;;  %v268_v2 = vpop.f32.mrf.mxu1 }
  0xb0   :  { %v269_v3 = vadd.f32 %v268_v2, %v245_v62 }
  0xb1   :  { %316 = vst.msk [vmem:[%s633_s3 + $0x4] sm:$0xf] %vm314_vm1, %v309_v0 }
  0xb2   :  { %v293_v4 = vadd.f32 %v292_v61, %v269_v3 }
  0xb4   :  { %v304_v5 = vmax.f32 %v293_v4, 0.0  ;;  %v249_v11 = vpop.f32.mrf.mxu3 }
  0xb5   :  { %v250_v13 = vadd.f32 %v472_v46, %v249_v11 }
  0xb6   :  { %v310_v8 = vpack.c.bf16 %v304_v5, %v304_v5  ;;  %v299_v26 = vpop.f32.mrf.mxu2 }
  0xb7   :  { %v270_v9 = vpop.f32.mrf.mxu1 }
  0xb8   :  { %317 = vst.msk [vmem:[%s633_s3 + $0x8] sm:$0xf] %vm314_vm1, %v310_v8  ;;  %v271_v10 = vadd.f32 %v270_v9, %v247_v7 }
  0xba   :  { %v295_v12 = vadd.f32 %v294_v6, %v271_v10 }
  0xbc   :  { %v305_v14 = vmax.f32 %v295_v12, 0.0  ;;  %v251_v20 = vpop.f32.mrf.mxu3 }
  0xbd   :  { %v252_v22 = vadd.f32 %v472_v46, %v251_v20 }
  0xbe   :  { %v311_v15 = vpack.c.bf16 %v305_v14, %v305_v14 }
  0xbf   :  { %v273_v17 = vpop.f32.mrf.mxu1 }
  0xc0   :  { %318 = vst.msk [vmem:[%s633_s3 + $0xc] sm:$0xf] %vm314_vm1, %v311_v15  ;;  %v274_v18 = vadd.f32 %v273_v17, %v250_v13 }
  0xc2   :  { %v298_v19 = vadd.f32 %v297_v16, %v274_v18 }
  0xc4   :  { %v306_v21 = vmax.f32 %v298_v19, 0.0 }
  0xc6   :  { %v312_v23 = vpack.c.bf16 %v306_v21, %v306_v21 }
  0xc7   :  { %v275_v24 = vpop.f32.mrf.mxu1 }
  0xc8   :  { %319 = vst.msk [vmem:[%s633_s3 + $0x10] sm:$0xf] %vm314_vm1, %v312_v23  ;;  %v276_v25 = vadd.f32 %v275_v24, %v252_v22 }
  0xca   :  { %v300_v27 = vadd.f32 %v299_v26, %v276_v25 }
  0xcc   :  { %v307_v28 = vmax.f32 %v300_v27, 0.0 }
  0xce   :  { %v313_v29 = vpack.c.bf16 %v307_v28, %v307_v28 }
  0xd0   :  { %321 = vst.msk [vmem:[%s633_s3 + $0x14] sm:$0x1] %vm320_vm2, %v313_v29 }

// kernel: conformer_encoder_forward.25
= control target key start
LH: loop header
LB: loop body
LE: loop exit
PB: predicated region body
PF: predicated region fallthrough
CT: control target
= control target key end

     0   :  { %s521_s15 = smov 0   ;;  %s523_s16 = smov 0   ;;  %s578_s0 = inlined_call_operand.vmem [shape: bf16[2,7,96], index: 0, kind: input, shape index: {}]   ;;  %s579_s1 = inlined_call_operand.vmem [shape: bf16[96,32], index: 1, kind: input, shape index: {}]   ;;  %s580_s2 = inlined_call_operand.vmem [shape: f32[1,32], index: 2, kind: input, shape index: {}]   ;;  %s581_s3 = inlined_call_operand.vmem [shape: f32[7,32], index: 3, kind: input, shape index: {}]   ;;  %s582_s4 = inlined_call_operand.vmem [shape: f32[2,7,32], index: 4, kind: output, shape index: {}]  }
   0x1   :  { %s525_s17 = smov 0  }
   0x2 LB: > { %s26_s18 = sadd.s32 1, %s490_s16  ;;  %p411_p0 = scmp.ge.s32.totalorder %s494_s17, 1  ;;  %s494_s17 = sphi %s525_s17, %s14_s17   ;;  %s490_s16 = sphi %s523_s16, %s584_s16   ;;  %s486_s15 = sphi %s521_s15, %s583_s15  }
   0x3   : > { %p28_p1 = scmp.ge.s32.totalorder %s26_s18, 2  ;;  %p189_p2 = scmp.lt.s32.totalorder %s494_s17, 3 }
   0x5   : > { %s586_s18 = smov (%p28_p1, %s26_s18), 0  ;;  %p190_p3 = pnand %p411_p0, %p189_p2 }
   0x6   : > { %p223_p4 = scmp.lt.s32.totalorder (!%p190_p3), %s486_s15, 1 }
   0x7   : > { %193 = sbr.rel (%p190_p3) target bundleno = 170 (0xaa), region = 36 }
   0xc   : > { %v446_v0 = vld [vmem:[%s579_s1 + $0x28] sm:$0xff]  ;;  %v445_v1 = vld [vmem:[%s579_s1 + $0x20] sm:$0xff]  ;;  %v444_v2 = vld [vmem:[%s579_s1 + $0x18] sm:$0xff]  ;;  %s588_s15 = smov (!%p223_p4, %s486_s15), 1  ;;  %vm295_vm0 = vcmask 785408   ;;  %vm314_vm1 = vcmask 260096  }
   0xd   : > { %301 = vmatpush.bf16.msra.mxu0 %v446_v0  ;;  %v443_v3 = vld [vmem:[%s579_s1 + $0x10] sm:$0xff]  ;;  %v442_v4 = vld [vmem:[%s579_s1 + $0x8] sm:$0xff]  ;;  %s412_s29 = sshll.u32 %s588_s15, 2  ;;  %v441_v5 = vld [vmem:[%s579_s1] sm:$0xff]  ;;  %s413_s11 = sshll.u32 %s588_s15, 3 }
   0xe   : > { %s229_s8 = scalar_lea.vmem %s578_s0, %s412_s29  ;;  %v471_v7 = vld [vmem:[%s580_s2] ss:$0 sm:$0xff]  ;;  %s240_s20 = scalar_lea.vmem %s582_s4, %s413_s11 }
   0xf   : > { %v242_v6 = vld [vmem:[%s229_s8] sm:$0xf] }
  0x10   : > { %v312_v9 = vld [vmem:[%s581_s3] sm:$0x7f] }
  0x11   : > { %302 = vmatpush.bf16.msra.mxu0 %v445_v1 }
  0x15   : > { %303 = vmatpush.bf16.msra.mxu0 %v444_v2 }
  0x19   : > { %304 = vmatpush.bf16.msra.mxu0 %v443_v3 }
  0x1d   : > { %305 = vmatpush.bf16.msra.mxu0 %v442_v4 }
  0x21   : > { %306 = vmatpush.bf16.msra.mxu0 %v441_v5 }
  0x24   : > { %438 = vmatmul.msk.bf16.vlgmr.msra.gmra.mxu0 %vm295_vm0, %v242_v6 }
  0xa1   : > { %v308_v8 = vpop.f32.mrf.mxu0 }
  0xa2   : > { %v309_v10 = vadd.f32 %v471_v7, %v308_v8 }
  0xa4   : > { %v313_v11 = vadd.f32 %v312_v9, %v309_v10 }
  0xa6   : > { %315 = vst.msk [vmem:[%s240_s20] sm:$0x7f] %vm314_vm1, %v313_v11 }
  0xa9   : > { %v310_v12 = vpop.f32.mrf.mxu0 }
  0xaa PF: > { %s14_s17 = sadd.s32 1, %s494_s17   ;;  %s583_s15 = smov %s490_s16 }
  0xab   : > { %p11_p5 = scmp.ge.s32.totalorder %s14_s17, 4   ;;  %s584_s16 = smov %s586_s18 }
  0xad   :  { %13 = sbr.rel (!%p11_p5) target bundleno = 2 (0x2), region = 69 }

// kernel: conformer_encoder_forward.27
= control target key start
LH: loop header
LB: loop body
LE: loop exit
PB: predicated region body
PF: predicated region fallthrough
CT: control target
= control target key end

     0   :  { %vm61_vm0 = vcmask 523264   ;;  %vm85_vm1 = vcmask 261120   ;;  %vm87_vm2 = vcmask 259072   ;;  %s178_s1 = inlined_call_operand.vmem [shape: bf16[64,32], index: 1, kind: input, shape index: {}]   ;;  %s179_s2 = inlined_call_operand.vmem [shape: f32[1,32], index: 2, kind: input, shape index: {}]   ;;  %s180_s0 = inlined_call_operand.vmem [shape: bf16[14,64], index: 0, kind: input, shape index: {}]   ;;  %s181_s3 = inlined_call_operand.vmem [shape: f32[14,32], index: 3, kind: input, shape index: {}]   ;;  %s182_s4 = inlined_call_operand.vmem [shape: f32[14,32], index: 4, kind: output, shape index: {}]  }
   0x1   :  { %v118_v0 = vld [vmem:[%s178_s1 + $0x18] sm:$0xff]  ;;  %v117_v1 = vld [vmem:[%s178_s1 + $0x10] sm:$0xff]  ;;  %v116_v2 = vld [vmem:[%s178_s1 + $0x8] sm:$0xff] }
   0x2   :  { %69 = vmatpush.bf16.msra.mxu0 %v118_v0  ;;  %v115_v3 = vld [vmem:[%s178_s1] sm:$0xff]  ;;  %v80_v15 = vld [vmem:[%s181_s3 + $0x8] sm:$0x3f] }
   0x3   :  { %v95_v4 = vld [vmem:[%s180_s0] sm:$0xf]  ;;  %v114_v5 = vld [vmem:[%s180_s0] sm:$0x70] }
   0x4   :  { %v96_v6 = vor.u32 %v114_v5, %v95_v4  ;;  %v119_v7 = vld [vmem:[%s179_s2] ss:$0 sm:$0xff] }
   0x5   :  { %v79_v10 = vld [vmem:[%s181_s3] sm:$0xff] }
   0x6   :  { %70 = vmatpush.bf16.msra.mxu0 %v117_v1 }
   0xa   :  { %71 = vmatpush.bf16.msra.mxu0 %v116_v2 }
   0xe   :  { %72 = vmatpush.bf16.msra.mxu0 %v115_v3 }
  0x11   :  { %113 = vmatmul.msk.bf16.vlgmr.msra.gmra.mxu0 %vm61_vm0, %v96_v6 }
  0x8e   :  { %v74_v8 = vpop.f32.mrf.mxu0 }
  0x8f   :  { %v75_v9 = vadd.f32 %v119_v7, %v74_v8 }
  0x91   :  { %v81_v11 = vmul.f32 0.5, %v75_v9 }
  0x93   :  { %v83_v12 = vadd.f32 %v81_v11, %v79_v10 }
  0x95   :  { %86 = vst.msk [vmem:[%s182_s4] sm:$0xff] %vm85_vm1, %v83_v12 }
  0x96   :  { %v76_v13 = vpop.f32.mrf.mxu0 }
  0x97   :  { %v77_v14 = vadd.f32 %v119_v7, %v76_v13 }
  0x99   :  { %v82_v16 = vmul.f32 0.5, %v77_v14 }
  0x9b   :  { %v84_v17 = vadd.f32 %v82_v16, %v80_v15 }
  0x9d   :  { %88 = vst.msk [vmem:[%s182_s4 + $0x8] sm:$0x3f] %vm87_vm2, %v84_v17 }

// kernel: conformer_encoder_forward.26
= control target key start
LH: loop header
LB: loop body
LE: loop exit
PB: predicated region body
PF: predicated region fallthrough
CT: control target
= control target key end

     0   :  { %vm23_vm0 = vcmask 261120   ;;  %vm27_vm1 = vcmask 259072   ;;  %v177_v4 = vmov 32.0   ;;  %vm140_vm9 = vcmask 519168   ;;  %s240_s0 = inlined_call_operand.vmem [shape: f32[14,32], index: 0, kind: input, shape index: {}]   ;;  %s241_s1 = inlined_call_operand.vmem [shape: f32[1,32], index: 1, kind: input, shape index: {}]   ;;  %s242_s2 = inlined_call_operand.vmem [shape: f32[1,32], index: 2, kind: input, shape index: {}]   ;;  %s243_s4 = inlined_call_operand.vmem [shape: f32[1,64], index: 4, kind: input, shape index: {}]   ;;  %s244_s3 = inlined_call_operand.vmem [shape: bf16[32,64], index: 3, kind: input, shape index: {}]   ;;  %s245_s5 = inlined_call_operand.vmem [shape: bf16[14,64], index: 5, kind: output, shape index: {}]  }
   0x1   :  { %v21_v0 = vld [vmem:[%s240_s0] sm:$0xff]  ;;  %v22_v2 = vld [vmem:[%s240_s0 + $0x8] sm:$0x3f]  ;;  %163 = vrcp.f32 %v177_v4  ;;  %vm142_vm10 = vcmask 518144  }
   0x2   :  { %v24_v1 = vsel %vm23_vm0, %v21_v0, 0.0  ;;  %v28_v3 = vsel %vm27_vm1, %v22_v2, 0.0  ;;  %v158_v21 = vld [vmem:[%s244_s3 + $0x8] sm:$0xff]  ;;  %v157_v23 = vld [vmem:[%s244_s3] sm:$0xff] }
   0x3   :  { %25 = vadd.xlane.f32.xlu0 %v24_v1  ;;  %118 = vmatpush.bf16.msra.mxu0 %v158_v21  ;;  %v160_v42 = vld [vmem:[%s241_s1] ss:$0 sm:$0xff] }
   0x4   :  { %v161_v47 = vld [vmem:[%s242_s2] ss:$0 sm:$0xff] }
   0x5   :  { %v162_v52 = vld [vmem:[%s243_s4] ss:$0 sm:$0xff] }
   0x7   :  { %v164_v5 = vpop.eup %163  ;;  %119 = vmatpush.bf16.msra.mxu0 %v157_v23 }
   0x8   :  { %v32_v6 = vmul.f32 32.0, %v164_v5  ;;  %vm36_vm2 = vweird.f32 %v164_v5 }
   0xa   :  { %v33_v7 = vsub.f32 1.0, %v32_v6 }
   0xb   :  { %29 = vadd.xlane.f32.xlu0 %v28_v3 }
   0xc   :  { %v34_v8 = vmul.f32 %v164_v5, %v33_v7 }
   0xe   :  { %v35_v9 = vadd.f32 %v164_v5, %v34_v8 }
  0x10   :  { %v37_v10 = vsel %vm36_vm2, %v164_v5, %v35_v9 }
  0x76   :  { %v26_v11 = vpop.xlane.xlu0 %25 }
  0x77   :  { %v38_v12 = vmul.f32 %v37_v10, %v26_v11 }
  0x79   :  { %v40_v13 = vsub.f32 %v21_v0, %v38_v12 }
  0x7b   :  { %v42_v14 = vmul.f32 %v40_v13, %v40_v13 }
  0x7d   :  { %v44_v15 = vsel %vm23_vm0, %v42_v14, 0.0 }
  0x7e   :  { %45 = vadd.xlane.f32.xlu1 %v44_v15  ;;  %v30_v16 = vpop.xlane.xlu0 %29 }
  0x7f   :  { %v39_v17 = vmul.f32 %v37_v10, %v30_v16 }
  0x81   :  { %v41_v18 = vsub.f32 %v22_v2, %v39_v17 }
  0x83   :  { %v43_v19 = vmul.f32 %v41_v18, %v41_v18 }
  0x85   :  { %v47_v20 = vsel %vm27_vm1, %v43_v19, 0.0 }
  0x86   :  { %48 = vadd.xlane.f32.xlu1 %v47_v20 }
  0xf1   :  { %v46_v22 = vpop.xlane.xlu1 %45 }
  0xf2   :  { %v50_v24 = vmul.f32 %v46_v22, %v37_v10 }
  0xf4   :  { %v52_v25 = vadd.f32 1e-05, %v50_v24 }
  0xf6   :  { %165 = vrsqrt.f32 %v52_v25  ;;  %vm60_vm4 = vweird.f32 %v52_v25 }
  0xf9   :  { %v49_v26 = vpop.xlane.xlu1 %48 }
  0xfa   :  { %v51_v27 = vmul.f32 %v49_v26, %v37_v10 }
  0xfc   :  { %v166_v28 = vpop.eup %165  ;;  %v53_v29 = vadd.f32 1e-05, %v51_v27 }
  0xfd   :  { %v55_v30 = vmul.f32 %v166_v28, %v52_v25  ;;  %vm61_vm3 = vweird.f32 %v166_v28 }
  0xfe   :  { %167 = vrsqrt.f32 %v53_v29  ;;  %vm62_vm5 = vmor %vm60_vm4, %vm61_vm3  ;;  %vm70_vm7 = vweird.f32 %v53_v29 }
  0xff   :  { %v56_v31 = vmul.f32 %v166_v28, %v55_v30 }
 0x101   :  { %v57_v32 = vmul.f32 0.5, %v56_v31 }
 0x103   :  { %v58_v33 = vsub.f32 1.5, %v57_v32 }
 0x104   :  { %v168_v34 = vpop.eup %167 }
 0x105   :  { %v59_v35 = vmul.f32 %v166_v28, %v58_v33  ;;  %v65_v36 = vmul.f32 %v168_v34, %v53_v29  ;;  %vm71_vm6 = vweird.f32 %v168_v34 }
 0x106   :  { %vm72_vm8 = vmor %vm70_vm7, %vm71_vm6 }
 0x107   :  { %v66_v37 = vmul.f32 %v168_v34, %v65_v36  ;;  %v63_v38 = vsel %vm62_vm5, %v166_v28, %v59_v35 }
 0x108   :  { %v74_v41 = vmul.f32 %v63_v38, %v40_v13 }
 0x109   :  { %v67_v39 = vmul.f32 0.5, %v66_v37 }
 0x10a   :  { %v80_v46 = vmul.f32 %v160_v42, %v74_v41 }
 0x10b   :  { %v68_v40 = vsub.f32 1.5, %v67_v39 }
 0x10c   :  { %v86_v49 = vadd.f32 %v161_v47, %v80_v46 }
 0x10d   :  { %v69_v43 = vmul.f32 %v168_v34, %v68_v40 }
 0x10f   :  { %v73_v44 = vsel %vm72_vm8, %v168_v34, %v69_v43 }
 0x110   :  { %v75_v45 = vmul.f32 %v73_v44, %v41_v18 }
 0x112   :  { %v81_v48 = vmul.f32 %v160_v42, %v75_v45 }
 0x114   :  { %v87_v50 = vadd.f32 %v161_v47, %v81_v48 }
 0x116   :  { %v88_v51 = vpack.c.bf16 %v87_v50, %v86_v49 }
 0x118   :  { %156 = vmatmul.msk.bf16.vlgmr.msra.gmra.mxu0 %vm23_vm0, %v88_v51 }
 0x195   :  { %v121_v53 = vpop.f32.mrf.mxu0 }
 0x196   :  { %v122_v54 = vadd.f32 %v162_v52, %v121_v53 }
 0x198   :  { %v126_v55 = vsub.f32 0.0, %v122_v54 }
 0x19a   :  { %v128_v56 = vmul.f32 1.442695, %v126_v55 }
 0x19c   :  { %169 = vpow2.f32 %v128_v56 }
 0x19d   :  { %v123_v57 = vpop.f32.mrf.mxu0 }
 0x19e   :  { %v124_v58 = vadd.f32 %v162_v52, %v123_v57 }
 0x1a0   :  { %v127_v59 = vsub.f32 0.0, %v124_v58 }
 0x1a2   :  { %v170_v60 = vpop.eup %169  ;;  %v130_v61 = vmul.f32 1.442695, %v127_v59 }
 0x1a3   :  { %v132_v62 = vadd.f32 1.0, %v170_v60 }
 0x1a4   :  { %171 = vpow2.f32 %v130_v61 }
 0x1a5   :  { %173 = vrcp.f32 %v132_v62 }
 0x1aa   :  { %v172_v63 = vpop.eup %171 }
 0x1ab   :  { %v174_v0 = vpop.eup %173  ;;  %v133_v1 = vadd.f32 1.0, %v172_v63 }
 0x1ac   :  { %v136_v2 = vmul.f32 %v174_v0, %v122_v54 }
 0x1ad   :  { %175 = vrcp.f32 %v133_v1 }
 0x1ae   :  { %v138_v3 = vpack.c.bf16 %v136_v2, %v136_v2 }
 0x1b0   :  { %141 = vst.msk [vmem:[%s245_s5] sm:$0xf] %vm140_vm9, %v138_v3 }
 0x1b3   :  { %v176_v4 = vpop.eup %175 }
 0x1b4   :  { %v137_v5 = vmul.f32 %v176_v4, %v124_v58 }
 0x1b6   :  { %v139_v6 = vpack.c.bf16 %v137_v5, %v137_v5 }
 0x1b8   :  { %143 = vst.msk [vmem:[%s245_s5 + $0x4] sm:$0x7] %vm142_vm10, %v139_v6 }

// kernel: conformer_encoder_forward.28
= control target key start
LH: loop header
LB: loop body
LE: loop exit
PB: predicated region body
PF: predicated region fallthrough
CT: control target
= control target key end

     0   :  { %vm23_vm0 = vcmask 261120   ;;  %vm27_vm1 = vcmask 259072   ;;  %v157_v4 = vmov 32.0   ;;  %vm128_vm9 = vcmask 781312   ;;  %s220_s0 = inlined_call_operand.vmem [shape: f32[14,32], index: 0, kind: input, shape index: {}]   ;;  %s221_s1 = inlined_call_operand.vmem [shape: f32[1,32], index: 1, kind: input, shape index: {}]   ;;  %s222_s2 = inlined_call_operand.vmem [shape: f32[1,32], index: 2, kind: input, shape index: {}]   ;;  %s223_s4 = inlined_call_operand.vmem [shape: f32[1,96], index: 4, kind: input, shape index: {}]   ;;  %s224_s3 = inlined_call_operand.vmem [shape: bf16[32,96], index: 3, kind: input, shape index: {}]   ;;  %s225_s5 = inlined_call_operand.vmem [shape: bf16[14,96], index: 5, kind: output, shape index: {}]  }
   0x1   :  { %v21_v0 = vld [vmem:[%s220_s0] sm:$0xff]  ;;  %v22_v2 = vld [vmem:[%s220_s0 + $0x8] sm:$0x3f]  ;;  %151 = vrcp.f32 %v157_v4  ;;  %vm130_vm10 = vcmask 780288  }
   0x2   :  { %v24_v1 = vsel %vm23_vm0, %v21_v0, 0.0  ;;  %v28_v3 = vsel %vm27_vm1, %v22_v2, 0.0  ;;  %v146_v21 = vld [vmem:[%s224_s3 + $0x8] sm:$0xff]  ;;  %v145_v23 = vld [vmem:[%s224_s3] sm:$0xff] }
   0x3   :  { %25 = vadd.xlane.f32.xlu0 %v24_v1  ;;  %118 = vmatpush.bf16.msra.mxu0 %v146_v21  ;;  %v148_v42 = vld [vmem:[%s221_s1] ss:$0 sm:$0xff] }
   0x4   :  { %v149_v47 = vld [vmem:[%s222_s2] ss:$0 sm:$0xff] }
   0x5   :  { %v150_v52 = vld [vmem:[%s223_s4] ss:$0 sm:$0xff] }
   0x7   :  { %v152_v5 = vpop.eup %151  ;;  %119 = vmatpush.bf16.msra.mxu0 %v145_v23 }
   0x8   :  { %v32_v6 = vmul.f32 32.0, %v152_v5  ;;  %vm36_vm2 = vweird.f32 %v152_v5 }
   0xa   :  { %v33_v7 = vsub.f32 1.0, %v32_v6 }
   0xb   :  { %29 = vadd.xlane.f32.xlu0 %v28_v3 }
   0xc   :  { %v34_v8 = vmul.f32 %v152_v5, %v33_v7 }
   0xe   :  { %v35_v9 = vadd.f32 %v152_v5, %v34_v8 }
  0x10   :  { %v37_v10 = vsel %vm36_vm2, %v152_v5, %v35_v9 }
  0x76   :  { %v26_v11 = vpop.xlane.xlu0 %25 }
  0x77   :  { %v38_v12 = vmul.f32 %v37_v10, %v26_v11 }
  0x79   :  { %v40_v13 = vsub.f32 %v21_v0, %v38_v12 }
  0x7b   :  { %v42_v14 = vmul.f32 %v40_v13, %v40_v13 }
  0x7d   :  { %v44_v15 = vsel %vm23_vm0, %v42_v14, 0.0 }
  0x7e   :  { %45 = vadd.xlane.f32.xlu1 %v44_v15  ;;  %v30_v16 = vpop.xlane.xlu0 %29 }
  0x7f   :  { %v39_v17 = vmul.f32 %v37_v10, %v30_v16 }
  0x81   :  { %v41_v18 = vsub.f32 %v22_v2, %v39_v17 }
  0x83   :  { %v43_v19 = vmul.f32 %v41_v18, %v41_v18 }
  0x85   :  { %v47_v20 = vsel %vm27_vm1, %v43_v19, 0.0 }
  0x86   :  { %48 = vadd.xlane.f32.xlu1 %v47_v20 }
  0xf1   :  { %v46_v22 = vpop.xlane.xlu1 %45 }
  0xf2   :  { %v50_v24 = vmul.f32 %v46_v22, %v37_v10 }
  0xf4   :  { %v52_v25 = vadd.f32 1e-05, %v50_v24 }
  0xf6   :  { %153 = vrsqrt.f32 %v52_v25  ;;  %vm60_vm4 = vweird.f32 %v52_v25 }
  0xf9   :  { %v49_v26 = vpop.xlane.xlu1 %48 }
  0xfa   :  { %v51_v27 = vmul.f32 %v49_v26, %v37_v10 }
  0xfc   :  { %v154_v28 = vpop.eup %153  ;;  %v53_v29 = vadd.f32 1e-05, %v51_v27 }
  0xfd   :  { %v55_v30 = vmul.f32 %v154_v28, %v52_v25  ;;  %vm61_vm3 = vweird.f32 %v154_v28 }
  0xfe   :  { %155 = vrsqrt.f32 %v53_v29  ;;  %vm62_vm5 = vmor %vm60_vm4, %vm61_vm3  ;;  %vm70_vm7 = vweird.f32 %v53_v29 }
  0xff   :  { %v56_v31 = vmul.f32 %v154_v28, %v55_v30 }
 0x101   :  { %v57_v32 = vmul.f32 0.5, %v56_v31 }
 0x103   :  { %v58_v33 = vsub.f32 1.5, %v57_v32 }
 0x104   :  { %v156_v34 = vpop.eup %155 }
 0x105   :  { %v59_v35 = vmul.f32 %v154_v28, %v58_v33  ;;  %v65_v36 = vmul.f32 %v156_v34, %v53_v29  ;;  %vm71_vm6 = vweird.f32 %v156_v34 }
 0x106   :  { %vm72_vm8 = vmor %vm70_vm7, %vm71_vm6 }
 0x107   :  { %v66_v37 = vmul.f32 %v156_v34, %v65_v36  ;;  %v63_v38 = vsel %vm62_vm5, %v154_v28, %v59_v35 }
 0x108   :  { %v74_v41 = vmul.f32 %v63_v38, %v40_v13 }
 0x109   :  { %v67_v39 = vmul.f32 0.5, %v66_v37 }
 0x10a   :  { %v80_v46 = vmul.f32 %v148_v42, %v74_v41 }
 0x10b   :  { %v68_v40 = vsub.f32 1.5, %v67_v39 }
 0x10c   :  { %v86_v49 = vadd.f32 %v149_v47, %v80_v46 }
 0x10d   :  { %v69_v43 = vmul.f32 %v156_v34, %v68_v40 }
 0x10f   :  { %v73_v44 = vsel %vm72_vm8, %v156_v34, %v69_v43 }
 0x110   :  { %v75_v45 = vmul.f32 %v73_v44, %v41_v18 }
 0x112   :  { %v81_v48 = vmul.f32 %v148_v42, %v75_v45 }
 0x114   :  { %v87_v50 = vadd.f32 %v149_v47, %v81_v48 }
 0x116   :  { %v88_v51 = vpack.c.bf16 %v87_v50, %v86_v49 }
 0x118   :  { %144 = vmatmul.msk.bf16.vlgmr.msra.gmra.mxu0 %vm23_vm0, %v88_v51 }
 0x195   :  { %v121_v53 = vpop.f32.mrf.mxu0 }
 0x196   :  { %v122_v54 = vadd.f32 %v150_v52, %v121_v53 }
 0x198   :  { %v126_v55 = vpack.c.bf16 %v122_v54, %v122_v54 }
 0x19a   :  { %129 = vst.msk [vmem:[%s225_s5] sm:$0xf] %vm128_vm9, %v126_v55 }
 0x19d   :  { %v123_v56 = vpop.f32.mrf.mxu0 }
 0x19e   :  { %v124_v57 = vadd.f32 %v150_v52, %v123_v56 }
 0x1a0   :  { %v127_v58 = vpack.c.bf16 %v124_v57, %v124_v57 }
 0x1a2   :  { %131 = vst.msk [vmem:[%s225_s5 + $0x4] sm:$0x7] %vm130_vm10, %v127_v58 }

// kernel: conformer_encoder_forward.30
= control target key start
LH: loop header
LB: loop body
LE: loop exit
PB: predicated region body
PF: predicated region fallthrough
CT: control target
= control target key end

     0   :  { %vm45_vm0 = vcmask 261120   ;;  %vm68_vm1 = vcmask 259072   ;;  %s143_s1 = inlined_call_operand.vmem [shape: bf16[32,32], index: 1, kind: input, shape index: {}]   ;;  %s144_s0 = inlined_call_operand.vmem [shape: bf16[14,32], index: 0, kind: input, shape index: {}]   ;;  %s145_s2 = inlined_call_operand.vmem [shape: f32[1,32], index: 2, kind: input, shape index: {}]   ;;  %s146_s3 = inlined_call_operand.vmem [shape: f32[14,32], index: 3, kind: input, shape index: {}]   ;;  %s147_s4 = inlined_call_operand.vmem [shape: f32[14,32], index: 4, kind: output, shape index: {}]  }
   0x1   :  { %v89_v0 = vld [vmem:[%s143_s1 + $0x8] sm:$0xff]  ;;  %v88_v1 = vld [vmem:[%s143_s1] sm:$0xff] }
   0x2   :  { %55 = vmatpush.bf16.msra.mxu0 %v89_v0  ;;  %v76_v2 = vld [vmem:[%s144_s0] sm:$0xf]  ;;  %v87_v3 = vld [vmem:[%s144_s0] sm:$0x70]  ;;  %v64_v11 = vld [vmem:[%s146_s3 + $0x8] sm:$0x3f] }
   0x3   :  { %v77_v4 = vor.u32 %v87_v3, %v76_v2  ;;  %v90_v5 = vld [vmem:[%s145_s2] ss:$0 sm:$0xff] }
   0x4   :  { %v63_v7 = vld [vmem:[%s146_s3] sm:$0xff] }
   0x6   :  { %56 = vmatpush.bf16.msra.mxu0 %v88_v1 }
   0x9   :  { %86 = vmatmul.msk.bf16.vlgmr.msra.gmra.mxu0 %vm45_vm0, %v77_v4 }
  0x86   :  { %v58_v6 = vpop.f32.mrf.mxu0 }
  0x87   :  { %v59_v8 = vadd.f32 %v90_v5, %v58_v6 }
  0x89   :  { %v65_v9 = vadd.f32 %v63_v7, %v59_v8 }
  0x8b   :  { %67 = vst.msk [vmem:[%s147_s4] sm:$0xff] %vm45_vm0, %v65_v9 }
  0x8e   :  { %v60_v10 = vpop.f32.mrf.mxu0 }
  0x8f   :  { %v61_v12 = vadd.f32 %v90_v5, %v60_v10 }
  0x91   :  { %v66_v13 = vadd.f32 %v64_v11, %v61_v12 }
  0x93   :  { %69 = vst.msk [vmem:[%s147_s4 + $0x8] sm:$0x3f] %vm68_vm1, %v66_v13 }

// kernel: conformer_encoder_forward.29
= control target key start
LH: loop header
LB: loop body
LE: loop exit
PB: predicated region body
PF: predicated region fallthrough
CT: control target
= control target key end

     0   :  { %s526_s12 = smov [#allocation4]   ;;  %s640_s0 = inlined_call_operand.vmem [shape: s32[2], index: 0, kind: input, shape index: {}]   ;;  %s641_s1 = inlined_call_operand.vmem [shape: bf16[2,7,96], index: 1, kind: input, shape index: {}]   ;;  %s642_s2 = inlined_call_operand.vmem [shape: bf16[2,7,32], index: 2, kind: output, shape index: {}]  }
   0x1   :  { %s8_s11 = sshll.u32 %s640_s0, 4  ;;  %s9_s11 = int_to_ptr.vmem [resolvable:$true] %s8_s11 }
   0x2   :  { %11 = dma.vmem_to_smem %s9_s11, 16, %s526_s12, [#allocation3] }
   0x3   :  { %520 = dma.done.wait [#allocation3], 16 }
   0x4   :  { %521 = vsyncadd [#allocation3], 4294967280 }
   0x5   :  { %14 = sfence }
   0x6   :  { %s560_s13 = smov 0  }
   0x7 LB: > { %s566_s14 = sadd.s32 4294967295, %s524_s13   ;;  %p451_p0 = scmp.ge.s32.totalorder %s524_s13, 1  ;;  %s524_s13 = sphi %s560_s13, %s20_s13  }
   0x8   : > { %p95_p1 = scmp.lt.s32.totalorder %s524_s13, 3 }
   0xa   : > { %p96_p2 = pnand %p451_p0, %p95_p1 }
   0xb   : > { %p113_p3 = scmp.lt.s32.totalorder (!%p96_p2), %s566_s14, 1  ;;  %s527_s19 = smov (!%p96_p2), 96  }
   0xc   : > { %99 = sbr.rel (%p96_p2) target bundleno = 1211 (0x4bb), region = 24  ;;  %s528_s20 = smov (!%p96_p2), 88  }
   0xd   : > { %s529_s21 = smov (!%p96_p2), 120   ;;  %s530_s22 = smov (!%p96_p2), 64  }
   0xe   : > { %s531_s23 = smov (!%p96_p2), 80   ;;  %s532_s24 = smov (!%p96_p2), 72  }
   0xf   : > { %s533_s25 = smov (!%p96_p2), 112   ;;  %s534_s26 = smov (!%p96_p2), 104  }
  0x10   : > { %s122_s27 = sld [smem:[#allocation4 + %s566_s14]] (!%p96_p2)  ;;  %s536_s28 = smov (!%p96_p2), 56  }
  0x11   : > { %s572_s0 = scalar_select %p113_p3, %s566_s14, 1  ;;  %vm133_vm0 = vcmask 64512   ;;  %v124_v8 = vlaneseq  ;;  %vm156_vm2 = vcmask 55296   ;;  %vm175_vm3 = vcmask 1042432  }
  0x12   : > { %vm176_vm4 = vcmask 1043456   ;;  %v535_v20 = vmov 65535   ;;  %vm171_vm5 = vcmask 56320   ;;  %s537_s29 = smov 40   ;;  %vm195_vm6 = vcmask 63488   ;;  %s538_s30 = smov 48  }
  0x13   : > { %s452_s15 = sshll.u32 %s572_s0, 2  ;;  %v125_v9 = vand.u32 127, %v124_v8  ;;  %v177_v21 = vsel %vm175_vm3, 4294967295, %v535_v20  ;;  %s539_s3 = smov 8   ;;  %vm258_vm7 = vcmask 129088   ;;  %vm321_vm8 = vcmask 194688  }
  0x14   : > { %s116_s18 = scalar_lea.vmem %s641_s1, %s452_s15  ;;  %v603_v22 = vsel %vm176_vm4, %v177_v21, 0  ;;  %s540_s4 = smov 16   ;;  %vm384_vm9 = vcmask 260288   ;;  %vm388_vm10 = vcmask 257024   ;;  %vm389_vm11 = vsmask.f32 3328 }
  0x15   : > { %v123_v0 = vld [vmem:[%s116_s18] sm:$0xf]  ;;  %s541_s5 = smov 24   ;;  %s120_s8 = scalar_lea.vmem %s642_s2, %s452_s15  ;;  %vm390_vm12 = vmand %vm388_vm10, %vm389_vm11 }
  0x16   : > { %v129_v1 = vunpack.c.l.b16 %v123_v0  ;;  %v126_v10 = vstv %s122_s27 }
  0x17   : > { %vm595_vm1 = vcmp.lt.s32.totalorder %v125_v9, %v126_v10 }
  0x18   : > { %v580_v2 = vpack.c.b16 %v129_v1, %v129_v1 }
  0x1a   : > { %131 = vrot.lane.b32.xlu0 %v580_v2, %s527_s19  ;;  %199 = vrot.lane.b32.xlu1 %v580_v2, %s528_s20 }
  0x1b   : > { %197 = vrot.lane.b32.xlu2 %v580_v2, %s529_s21 }
  0x23   : > { %169 = vrot.lane.b32.xlu2 %v580_v2, %s530_s22 }
  0x2b   : > { %262 = vrot.lane.b32.xlu2 %v580_v2, %s531_s23 }
  0x33   : > { %325 = vrot.lane.b32.xlu2 %v580_v2, %s532_s24 }
  0x3b   : > { %260 = vrot.lane.b32.xlu2 %v580_v2, %s533_s25 }
  0x43   : > { %323 = vrot.lane.b32.xlu2 %v580_v2, %s534_s26 }
  0x75   : > { %v198_v7 = vpop.permute.xlu2 %197 }
  0x7d   : > { %v170_v16 = vpop.permute.xlu2 %169 }
  0x7e   : > { %v180_v23 = vand.u32 %v603_v22, %v170_v16 }
  0x80   : > { %189 = vmatpush.bf16.msra.mxu1 %v180_v23 }
  0x85   : > { %v263_v17 = vpop.permute.xlu2 %262 }
  0x86   : > { %v268_v24 = vsel %vm133_vm0, %v263_v17, 0 }
  0x87   : > { %277 = vmatpush.bf16.xpose.msrb.mxu1 %v268_v24 }
  0x8c   : > { %v132_v3 = vpop.permute.xlu0 %131  ;;  %v200_v5 = vpop.permute.xlu1 %199 }
  0x8d   : > { %v138_v4 = vsel %vm133_vm0, %v132_v3, 0  ;;  %v205_v6 = vsel %vm133_vm0, %v200_v5, 0  ;;  %v326_v18 = vpop.permute.xlu2 %325 }
  0x8e   : > { %147 = vmatpush.bf16.xpose.msra.mxu0 %v138_v4  ;;  %214 = vmatpush.bf16.xpose.msra.mxu2 %v205_v6  ;;  %v331_v19 = vsel %vm133_vm0, %v326_v18, 0 }
  0x95   : > { %454 = vmatmul.msk.bf16.vlgmr.msra.gmra.mxu0 %vm133_vm0, %v123_v0  ;;  %456 = vmatmul.msk.bf16.vlgmr.msra.gmra.mxu2 %vm133_vm0, %v198_v7  ;;  %v261_v25 = vpop.permute.xlu2 %260 }
  0x96   : > { %340 = vmatpush.bf16.xpose.msrb.mxu0 %v331_v19 }
  0x9d   : > { %v324_v26 = vpop.permute.xlu2 %323 }
  0xa5   : > { %460 = vmatmul.msk.bf16.vlgmr.msrb.gmra.mxu0 %vm133_vm0, %v324_v26 }
 0x112   : > { %v149_v12 = vpop.f32.mrf.mxu0 }
 0x113   : > { %v155_v13 = vsel %vm595_vm1, %v149_v12, -1e+09 }
 0x114   : > { %v157_v14 = vsel %vm156_vm2, %v155_v13, -inf }
 0x115   : > { %158 = vmax.xlane.f32.xlu0 %v157_v14 }
 0x118   : > { %v216_v27 = vpop.f32.mrf.mxu2 }
 0x119   : > { %v220_v28 = vsel %vm595_vm1, %v216_v27, -1e+09 }
 0x11a   : > { %v151_v15 = vpop.f32.mrf.mxu0  ;;  %v221_v30 = vsel %vm156_vm2, %v220_v28, -inf }
 0x11b   : > { %222 = vmax.xlane.f32.xlu2 %v221_v30 }
 0x120   : > { %v218_v33 = vpop.f32.mrf.mxu2 }
 0x122   : > { %v342_v36 = vpop.f32.mrf.mxu0 }
 0x123   : > { %v346_v37 = vsel %vm595_vm1, %v342_v36, -1e+09 }
 0x124   : > { %v347_v38 = vsel %vm156_vm2, %v346_v37, -inf }
 0x12a   : > { %v344_v40 = vpop.f32.mrf.mxu0 }
 0x188   : > { %v159_v29 = vpop.xlane.xlu0 %158 }
 0x189   : > { %v160_v31 = vsub.f32 %v155_v13, %v159_v29 }
 0x18b   : > { %v161_v32 = vmul.f32 1.442695, %v160_v31 }
 0x18d   : > { %488 = vpow2.f32 %v161_v32 }
 0x18e   : > { %v223_v45 = vpop.xlane.xlu2 %222 }
 0x18f   : > { %v224_v47 = vsub.f32 %v220_v28, %v223_v45  ;;  %v391_v28 = vld [vmem:[%s120_s8] sm:$0xf] }
 0x191   : > { %v225_v48 = vmul.f32 1.442695, %v224_v47 }
 0x193   : > { %v489_v34 = vpop.eup %488 }
 0x194   : > { %v163_v35 = vsel %vm156_vm2, %v489_v34, 0.0 }
 0x195   : > { %164 = vadd.xlane.f32.xlu1 %v163_v35 }
 0x19d   : > { %348 = vmax.xlane.f32.xlu1 %v347_v38 }
 0x1b6   : > { %233 = vrot.lane.b32.xlu1 %v580_v2, %s536_s28 }
 0x1be   : > { %359 = vrot.lane.b32.xlu1 %v580_v2, %s537_s29 }
 0x208   : > { %v165_v39 = vpop.xlane.xlu1 %164 }
 0x209   : > { %490 = vrcp.f32 %v165_v39 }
 0x20a   : > { %492 = vpow2.f32 %v225_v48 }
 0x20f   : > { %v491_v41 = vpop.eup %490 }
 0x210   : > { %v167_v42 = vmul.f32 %v491_v41, %v489_v34  ;;  %v349_v49 = vpop.xlane.xlu1 %348  ;;  %v493_v55 = vpop.eup %492 }
 0x211   : > { %v350_v51 = vsub.f32 %v346_v37, %v349_v49  ;;  %v227_v57 = vsel %vm156_vm2, %v493_v55, 0.0 }
 0x212   : > { %v168_v43 = vpack.c.bf16 %v167_v42, %v167_v42 }
 0x213   : > { %v351_v54 = vmul.f32 1.442695, %v350_v51 }
 0x214   : > { %455 = vmatmul.msk.bf16.vlgmr.msra.gmra.mxu1 %vm171_vm5, %v168_v43 }
 0x215   : > { %494 = vpow2.f32 %v351_v54 }
 0x21b   : > { %v495_v58 = vpop.eup %494 }
 0x21c   : > { %v353_v59 = vsel %vm156_vm2, %v495_v58, 0.0 }
 0x224   : > { %458 = vmatmul.msk.bf16.vlgmr.msrb.gmra.mxu1 %vm133_vm0, %v261_v25 }
 0x228   : > { %v234_v60 = vpop.permute.xlu1 %233 }
 0x229   : > { %v239_v61 = vand.u32 %v234_v60, %v603_v22 }
 0x22b   : > { %248 = vmatpush.bf16.msra.mxu3 %v239_v61 }
 0x230   : > { %v360_v62 = vpop.permute.xlu1 %359 }
 0x231   : > { %v365_v63 = vand.u32 %v360_v62, %v603_v22 }
 0x233   : > { %374 = vmatpush.bf16.msrb.mxu2 %v365_v63 }
 0x291   : > { %v191_v44 = vpop.f32.mrf.mxu1 }
 0x292   : > { %196 = vst.msk [vmem:[#allocation2] sm:$0x7f] %vm195_vm6, %v191_v44 }
 0x299   : > { %v193_v46 = vpop.f32.mrf.mxu1 }
 0x2a1   : > { %v279_v50 = vpop.f32.mrf.mxu1 }
 0x2a2   : > { %v283_v52 = vsel %vm595_vm1, %v279_v50, -1e+09 }
 0x2a3   : > { %v284_v53 = vsel %vm156_vm2, %v283_v52, -inf }
 0x2a4   : > { %285 = vmax.xlane.f32.xlu0 %v284_v53 }
 0x2a9   : > { %v281_v56 = vpop.f32.mrf.mxu1 }
 0x2ac   : > { %228 = vadd.xlane.f32.xlu0 %v227_v57 }
 0x2b4   : > { %354 = vadd.xlane.f32.xlu0 %v353_v59 }
 0x317   : > { %v286_v0 = vpop.xlane.xlu0 %285 }
 0x318   : > { %v287_v1 = vsub.f32 %v283_v52, %v286_v0 }
 0x31a   : > { %v288_v3 = vmul.f32 1.442695, %v287_v1 }
 0x31c   : > { %496 = vpow2.f32 %v288_v3 }
 0x31f   : > { %v229_v4 = vpop.xlane.xlu0 %228 }
 0x320   : > { %498 = vrcp.f32 %v229_v4 }
 0x322   : > { %v497_v5 = vpop.eup %496 }
 0x323   : > { %v290_v6 = vsel %vm156_vm2, %v497_v5, 0.0 }
 0x324   : > { %291 = vadd.xlane.f32.xlu0 %v290_v6 }
 0x326   : > { %v499_v7 = vpop.eup %498 }
 0x327   : > { %v355_v8 = vpop.xlane.xlu0 %354  ;;  %v231_v9 = vmul.f32 %v499_v7, %v493_v55 }
 0x328   : > { %500 = vrcp.f32 %v355_v8 }
 0x329   : > { %v232_v10 = vpack.c.bf16 %v231_v9, %v231_v9 }
 0x32b   : > { %457 = vmatmul.msk.bf16.vlgmr.msra.gmra.mxu3 %vm171_vm5, %v232_v10 }
 0x32e   : > { %v501_v11 = vpop.eup %500 }
 0x32f   : > { %v357_v12 = vmul.f32 %v501_v11, %v495_v58 }
 0x331   : > { %v358_v13 = vpack.c.bf16 %v357_v12, %v357_v12 }
 0x333   : > { %461 = vmatmul.msk.bf16.vlgmr.msrb.gmra.mxu2 %vm171_vm5, %v358_v13 }
 0x338   : > { %296 = vrot.lane.b32.xlu0 %v580_v2, %s538_s30 }
 0x397   : > { %v292_v14 = vpop.xlane.xlu0 %291 }
 0x398   : > { %502 = vrcp.f32 %v292_v14 }
 0x39e   : > { %v503_v15 = vpop.eup %502 }
 0x39f   : > { %v294_v16 = vmul.f32 %v503_v15, %v497_v5 }
 0x3a1   : > { %v295_v20 = vpack.c.bf16 %v294_v16, %v294_v16 }
 0x3aa   : > { %v297_v17 = vpop.permute.xlu0 %296 }
 0x3ab   : > { %v302_v18 = vand.u32 %v297_v17, %v603_v22 }
 0x3ad   : > { %311 = vmatpush.bf16.msrb.mxu3 %v302_v18 }
 0x3ae   : > { %v250_v19 = vpop.f32.mrf.mxu3 }
 0x3af   : > { %255 = vrot.lane.b32.xlu2 %v250_v19, %s539_s3 }
 0x3b0   : > { %459 = vmatmul.msk.bf16.vlgmr.msrb.gmra.mxu3 %vm171_vm5, %v295_v20 }
 0x3b6   : > { %v252_v21 = vpop.f32.mrf.mxu3  ;;  %v376_v23 = vpop.f32.mrf.mxu2 }
 0x3be   : > { %v378_v24 = vpop.f32.mrf.mxu2 }
 0x409   : > { %v256_v2 = vpop.permute.xlu2 %255 }
 0x40a   : > { %259 = vst.msk [vmem:[#allocation2] sm:$0x7f] %vm258_vm7, %v256_v2 }
 0x433   : > { %v313_v25 = vpop.f32.mrf.mxu3 }
 0x434   : > { %318 = vrot.lane.b32.xlu1 %v313_v25, %s540_s4 }
 0x43b   : > { %v315_v26 = vpop.f32.mrf.mxu3 }
 0x43c   : > { %381 = vrot.lane.b32.xlu1 %v376_v23, %s541_s5 }
 0x4a6   : > { %v319_v22 = vpop.permute.xlu1 %318 }
 0x4a7   : > { %322 = vst.msk [vmem:[#allocation2] sm:$0x7f] %vm321_vm8, %v319_v22 }
 0x4ae   : > { %v382_v27 = vpop.permute.xlu1 %381 }
 0x4af   : > { %385 = vst.msk [vmem:[#allocation2] sm:$0x7f] %vm384_vm9, %v382_v27 }
 0x4b6   : > { %v386_v29 = vld [vmem:[#allocation2] sm:$0x7f] }
 0x4b7   : > { %v387_v30 = vpack.c.bf16 %v386_v29, %v386_v29 }
 0x4b9   : > { %v392_v31 = vsel %vm390_vm12, %v387_v30, %v391_v28 }
 0x4ba   : > { %393 = vst [vmem:[%s120_s8] sm:$0xf] %v392_v31 }
 0x4bb PF: > { %s20_s13 = sadd.s32 1, %s524_s13  }
 0x4bc   : > { %p17_p4 = scmp.ge.s32.totalorder %s20_s13, 4  }
 0x4be   :  { %19 = sbr.rel (!%p17_p4) target bundleno = 7 (0x7), region = 54 }

// kernel: conformer_encoder_forward.31
= control target key start
LH: loop header
LB: loop body
LE: loop exit
PB: predicated region body
PF: predicated region fallthrough
CT: control target
= control target key end

     0   :  { %vm29_vm0 = vcmask 261120   ;;  %vm33_vm1 = vcmask 259072   ;;  %v229_v4 = vmov 32.0   ;;  %vm180_vm9 = vcmask 257024   ;;  %s312_s0 = inlined_call_operand.vmem [shape: f32[14,32], index: 0, kind: input, shape index: {}]   ;;  %s313_s1 = inlined_call_operand.vmem [shape: f32[1,32], index: 1, kind: input, shape index: {}]   ;;  %s314_s2 = inlined_call_operand.vmem [shape: f32[1,32], index: 2, kind: input, shape index: {}]   ;;  %s315_s4 = inlined_call_operand.vmem [shape: f32[1,32], index: 4, kind: input, shape index: {}]   ;;  %s316_s3 = inlined_call_operand.vmem [shape: bf16[32,32], index: 3, kind: input, shape index: {}]   ;;  %s317_s5 = inlined_call_operand.vmem [shape: bf16[32,32], index: 5, kind: input, shape index: {}]   ;;  %s318_s6 = inlined_call_operand.vmem [shape: f32[1,32], index: 6, kind: input, shape index: {}]   ;;  %s319_s7 = inlined_call_operand.vmem [shape: bf16[14,32], index: 7, kind: output, shape index: {}]  }
   0x1   :  { %v27_v0 = vld [vmem:[%s312_s0] sm:$0xff]  ;;  %v28_v2 = vld [vmem:[%s312_s0 + $0x8] sm:$0x3f]  ;;  %215 = vrcp.f32 %v229_v4  ;;  %vm182_vm10 = vcmask 256000  }
   0x2   :  { %v30_v1 = vsel %vm29_vm0, %v27_v0, 0.0  ;;  %v34_v3 = vsel %vm33_vm1, %v28_v2, 0.0  ;;  %v207_v21 = vld [vmem:[%s316_s3 + $0x8] sm:$0xff]  ;;  %v206_v24 = vld [vmem:[%s316_s3] sm:$0xff] }
   0x3   :  { %31 = vadd.xlane.f32.xlu0 %v30_v1  ;;  %v209_v22 = vld [vmem:[%s317_s5 + $0x8] sm:$0xff]  ;;  %124 = vmatpush.bf16.msra.mxu0 %v207_v21  ;;  %v208_v25 = vld [vmem:[%s317_s5] sm:$0xff] }
   0x4   :  { %158 = vmatpush.bf16.msra.mxu1 %v209_v22  ;;  %v211_v44 = vld [vmem:[%s313_s1] ss:$0 sm:$0xff] }
   0x5   :  { %v212_v49 = vld [vmem:[%s314_s2] ss:$0 sm:$0xff] }
   0x6   :  { %v214_v54 = vld [vmem:[%s318_s6] ss:$0 sm:$0xff] }
   0x7   :  { %v216_v5 = vpop.eup %215  ;;  %125 = vmatpush.bf16.msra.mxu0 %v206_v24 }
   0x8   :  { %v38_v6 = vmul.f32 32.0, %v216_v5  ;;  %vm42_vm2 = vweird.f32 %v216_v5  ;;  %159 = vmatpush.bf16.msra.mxu1 %v208_v25 }
   0xa   :  { %v39_v7 = vsub.f32 1.0, %v38_v6 }
   0xb   :  { %35 = vadd.xlane.f32.xlu0 %v34_v3 }
   0xc   :  { %v40_v8 = vmul.f32 %v216_v5, %v39_v7 }
   0xe   :  { %v41_v9 = vadd.f32 %v216_v5, %v40_v8 }
  0x10   :  { %v43_v10 = vsel %vm42_vm2, %v216_v5, %v41_v9 }
  0x76   :  { %v32_v11 = vpop.xlane.xlu0 %31 }
  0x77   :  { %v44_v12 = vmul.f32 %v43_v10, %v32_v11 }
  0x79   :  { %v46_v13 = vsub.f32 %v27_v0, %v44_v12 }
  0x7b   :  { %v48_v14 = vmul.f32 %v46_v13, %v46_v13 }
  0x7d   :  { %v50_v15 = vsel %vm29_vm0, %v48_v14, 0.0 }
  0x7e   :  { %51 = vadd.xlane.f32.xlu1 %v50_v15  ;;  %v36_v16 = vpop.xlane.xlu0 %35 }
  0x7f   :  { %v45_v17 = vmul.f32 %v43_v10, %v36_v16 }
  0x81   :  { %v47_v18 = vsub.f32 %v28_v2, %v45_v17  ;;  %v213_v2 = vld [vmem:[%s315_s4] ss:$0 sm:$0xff] }
  0x83   :  { %v49_v19 = vmul.f32 %v47_v18, %v47_v18 }
  0x85   :  { %v53_v20 = vsel %vm33_vm1, %v49_v19, 0.0 }
  0x86   :  { %54 = vadd.xlane.f32.xlu1 %v53_v20 }
  0xf1   :  { %v52_v23 = vpop.xlane.xlu1 %51 }
  0xf2   :  { %v56_v26 = vmul.f32 %v52_v23, %v43_v10 }
  0xf4   :  { %v58_v27 = vadd.f32 1e-05, %v56_v26 }
  0xf6   :  { %217 = vrsqrt.f32 %v58_v27  ;;  %vm66_vm4 = vweird.f32 %v58_v27 }
  0xf9   :  { %v55_v28 = vpop.xlane.xlu1 %54 }
  0xfa   :  { %v57_v29 = vmul.f32 %v55_v28, %v43_v10 }
  0xfc   :  { %v218_v30 = vpop.eup %217  ;;  %v59_v31 = vadd.f32 1e-05, %v57_v29 }
  0xfd   :  { %v61_v32 = vmul.f32 %v218_v30, %v58_v27  ;;  %vm67_vm3 = vweird.f32 %v218_v30 }
  0xfe   :  { %219 = vrsqrt.f32 %v59_v31  ;;  %vm68_vm5 = vmor %vm66_vm4, %vm67_vm3  ;;  %vm76_vm7 = vweird.f32 %v59_v31 }
  0xff   :  { %v62_v33 = vmul.f32 %v218_v30, %v61_v32 }
 0x101   :  { %v63_v34 = vmul.f32 0.5, %v62_v33 }
 0x103   :  { %v64_v35 = vsub.f32 1.5, %v63_v34 }
 0x104   :  { %v220_v36 = vpop.eup %219 }
 0x105   :  { %v65_v37 = vmul.f32 %v218_v30, %v64_v35  ;;  %v71_v38 = vmul.f32 %v220_v36, %v59_v31  ;;  %vm77_vm6 = vweird.f32 %v220_v36 }
 0x106   :  { %vm78_vm8 = vmor %vm76_vm7, %vm77_vm6 }
 0x107   :  { %v72_v39 = vmul.f32 %v220_v36, %v71_v38  ;;  %v69_v40 = vsel %vm68_vm5, %v218_v30, %v65_v37 }
 0x108   :  { %v80_v43 = vmul.f32 %v69_v40, %v46_v13 }
 0x109   :  { %v73_v41 = vmul.f32 0.5, %v72_v39 }
 0x10a   :  { %v86_v48 = vmul.f32 %v211_v44, %v80_v43 }
 0x10b   :  { %v74_v42 = vsub.f32 1.5, %v73_v41 }
 0x10c   :  { %v92_v51 = vadd.f32 %v212_v49, %v86_v48 }
 0x10d   :  { %v75_v45 = vmul.f32 %v220_v36, %v74_v42 }
 0x10f   :  { %v79_v46 = vsel %vm78_vm8, %v220_v36, %v75_v45 }
 0x110   :  { %v81_v47 = vmul.f32 %v79_v46, %v47_v18 }
 0x112   :  { %v87_v50 = vmul.f32 %v211_v44, %v81_v47 }
 0x114   :  { %v93_v52 = vadd.f32 %v212_v49, %v87_v50 }
 0x116   :  { %v94_v53 = vpack.c.bf16 %v93_v52, %v92_v51 }
 0x118   :  { %196 = vmatmul.msk.bf16.vlgmr.msra.gmra.mxu0 %vm29_vm0, %v94_v53  ;;  %205 = vmatmul.msk.bf16.vlgmr.msra.gmra.mxu1 %vm29_vm0, %v94_v53 }
 0x195   :  { %v161_v55 = vpop.f32.mrf.mxu1  ;;  %v127_v1 = vpop.f32.mrf.mxu0 }
 0x196   :  { %v162_v56 = vadd.f32 %v214_v54, %v161_v55  ;;  %v128_v4 = vadd.f32 %v213_v2, %v127_v1 }
 0x198   :  { %v166_v57 = vsub.f32 0.0, %v162_v56 }
 0x19a   :  { %v168_v58 = vmul.f32 1.442695, %v166_v57 }
 0x19c   :  { %221 = vpow2.f32 %v168_v58 }
 0x19d   :  { %v163_v59 = vpop.f32.mrf.mxu1  ;;  %v129_v9 = vpop.f32.mrf.mxu0 }
 0x19e   :  { %v164_v60 = vadd.f32 %v214_v54, %v163_v59  ;;  %v130_v10 = vadd.f32 %v213_v2, %v129_v9 }
 0x1a0   :  { %v167_v61 = vsub.f32 0.0, %v164_v60 }
 0x1a2   :  { %v222_v62 = vpop.eup %221  ;;  %v170_v63 = vmul.f32 1.442695, %v167_v61 }
 0x1a3   :  { %v172_v0 = vadd.f32 1.0, %v222_v62 }
 0x1a4   :  { %223 = vpow2.f32 %v170_v63 }
 0x1a5   :  { %225 = vrcp.f32 %v172_v0 }
 0x1aa   :  { %v224_v3 = vpop.eup %223 }
 0x1ab   :  { %v226_v5 = vpop.eup %225  ;;  %v173_v6 = vadd.f32 1.0, %v224_v3 }
 0x1ac   :  { %v176_v7 = vmul.f32 %v226_v5, %v128_v4 }
 0x1ad   :  { %227 = vrcp.f32 %v173_v6 }
 0x1ae   :  { %v178_v8 = vpack.c.bf16 %v176_v7, %v176_v7 }
 0x1b0   :  { %181 = vst.msk [vmem:[%s319_s7] sm:$0xf] %vm180_vm9, %v178_v8 }
 0x1b3   :  { %v228_v11 = vpop.eup %227 }
 0x1b4   :  { %v177_v12 = vmul.f32 %v228_v11, %v130_v10 }
 0x1b6   :  { %v179_v13 = vpack.c.bf16 %v177_v12, %v177_v12 }
 0x1b8   :  { %183 = vst.msk [vmem:[%s319_s7 + $0x4] sm:$0x7] %vm182_vm10, %v179_v13 }

// kernel: conformer_encoder_forward.32
= control target key start
LH: loop header
LB: loop body
LE: loop exit
PB: predicated region body
PF: predicated region fallthrough
CT: control target
= control target key end

     0   :  { %s395_s18 = smov 0   ;;  %s428_s0 = inlined_call_operand.vmem [shape: bf16[2,16,32], index: 0, kind: input, shape index: {}]   ;;  %s429_s1 = inlined_call_operand.vmem [shape: f32[3,32], index: 1, kind: input, shape index: {}]   ;;  %s430_s2 = inlined_call_operand.vmem [shape: f32[1,32], index: 2, kind: input, shape index: {}]   ;;  %s431_s3 = inlined_call_operand.vmem [shape: f32[1,32], index: 3, kind: input, shape index: {}]   ;;  %s432_s4 = inlined_call_operand.vmem [shape: f32[1,32], index: 4, kind: input, shape index: {}]   ;;  %s433_s5 = inlined_call_operand.vmem [shape: bf16[2,7,32], index: 5, kind: output, shape index: {}]  }
   0x1 LB: > { %s327_s19 = sadd.s32 4294967295, %s363_s18   ;;  %p331_p0 = scmp.ge.s32.totalorder %s363_s18, 1  ;;  %s363_s18 = sphi %s395_s18, %s15_s18  }
   0x2   : > { %p187_p1 = scmp.lt.s32.totalorder %s363_s18, 3 }
   0x4   : > { %p188_p2 = pnand %p331_p0, %p187_p1 }
   0x5   : > { %p214_p3 = scmp.lt.s32.totalorder (!%p188_p2), %s327_s19, 1 }
   0x6   : > { %191 = sbr.rel (%p188_p2) target bundleno = 58 (0x3a), region = 40 }
   0xb   : > { %v232_v0 = vlaneseq  ;;  %s435_s19 = smov (!%p214_p3, %s327_s19), 1  ;;  %v227_v1 = vld [vmem:[%s429_s1] sm:$0x7]  ;;  %vm268_vm2 = vcmask 257024   ;;  %vm269_vm3 = vsmask.f32 3328 }
   0xc   : > { %s337_s22 = sshll.u32 %s435_s19, 3  ;;  %v228_v4 = vperm.slane %v227_v1, 0  ;;  %v236_v7 = vperm.slane %v227_v1, 1  ;;  %v243_v8 = vperm.slane %v227_v1, 2  ;;  %v350_v19 = vld [vmem:[%s430_s2] ss:$0 sm:$0xff]  ;;  %vm270_vm4 = vmand %vm268_vm2, %vm269_vm3 }
   0xd   : > { %v233_v2 = vshrl.u32 %v232_v0, 7  ;;  %s218_s25 = scalar_lea.vmem %s428_s0, %s337_s22  ;;  %v351_v21 = vld [vmem:[%s431_s3] ss:$0 sm:$0xff]  ;;  %s334_s7 = sshll.u32 %s435_s19, 2 }
   0xe   : > { %v339_v3 = vld [vmem:[%s218_s25] sm:$0xff]   ;;  %s222_s10 = scalar_lea.vmem %s433_s5, %s334_s7 }
   0xf   : > { %v340_v5 = vunpack.c.l.bf16 %v339_v3  ;;  %v341_v6 = vunpack.c.h.bf16 %v339_v3  ;;  %vm234_vm0 = vcmp.lt.s32.totalorder %v233_v2, 7  ;;  %vm241_vm1 = vcmp.lt.s32.totalorder %v233_v2, 6  ;;  %v352_v23 = vld [vmem:[%s432_s4] ss:$0 sm:$0xff] }
  0x10   : > { %v271_v32 = vld [vmem:[%s222_s10] sm:$0xf] }
  0x11   : > { %v230_v9 = vrot.slane %v340_v5, 1  ;;  %v231_v10 = vrot.slane %v341_v6, 1  ;;  %v239_v11 = vrot.slane %v340_v5, 2  ;;  %v229_v12 = vmul.f32 %v340_v5, %v228_v4 }
  0x12   : > { %v240_v13 = vrot.slane %v341_v6, 2 }
  0x13   : > { %v235_v14 = vsel %vm234_vm0, %v230_v9, %v231_v10 }
  0x14   : > { %v237_v15 = vmul.f32 %v236_v7, %v235_v14  ;;  %v242_v16 = vsel %vm241_vm1, %v239_v11, %v240_v13 }
  0x15   : > { %v244_v17 = vmul.f32 %v243_v8, %v242_v16 }
  0x16   : > { %v238_v18 = vadd.f32 %v237_v15, %v229_v12 }
  0x18   : > { %v245_v20 = vadd.f32 %v244_v17, %v238_v18 }
  0x1a   : > { %v250_v22 = vadd.f32 %v350_v19, %v245_v20 }
  0x1c   : > { %v255_v24 = vmul.f32 %v351_v21, %v250_v22 }
  0x1e   : > { %v260_v25 = vadd.f32 %v352_v23, %v255_v24 }
  0x20   : > { %v261_v26 = vsub.f32 0.0, %v260_v25 }
  0x22   : > { %v262_v27 = vmul.f32 1.442695, %v261_v26 }
  0x24   : > { %353 = vpow2.f32 %v262_v27 }
  0x2a   : > { %v354_v28 = vpop.eup %353 }
  0x2b   : > { %v264_v29 = vadd.f32 1.0, %v354_v28 }
  0x2d   : > { %355 = vrcp.f32 %v264_v29 }
  0x33   : > { %v356_v30 = vpop.eup %355 }
  0x34   : > { %v266_v31 = vmul.f32 %v356_v30, %v260_v25 }
  0x36   : > { %v267_v33 = vpack.c.bf16 %v266_v31, %v266_v31 }
  0x38   : > { %v272_v34 = vsel %vm270_vm4, %v267_v33, %v271_v32 }
  0x39   : > { %273 = vst [vmem:[%s222_s10] sm:$0xf] %v272_v34 }
  0x3a PF: > { %s15_s18 = sadd.s32 1, %s363_s18  }
  0x3b   : > { %p12_p4 = scmp.ge.s32.totalorder %s15_s18, 4  }
  0x3d   :  { %14 = sbr.rel (!%p12_p4) target bundleno = 1 (0x1), region = 70 }

// kernel: conformer_encoder_forward.35
= control target key start
LH: loop header
LB: loop body
LE: loop exit
PB: predicated region body
PF: predicated region fallthrough
CT: control target
= control target key end

     0   :  { %vm67_vm0 = vcmask 523264   ;;  %vm91_vm1 = vcmask 261120   ;;  %vm95_vm2 = vcmask 259072   ;;  %v198_v20 = vmov 32.0   ;;  %s279_s1 = inlined_call_operand.vmem [shape: bf16[64,32], index: 1, kind: input, shape index: {}]   ;;  %s280_s2 = inlined_call_operand.vmem [shape: f32[1,32], index: 2, kind: input, shape index: {}]   ;;  %s281_s0 = inlined_call_operand.vmem [shape: bf16[14,64], index: 0, kind: input, shape index: {}]   ;;  %s282_s3 = inlined_call_operand.vmem [shape: f32[14,32], index: 3, kind: input, shape index: {}]   ;;  %s283_s4 = inlined_call_operand.vmem [shape: f32[1,32], index: 4, kind: input, shape index: {}]   ;;  %s284_s5 = inlined_call_operand.vmem [shape: f32[1,32], index: 5, kind: input, shape index: {}]   ;;  %s285_s6 = inlined_call_operand.vmem [shape: f32[14,32], index: 6, kind: output, shape index: {}]  }
   0x1   :  { %v187_v0 = vld [vmem:[%s279_s1 + $0x18] sm:$0xff]  ;;  %v186_v1 = vld [vmem:[%s279_s1 + $0x10] sm:$0xff]  ;;  %v185_v2 = vld [vmem:[%s279_s1 + $0x8] sm:$0xff]  ;;  %192 = vrcp.f32 %v198_v20 }
   0x2   :  { %75 = vmatpush.bf16.msra.mxu0 %v187_v0  ;;  %v184_v3 = vld [vmem:[%s279_s1] sm:$0xff]  ;;  %v86_v16 = vld [vmem:[%s282_s3 + $0x8] sm:$0x3f] }
   0x3   :  { %v164_v4 = vld [vmem:[%s281_s0] sm:$0xf]  ;;  %v183_v5 = vld [vmem:[%s281_s0] sm:$0x70] }
   0x4   :  { %v165_v6 = vor.u32 %v183_v5, %v164_v4  ;;  %v189_v7 = vld [vmem:[%s280_s2] ss:$0 sm:$0xff] }
   0x5   :  { %v85_v10 = vld [vmem:[%s282_s3] sm:$0xff] }
   0x6   :  { %76 = vmatpush.bf16.msra.mxu0 %v186_v1  ;;  %v190_v51 = vld [vmem:[%s283_s4] ss:$0 sm:$0xff] }
   0x7   :  { %v193_v21 = vpop.eup %192  ;;  %v191_v54 = vld [vmem:[%s284_s5] ss:$0 sm:$0xff] }
   0x8   :  { %v100_v22 = vmul.f32 32.0, %v193_v21  ;;  %vm104_vm3 = vweird.f32 %v193_v21 }
   0xa   :  { %77 = vmatpush.bf16.msra.mxu0 %v185_v2  ;;  %v101_v23 = vsub.f32 1.0, %v100_v22 }
   0xc   :  { %v102_v24 = vmul.f32 %v193_v21, %v101_v23 }
   0xe   :  { %78 = vmatpush.bf16.msra.mxu0 %v184_v3  ;;  %v103_v25 = vadd.f32 %v193_v21, %v102_v24 }
  0x10   :  { %v105_v26 = vsel %vm104_vm3, %v193_v21, %v103_v25 }
  0x11   :  { %182 = vmatmul.msk.bf16.vlgmr.msra.gmra.mxu0 %vm67_vm0, %v165_v6 }
  0x8e   :  { %v80_v8 = vpop.f32.mrf.mxu0 }
  0x8f   :  { %v81_v9 = vadd.f32 %v189_v7, %v80_v8 }
  0x91   :  { %v87_v11 = vmul.f32 0.5, %v81_v9 }
  0x93   :  { %v89_v12 = vadd.f32 %v87_v11, %v85_v10 }
  0x95   :  { %v92_v13 = vsel %vm91_vm1, %v89_v12, 0.0 }
  0x96   :  { %v82_v14 = vpop.f32.mrf.mxu0  ;;  %93 = vadd.xlane.f32.xlu0 %v92_v13 }
  0x97   :  { %v83_v15 = vadd.f32 %v189_v7, %v82_v14 }
  0x99   :  { %v88_v17 = vmul.f32 0.5, %v83_v15 }
  0x9b   :  { %v90_v18 = vadd.f32 %v88_v17, %v86_v16 }
  0x9d   :  { %v96_v19 = vsel %vm95_vm2, %v90_v18, 0.0 }
  0x9e   :  { %97 = vadd.xlane.f32.xlu0 %v96_v19 }
 0x109   :  { %v94_v27 = vpop.xlane.xlu0 %93 }
 0x10a   :  { %v106_v28 = vmul.f32 %v105_v26, %v94_v27 }
 0x10c   :  { %v108_v29 = vsub.f32 %v89_v12, %v106_v28 }
 0x10e   :  { %v110_v30 = vmul.f32 %v108_v29, %v108_v29 }
 0x110   :  { %v112_v31 = vsel %vm91_vm1, %v110_v30, 0.0 }
 0x111   :  { %113 = vadd.xlane.f32.xlu1 %v112_v31  ;;  %v98_v32 = vpop.xlane.xlu0 %97 }
 0x112   :  { %v107_v33 = vmul.f32 %v105_v26, %v98_v32 }
 0x114   :  { %v109_v34 = vsub.f32 %v90_v18, %v107_v33 }
 0x116   :  { %v111_v35 = vmul.f32 %v109_v34, %v109_v34 }
 0x118   :  { %v115_v36 = vsel %vm95_vm2, %v111_v35, 0.0 }
 0x119   :  { %116 = vadd.xlane.f32.xlu1 %v115_v36 }
 0x184   :  { %v114_v37 = vpop.xlane.xlu1 %113 }
 0x185   :  { %v118_v38 = vmul.f32 %v114_v37, %v105_v26 }
 0x187   :  { %v120_v39 = vadd.f32 1e-05, %v118_v38 }
 0x189   :  { %194 = vrsqrt.f32 %v120_v39  ;;  %vm128_vm5 = vweird.f32 %v120_v39 }
 0x18c   :  { %v117_v40 = vpop.xlane.xlu1 %116 }
 0x18d   :  { %v119_v41 = vmul.f32 %v117_v40, %v105_v26 }
 0x18f   :  { %v195_v42 = vpop.eup %194  ;;  %v121_v43 = vadd.f32 1e-05, %v119_v41 }
 0x190   :  { %v123_v44 = vmul.f32 %v195_v42, %v120_v39  ;;  %vm129_vm4 = vweird.f32 %v195_v42 }
 0x191   :  { %196 = vrsqrt.f32 %v121_v43  ;;  %vm130_vm6 = vmor %vm128_vm5, %vm129_vm4  ;;  %vm138_vm8 = vweird.f32 %v121_v43 }
 0x192   :  { %v124_v45 = vmul.f32 %v195_v42, %v123_v44 }
 0x194   :  { %v125_v46 = vmul.f32 0.5, %v124_v45 }
 0x196   :  { %v126_v47 = vsub.f32 1.5, %v125_v46 }
 0x197   :  { %v197_v48 = vpop.eup %196 }
 0x198   :  { %v127_v49 = vmul.f32 %v195_v42, %v126_v47  ;;  %v133_v50 = vmul.f32 %v197_v48, %v121_v43  ;;  %vm139_vm7 = vweird.f32 %v197_v48 }
 0x199   :  { %vm140_vm9 = vmor %vm138_vm8, %vm139_vm7 }
 0x19a   :  { %v131_v52 = vsel %vm130_vm6, %v195_v42, %v127_v49  ;;  %v134_v53 = vmul.f32 %v197_v48, %v133_v50 }
 0x19b   :  { %v142_v55 = vmul.f32 %v131_v52, %v108_v29 }
 0x19c   :  { %v135_v56 = vmul.f32 0.5, %v134_v53 }
 0x19d   :  { %v148_v57 = vmul.f32 %v190_v51, %v142_v55 }
 0x19e   :  { %v136_v58 = vsub.f32 1.5, %v135_v56 }
 0x19f   :  { %v154_v59 = vadd.f32 %v191_v54, %v148_v57 }
 0x1a0   :  { %v137_v60 = vmul.f32 %v197_v48, %v136_v58 }
 0x1a1   :  { %156 = vst.msk [vmem:[%s285_s6] sm:$0xff] %vm91_vm1, %v154_v59 }
 0x1a2   :  { %v141_v61 = vsel %vm140_vm9, %v197_v48, %v137_v60 }
 0x1a3   :  { %v143_v62 = vmul.f32 %v141_v61, %v109_v34 }
 0x1a5   :  { %v149_v63 = vmul.f32 %v190_v51, %v143_v62 }
 0x1a7   :  { %v155_v0 = vadd.f32 %v191_v54, %v149_v63 }
 0x1a9   :  { %157 = vst.msk [vmem:[%s285_s6 + $0x8] sm:$0x3f] %vm95_vm2, %v155_v0 }

</bundles_post_ra>
